<compile_context>
chip_gen: v6e
topology: v6e:2x2x1
jax: 0.10.0
libtpu: 0.0.40
codegen_flags: <defaults>
</compile_context>

<pallas_src>
import jax
import jax.numpy as jnp
import numpy as np
from jax import lax
from jax.experimental import pallas as pl
from jax.experimental.pallas import tpu as pltpu


def _make_kernel(R, L, C, K):
    pad = K // 2

    def kernel(x_ref, w1_ref, b1_ref, w2_ref, b2_ref, g_ref, bt_ref, o_ref):
        # x_ref      : (R, C)     rows = batch*length on sublanes, channels on lanes
        # w1/w2_ref  : (K, C, C)  per-tap (C_in, C_out) weights
        # b*/g/bt    : (1, C)
        # o_ref      : (R, C)
        f32 = jnp.float32
        hi = lax.Precision.HIGHEST
        x = x_ref[...].astype(f32)                                   # (R, C)

        # Per-tap shift matrices with per-sequence zero padding folded in:
        #   (S_d @ v)[i, :] = v[i + d, :]  if 0 <= (i mod L) + d < L  else 0
        # Built once on the VPU; applied on the idle MXU (exact: one 0/1 term per row).
        row = lax.broadcasted_iota(jnp.int32, (R, R), 0)
        col = lax.broadcasted_iota(jnp.int32, (R, R), 1)
        pos = row % L                                                # position within seq
        smat = {}
        for k in range(K):
            d = k - pad
            if d == 0:
                continue
            sel = jnp.logical_and(col == row + d,
                                  jnp.logical_and(pos + d >= 0, pos + d < L))
            smat[d] = jnp.where(sel, 1.0, 0.0).astype(f32)           # (R, R)

        def conv(v, w_ref):
            # y[i, co] = sum_{k, ci} v[i + k - pad, ci] * w[k, ci, co]   (zero padded)
            acc = jnp.dot(v, w_ref[pad], preferred_element_type=f32, precision=hi)
            for k in range(K):
                d = k - pad
                if d == 0:
                    continue
                vs = jnp.dot(smat[d], v, preferred_element_type=f32, precision=hi)
                acc = acc + jnp.dot(vs, w_ref[k],
                                    preferred_element_type=f32, precision=hi)
            return acc

        # ---- conv1 + bias + ReLU -------------------------------------------------
        h = jnp.maximum(conv(x, w1_ref) + b1_ref[...], 0.0)          # (R, C)

        # ---- conv2 + bias + residual ----------------------------------------------
        z = conv(h, w2_ref) + b2_ref[...] + x                        # (R, C)

        # ---- LayerNorm over channels (eps = 1e-5, biased variance) -----------------
        mean = jnp.mean(z, axis=-1, keepdims=True)
        var = jnp.mean(jnp.square(z - mean), axis=-1, keepdims=True)
        zn = (z - mean) * lax.rsqrt(var + 1e-5)
        o_ref[...] = (zn * g_ref[...] + bt_ref[...]).astype(o_ref.dtype)

    return kernel


def decoder_block(x, w1, b1, w2, b2, gamma, beta):
    """x: (B, C, L) float32 (PyTorch NCL).  Returns (B, C, L)."""
    B, C, L = x.shape
    K = w1.shape[0]
    R = B * L

    # NCL -> (B*L, C): channels on the lane axis.  Fuses to one small copy under jit.
    x_rows = jnp.transpose(x, (0, 2, 1)).reshape(R, C)

    mxu_flops = 2 * (K * 2 * R * C * C + (K - 1) * 2 * R * R * C)
    flops = mxu_flops + 10 * R * C
    bytes_accessed = 4 * (2 * R * C + 2 * K * C * C + 4 * C)

    kernel = _make_kernel(R, L, C, K)
    out_rows = pl.pallas_call(
        kernel,
        out_shape=jax.ShapeDtypeStruct((R, C), x.dtype),
        grid=(1,),
        in_specs=[
            pl.BlockSpec((R, C), lambda i: (0, 0)),         # x rows
            pl.BlockSpec((K, C, C), lambda i: (0, 0, 0)),   # w1 (k, ci, co)
            pl.BlockSpec((1, C), lambda i: (0, 0)),         # b1
            pl.BlockSpec((K, C, C), lambda i: (0, 0, 0)),   # w2 (k, ci, co)
            pl.BlockSpec((1, C), lambda i: (0, 0)),         # b2
            pl.BlockSpec((1, C), lambda i: (0, 0)),         # gamma
            pl.BlockSpec((1, C), lambda i: (0, 0)),         # beta
        ],
        out_specs=pl.BlockSpec((R, C), lambda i: (0, 0)),
        compiler_params=pltpu.CompilerParams(dimension_semantics=("arbitrary",)),
        cost_estimate=pl.CostEstimate(flops=flops, transcendentals=R,
                                      bytes_accessed=bytes_accessed),
    )(x_rows, w1, b1.reshape(1, C), w2, b2.reshape(1, C),
      gamma.reshape(1, C), beta.reshape(1, C))

    return jnp.transpose(out_rows.reshape(B, L, C), (0, 2, 1))


def reference_forward(x, w1, b1, w2, b2, gamma, beta):
    """Pure-JAX reference matching torch semantics (for correctness check)."""
    K = w1.shape[0]
    pad = K // 2

    def conv1d(inp, w, b):
        # inp (B, C, L); w stored as (K, Cin, Cout) -> torch (Cout, Cin, K)
        wt = jnp.transpose(w, (2, 1, 0))
        y = lax.conv_general_dilated(
            inp, wt, window_strides=(1,), padding=((pad, pad),),
            dimension_numbers=("NCH", "OIH", "NCH"),
            precision=lax.Precision.HIGHEST)
        return y + b[None, :, None]

    y = conv1d(x, w1, b1)
    y = jnp.maximum(y, 0.0)
    y = conv1d(y, w2, b2)
    y = y + x
    yp = jnp.transpose(y, (0, 2, 1))
    mean = jnp.mean(yp, axis=-1, keepdims=True)
    var = jnp.mean(jnp.square(yp - mean), axis=-1, keepdims=True)
    yn = (yp - mean) / jnp.sqrt(var + 1e-5)
    yn = yn * gamma + beta
    return jnp.transpose(yn, (0, 2, 1))


if __name__ == "__main__":
    B, C, L, K = 2, 32, 16, 5   # n_decoder_filters = 32, kernel_size = 5

    key = jax.random.PRNGKey(0)
    kx, k1, k2, k3, k4, k5, k6 = jax.random.split(key, 7)

    x = jax.random.normal(kx, (B, C, L), dtype=jnp.float32)
    # conv weights kept as (K, C_in, C_out)  (== torch weight[co, ci, k]); biases (C,)
    w1 = 0.1 * jax.random.normal(k1, (K, C, C), dtype=jnp.float32)
    b1 = 0.1 * jax.random.normal(k2, (C,), dtype=jnp.float32)
    w2 = 0.1 * jax.random.normal(k3, (K, C, C), dtype=jnp.float32)
    b2 = 0.1 * jax.random.normal(k4, (C,), dtype=jnp.float32)
    gamma = 1.0 + 0.1 * jax.random.normal(k5, (C,), dtype=jnp.float32)
    beta = 0.1 * jax.random.normal(k6, (C,), dtype=jnp.float32)

    decoder_fn = jax.jit(decoder_block)
    out = decoder_fn(x, w1, b1, w2, b2, gamma, beta)
    out = jax.block_until_ready(out)

    ref = reference_forward(x, w1, b1, w2, b2, gamma, beta)
    assert out.shape == (B, C, L)
    np.testing.assert_allclose(np.asarray(out), np.asarray(ref),
                               rtol=1e-4, atol=1e-4)

    print("KERNEL_OK")
</pallas_src>

<mosaic_0001>
module attributes {stable_mosaic.version = 11 : i64} {
  func.func @kernel(%arg0: i32, %arg1: memref<32x32xf32, #tpu.memory_space<vmem>>, %arg2: memref<5x32x32xf32, #tpu.memory_space<vmem>>, %arg3: memref<1x32xf32, #tpu.memory_space<vmem>>, %arg4: memref<5x32x32xf32, #tpu.memory_space<vmem>>, %arg5: memref<1x32xf32, #tpu.memory_space<vmem>>, %arg6: memref<1x32xf32, #tpu.memory_space<vmem>>, %arg7: memref<1x32xf32, #tpu.memory_space<vmem>>, %arg8: memref<32x32xf32, #tpu.memory_space<vmem>>) attributes {dimension_semantics = [#tpu.dimension_semantics<arbitrary>], iteration_bounds = array<i64: 1>, scalar_prefetch = 0 : i64, scratch_operands = 0 : i64, tpu.core_type = #tpu.core_type<tc>, window_params = [{pipeline_mode = #tpu.pipeline_mode<synchronous>, transform_indices = @transform_0, window_bounds = array<i64: 32, 32>}, {pipeline_mode = #tpu.pipeline_mode<synchronous>, transform_indices = @transform_1, window_bounds = array<i64: 5, 32, 32>}, {pipeline_mode = #tpu.pipeline_mode<synchronous>, transform_indices = @transform_2, window_bounds = array<i64: 1, 32>}, {pipeline_mode = #tpu.pipeline_mode<synchronous>, transform_indices = @transform_3, window_bounds = array<i64: 5, 32, 32>}, {pipeline_mode = #tpu.pipeline_mode<synchronous>, transform_indices = @transform_4, window_bounds = array<i64: 1, 32>}, {pipeline_mode = #tpu.pipeline_mode<synchronous>, transform_indices = @transform_5, window_bounds = array<i64: 1, 32>}, {pipeline_mode = #tpu.pipeline_mode<synchronous>, transform_indices = @transform_6, window_bounds = array<i64: 1, 32>}, {pipeline_mode = #tpu.pipeline_mode<synchronous>, transform_indices = @transform_7, window_bounds = array<i64: 32, 32>}]} {
    %c0 = arith.constant 0 : index
    %c0_0 = arith.constant 0 : index
    %0 = vector.load %arg1[%c0, %c0_0] : memref<32x32xf32, #tpu.memory_space<vmem>>, vector<32x32xf32>
    %1 = tpu.iota {dimensions = array<i32: 0>} : vector<32x32xi32>
    %2 = tpu.iota {dimensions = array<i32: 1>} : vector<32x32xi32>
    %c16_i32 = arith.constant 16 : i32
    %c0_i32 = arith.constant 0 : i32
    %3 = arith.cmpi eq, %c16_i32, %c0_i32 : i32
    %c1_i32 = arith.constant 1 : i32
    %4 = arith.select %3, %c1_i32, %c16_i32 : i32
    %5 = vector.broadcast %4 : i32 to vector<32x32xi32>
    %6 = arith.remsi %1, %5 : vector<32x32xi32>
    %c0_i32_1 = arith.constant 0 : i32
    %7 = vector.broadcast %c0_i32_1 : i32 to vector<32x32xi32>
    %8 = arith.cmpi ne, %6, %7 : vector<32x32xi32>
    %c0_i32_2 = arith.constant 0 : i32
    %9 = vector.broadcast %c0_i32_2 : i32 to vector<32x32xi32>
    %10 = arith.cmpi slt, %6, %9 : vector<32x32xi32>
    %c0_i32_3 = arith.constant 0 : i32
    %11 = arith.cmpi slt, %4, %c0_i32_3 : i32
    %12 = vector.broadcast %11 : i1 to vector<32x32xi1>
    %13 = vector.broadcast %12 : vector<32x32xi1> to vector<32x32xi1>
    %14 = arith.xori %10, %13 : vector<32x32xi1>
    %15 = arith.andi %14, %8 : vector<32x32xi1>
    %16 = vector.broadcast %4 : i32 to vector<32x32xi32>
    %17 = arith.addi %6, %16 : vector<32x32xi32>
    %18 = arith.select %15, %17, %6 : vector<32x32xi1>, vector<32x32xi32>
    %c-2_i32 = arith.constant -2 : i32
    %19 = vector.broadcast %c-2_i32 : i32 to vector<32x32xi32>
    %20 = arith.addi %1, %19 : vector<32x32xi32>
    %21 = arith.cmpi eq, %2, %20 : vector<32x32xi32>
    %c-2_i32_4 = arith.constant -2 : i32
    %22 = vector.broadcast %c-2_i32_4 : i32 to vector<32x32xi32>
    %23 = arith.addi %18, %22 : vector<32x32xi32>
    %c0_i32_5 = arith.constant 0 : i32
    %24 = vector.broadcast %c0_i32_5 : i32 to vector<32x32xi32>
    %25 = arith.cmpi sge, %23, %24 : vector<32x32xi32>
    %c-2_i32_6 = arith.constant -2 : i32
    %26 = vector.broadcast %c-2_i32_6 : i32 to vector<32x32xi32>
    %27 = arith.addi %18, %26 : vector<32x32xi32>
    %c16_i32_7 = arith.constant 16 : i32
    %28 = vector.broadcast %c16_i32_7 : i32 to vector<32x32xi32>
    %29 = arith.cmpi slt, %27, %28 : vector<32x32xi32>
    %30 = arith.andi %25, %29 : vector<32x32xi1>
    %31 = arith.andi %21, %30 : vector<32x32xi1>
    %cst = arith.constant 1.000000e+00 : f32
    %cst_8 = arith.constant 0.000000e+00 : f32
    %32 = vector.broadcast %cst : f32 to vector<32x32xf32>
    %33 = vector.broadcast %cst_8 : f32 to vector<32x32xf32>
    %34 = arith.select %31, %32, %33 : vector<32x32xi1>, vector<32x32xf32>
    %c-1_i32 = arith.constant -1 : i32
    %35 = vector.broadcast %c-1_i32 : i32 to vector<32x32xi32>
    %36 = arith.addi %1, %35 : vector<32x32xi32>
    %37 = arith.cmpi eq, %2, %36 : vector<32x32xi32>
    %c-1_i32_9 = arith.constant -1 : i32
    %38 = vector.broadcast %c-1_i32_9 : i32 to vector<32x32xi32>
    %39 = arith.addi %18, %38 : vector<32x32xi32>
    %c0_i32_10 = arith.constant 0 : i32
    %40 = vector.broadcast %c0_i32_10 : i32 to vector<32x32xi32>
    %41 = arith.cmpi sge, %39, %40 : vector<32x32xi32>
    %c-1_i32_11 = arith.constant -1 : i32
    %42 = vector.broadcast %c-1_i32_11 : i32 to vector<32x32xi32>
    %43 = arith.addi %18, %42 : vector<32x32xi32>
    %c16_i32_12 = arith.constant 16 : i32
    %44 = vector.broadcast %c16_i32_12 : i32 to vector<32x32xi32>
    %45 = arith.cmpi slt, %43, %44 : vector<32x32xi32>
    %46 = arith.andi %41, %45 : vector<32x32xi1>
    %47 = arith.andi %37, %46 : vector<32x32xi1>
    %cst_13 = arith.constant 1.000000e+00 : f32
    %cst_14 = arith.constant 0.000000e+00 : f32
    %48 = vector.broadcast %cst_13 : f32 to vector<32x32xf32>
    %49 = vector.broadcast %cst_14 : f32 to vector<32x32xf32>
    %50 = arith.select %47, %48, %49 : vector<32x32xi1>, vector<32x32xf32>
    %c1_i32_15 = arith.constant 1 : i32
    %51 = vector.broadcast %c1_i32_15 : i32 to vector<32x32xi32>
    %52 = arith.addi %1, %51 : vector<32x32xi32>
    %53 = arith.cmpi eq, %2, %52 : vector<32x32xi32>
    %c1_i32_16 = arith.constant 1 : i32
    %54 = vector.broadcast %c1_i32_16 : i32 to vector<32x32xi32>
    %55 = arith.addi %18, %54 : vector<32x32xi32>
    %c0_i32_17 = arith.constant 0 : i32
    %56 = vector.broadcast %c0_i32_17 : i32 to vector<32x32xi32>
    %57 = arith.cmpi sge, %55, %56 : vector<32x32xi32>
    %c1_i32_18 = arith.constant 1 : i32
    %58 = vector.broadcast %c1_i32_18 : i32 to vector<32x32xi32>
    %59 = arith.addi %18, %58 : vector<32x32xi32>
    %c16_i32_19 = arith.constant 16 : i32
    %60 = vector.broadcast %c16_i32_19 : i32 to vector<32x32xi32>
    %61 = arith.cmpi slt, %59, %60 : vector<32x32xi32>
    %62 = arith.andi %57, %61 : vector<32x32xi1>
    %63 = arith.andi %53, %62 : vector<32x32xi1>
    %cst_20 = arith.constant 1.000000e+00 : f32
    %cst_21 = arith.constant 0.000000e+00 : f32
    %64 = vector.broadcast %cst_20 : f32 to vector<32x32xf32>
    %65 = vector.broadcast %cst_21 : f32 to vector<32x32xf32>
    %66 = arith.select %63, %64, %65 : vector<32x32xi1>, vector<32x32xf32>
    %c2_i32 = arith.constant 2 : i32
    %67 = vector.broadcast %c2_i32 : i32 to vector<32x32xi32>
    %68 = arith.addi %1, %67 : vector<32x32xi32>
    %69 = arith.cmpi eq, %2, %68 : vector<32x32xi32>
    %c2_i32_22 = arith.constant 2 : i32
    %70 = vector.broadcast %c2_i32_22 : i32 to vector<32x32xi32>
    %71 = arith.addi %18, %70 : vector<32x32xi32>
    %c0_i32_23 = arith.constant 0 : i32
    %72 = vector.broadcast %c0_i32_23 : i32 to vector<32x32xi32>
    %73 = arith.cmpi sge, %71, %72 : vector<32x32xi32>
    %c2_i32_24 = arith.constant 2 : i32
    %74 = vector.broadcast %c2_i32_24 : i32 to vector<32x32xi32>
    %75 = arith.addi %18, %74 : vector<32x32xi32>
    %c16_i32_25 = arith.constant 16 : i32
    %76 = vector.broadcast %c16_i32_25 : i32 to vector<32x32xi32>
    %77 = arith.cmpi slt, %75, %76 : vector<32x32xi32>
    %78 = arith.andi %73, %77 : vector<32x32xi1>
    %79 = arith.andi %69, %78 : vector<32x32xi1>
    %cst_26 = arith.constant 1.000000e+00 : f32
    %cst_27 = arith.constant 0.000000e+00 : f32
    %80 = vector.broadcast %cst_26 : f32 to vector<32x32xf32>
    %81 = vector.broadcast %cst_27 : f32 to vector<32x32xf32>
    %82 = arith.select %79, %80, %81 : vector<32x32xi1>, vector<32x32xf32>
    %c2 = arith.constant 2 : index
    %c0_28 = arith.constant 0 : index
    %c0_29 = arith.constant 0 : index
    %83 = vector.load %arg2[%c2, %c0_28, %c0_29] : memref<5x32x32xf32, #tpu.memory_space<vmem>>, vector<1x32x32xf32>
    %84 = vector.shape_cast %83 : vector<1x32x32xf32> to vector<32x32xf32>
    %cst_30 = arith.constant dense<0.000000e+00> : vector<32x32xf32>
    %85 = tpu.matmul %0, %84, %cst_30 {dimension_numbers = #tpu.dot_dimension_numbers<[1], [0], [0], [1], [0, 0, 1, 1], [], []>, precision = #tpu.contract_precision<fp32>} : vector<32x32xf32>, vector<32x32xf32>, vector<32x32xf32> -> vector<32x32xf32>
    %cst_31 = arith.constant dense<0.000000e+00> : vector<32x32xf32>
    %86 = tpu.matmul %34, %0, %cst_31 {dimension_numbers = #tpu.dot_dimension_numbers<[1], [0], [0], [1], [0, 0, 1, 1], [], []>, precision = #tpu.contract_precision<fp32>} : vector<32x32xf32>, vector<32x32xf32>, vector<32x32xf32> -> vector<32x32xf32>
    %c0_32 = arith.constant 0 : index
    %c0_33 = arith.constant 0 : index
    %c0_34 = arith.constant 0 : index
    %87 = vector.load %arg2[%c0_32, %c0_33, %c0_34] : memref<5x32x32xf32, #tpu.memory_space<vmem>>, vector<1x32x32xf32>
    %88 = vector.shape_cast %87 : vector<1x32x32xf32> to vector<32x32xf32>
    %cst_35 = arith.constant dense<0.000000e+00> : vector<32x32xf32>
    %89 = tpu.matmul %86, %88, %cst_35 {dimension_numbers = #tpu.dot_dimension_numbers<[1], [0], [0], [1], [0, 0, 1, 1], [], []>, precision = #tpu.contract_precision<fp32>} : vector<32x32xf32>, vector<32x32xf32>, vector<32x32xf32> -> vector<32x32xf32>
    %90 = arith.addf %85, %89 : vector<32x32xf32>
    %cst_36 = arith.constant dense<0.000000e+00> : vector<32x32xf32>
    %91 = tpu.matmul %50, %0, %cst_36 {dimension_numbers = #tpu.dot_dimension_numbers<[1], [0], [0], [1], [0, 0, 1, 1], [], []>, precision = #tpu.contract_precision<fp32>} : vector<32x32xf32>, vector<32x32xf32>, vector<32x32xf32> -> vector<32x32xf32>
    %c1 = arith.constant 1 : index
    %c0_37 = arith.constant 0 : index
    %c0_38 = arith.constant 0 : index
    %92 = vector.load %arg2[%c1, %c0_37, %c0_38] : memref<5x32x32xf32, #tpu.memory_space<vmem>>, vector<1x32x32xf32>
    %93 = vector.shape_cast %92 : vector<1x32x32xf32> to vector<32x32xf32>
    %cst_39 = arith.constant dense<0.000000e+00> : vector<32x32xf32>
    %94 = tpu.matmul %91, %93, %cst_39 {dimension_numbers = #tpu.dot_dimension_numbers<[1], [0], [0], [1], [0, 0, 1, 1], [], []>, precision = #tpu.contract_precision<fp32>} : vector<32x32xf32>, vector<32x32xf32>, vector<32x32xf32> -> vector<32x32xf32>
    %95 = arith.addf %90, %94 : vector<32x32xf32>
    %cst_40 = arith.constant dense<0.000000e+00> : vector<32x32xf32>
    %96 = tpu.matmul %66, %0, %cst_40 {dimension_numbers = #tpu.dot_dimension_numbers<[1], [0], [0], [1], [0, 0, 1, 1], [], []>, precision = #tpu.contract_precision<fp32>} : vector<32x32xf32>, vector<32x32xf32>, vector<32x32xf32> -> vector<32x32xf32>
    %c3 = arith.constant 3 : index
    %c0_41 = arith.constant 0 : index
    %c0_42 = arith.constant 0 : index
    %97 = vector.load %arg2[%c3, %c0_41, %c0_42] : memref<5x32x32xf32, #tpu.memory_space<vmem>>, vector<1x32x32xf32>
    %98 = vector.shape_cast %97 : vector<1x32x32xf32> to vector<32x32xf32>
    %cst_43 = arith.constant dense<0.000000e+00> : vector<32x32xf32>
    %99 = tpu.matmul %96, %98, %cst_43 {dimension_numbers = #tpu.dot_dimension_numbers<[1], [0], [0], [1], [0, 0, 1, 1], [], []>, precision = #tpu.contract_precision<fp32>} : vector<32x32xf32>, vector<32x32xf32>, vector<32x32xf32> -> vector<32x32xf32>
    %100 = arith.addf %95, %99 : vector<32x32xf32>
    %cst_44 = arith.constant dense<0.000000e+00> : vector<32x32xf32>
    %101 = tpu.matmul %82, %0, %cst_44 {dimension_numbers = #tpu.dot_dimension_numbers<[1], [0], [0], [1], [0, 0, 1, 1], [], []>, precision = #tpu.contract_precision<fp32>} : vector<32x32xf32>, vector<32x32xf32>, vector<32x32xf32> -> vector<32x32xf32>
    %c4 = arith.constant 4 : index
    %c0_45 = arith.constant 0 : index
    %c0_46 = arith.constant 0 : index
    %102 = vector.load %arg2[%c4, %c0_45, %c0_46] : memref<5x32x32xf32, #tpu.memory_space<vmem>>, vector<1x32x32xf32>
    %103 = vector.shape_cast %102 : vector<1x32x32xf32> to vector<32x32xf32>
    %cst_47 = arith.constant dense<0.000000e+00> : vector<32x32xf32>
    %104 = tpu.matmul %101, %103, %cst_47 {dimension_numbers = #tpu.dot_dimension_numbers<[1], [0], [0], [1], [0, 0, 1, 1], [], []>, precision = #tpu.contract_precision<fp32>} : vector<32x32xf32>, vector<32x32xf32>, vector<32x32xf32> -> vector<32x32xf32>
    %105 = arith.addf %100, %104 : vector<32x32xf32>
    %c0_48 = arith.constant 0 : index
    %c0_49 = arith.constant 0 : index
    %106 = vector.load %arg3[%c0_48, %c0_49] : memref<1x32xf32, #tpu.memory_space<vmem>>, vector<1x32xf32>
    %107 = vector.broadcast %106 : vector<1x32xf32> to vector<32x32xf32>
    %108 = arith.addf %105, %107 : vector<32x32xf32>
    %cst_50 = arith.constant 0.000000e+00 : f32
    %109 = vector.broadcast %cst_50 : f32 to vector<32x32xf32>
    %110 = arith.maximumf %108, %109 : vector<32x32xf32>
    %c2_51 = arith.constant 2 : index
    %c0_52 = arith.constant 0 : index
    %c0_53 = arith.constant 0 : index
    %111 = vector.load %arg4[%c2_51, %c0_52, %c0_53] : memref<5x32x32xf32, #tpu.memory_space<vmem>>, vector<1x32x32xf32>
    %112 = vector.shape_cast %111 : vector<1x32x32xf32> to vector<32x32xf32>
    %cst_54 = arith.constant dense<0.000000e+00> : vector<32x32xf32>
    %113 = tpu.matmul %110, %112, %cst_54 {dimension_numbers = #tpu.dot_dimension_numbers<[1], [0], [0], [1], [0, 0, 1, 1], [], []>, precision = #tpu.contract_precision<fp32>} : vector<32x32xf32>, vector<32x32xf32>, vector<32x32xf32> -> vector<32x32xf32>
    %cst_55 = arith.constant dense<0.000000e+00> : vector<32x32xf32>
    %114 = tpu.matmul %34, %110, %cst_55 {dimension_numbers = #tpu.dot_dimension_numbers<[1], [0], [0], [1], [0, 0, 1, 1], [], []>, precision = #tpu.contract_precision<fp32>} : vector<32x32xf32>, vector<32x32xf32>, vector<32x32xf32> -> vector<32x32xf32>
    %c0_56 = arith.constant 0 : index
    %c0_57 = arith.constant 0 : index
    %c0_58 = arith.constant 0 : index
    %115 = vector.load %arg4[%c0_56, %c0_57, %c0_58] : memref<5x32x32xf32, #tpu.memory_space<vmem>>, vector<1x32x32xf32>
    %116 = vector.shape_cast %115 : vector<1x32x32xf32> to vector<32x32xf32>
    %cst_59 = arith.constant dense<0.000000e+00> : vector<32x32xf32>
    %117 = tpu.matmul %114, %116, %cst_59 {dimension_numbers = #tpu.dot_dimension_numbers<[1], [0], [0], [1], [0, 0, 1, 1], [], []>, precision = #tpu.contract_precision<fp32>} : vector<32x32xf32>, vector<32x32xf32>, vector<32x32xf32> -> vector<32x32xf32>
    %118 = arith.addf %113, %117 : vector<32x32xf32>
    %cst_60 = arith.constant dense<0.000000e+00> : vector<32x32xf32>
    %119 = tpu.matmul %50, %110, %cst_60 {dimension_numbers = #tpu.dot_dimension_numbers<[1], [0], [0], [1], [0, 0, 1, 1], [], []>, precision = #tpu.contract_precision<fp32>} : vector<32x32xf32>, vector<32x32xf32>, vector<32x32xf32> -> vector<32x32xf32>
    %c1_61 = arith.constant 1 : index
    %c0_62 = arith.constant 0 : index
    %c0_63 = arith.constant 0 : index
    %120 = vector.load %arg4[%c1_61, %c0_62, %c0_63] : memref<5x32x32xf32, #tpu.memory_space<vmem>>, vector<1x32x32xf32>
    %121 = vector.shape_cast %120 : vector<1x32x32xf32> to vector<32x32xf32>
    %cst_64 = arith.constant dense<0.000000e+00> : vector<32x32xf32>
    %122 = tpu.matmul %119, %121, %cst_64 {dimension_numbers = #tpu.dot_dimension_numbers<[1], [0], [0], [1], [0, 0, 1, 1], [], []>, precision = #tpu.contract_precision<fp32>} : vector<32x32xf32>, vector<32x32xf32>, vector<32x32xf32> -> vector<32x32xf32>
    %123 = arith.addf %118, %122 : vector<32x32xf32>
    %cst_65 = arith.constant dense<0.000000e+00> : vector<32x32xf32>
    %124 = tpu.matmul %66, %110, %cst_65 {dimension_numbers = #tpu.dot_dimension_numbers<[1], [0], [0], [1], [0, 0, 1, 1], [], []>, precision = #tpu.contract_precision<fp32>} : vector<32x32xf32>, vector<32x32xf32>, vector<32x32xf32> -> vector<32x32xf32>
    %c3_66 = arith.constant 3 : index
    %c0_67 = arith.constant 0 : index
    %c0_68 = arith.constant 0 : index
    %125 = vector.load %arg4[%c3_66, %c0_67, %c0_68] : memref<5x32x32xf32, #tpu.memory_space<vmem>>, vector<1x32x32xf32>
    %126 = vector.shape_cast %125 : vector<1x32x32xf32> to vector<32x32xf32>
    %cst_69 = arith.constant dense<0.000000e+00> : vector<32x32xf32>
    %127 = tpu.matmul %124, %126, %cst_69 {dimension_numbers = #tpu.dot_dimension_numbers<[1], [0], [0], [1], [0, 0, 1, 1], [], []>, precision = #tpu.contract_precision<fp32>} : vector<32x32xf32>, vector<32x32xf32>, vector<32x32xf32> -> vector<32x32xf32>
    %128 = arith.addf %123, %127 : vector<32x32xf32>
    %cst_70 = arith.constant dense<0.000000e+00> : vector<32x32xf32>
    %129 = tpu.matmul %82, %110, %cst_70 {dimension_numbers = #tpu.dot_dimension_numbers<[1], [0], [0], [1], [0, 0, 1, 1], [], []>, precision = #tpu.contract_precision<fp32>} : vector<32x32xf32>, vector<32x32xf32>, vector<32x32xf32> -> vector<32x32xf32>
    %c4_71 = arith.constant 4 : index
    %c0_72 = arith.constant 0 : index
    %c0_73 = arith.constant 0 : index
    %130 = vector.load %arg4[%c4_71, %c0_72, %c0_73] : memref<5x32x32xf32, #tpu.memory_space<vmem>>, vector<1x32x32xf32>
    %131 = vector.shape_cast %130 : vector<1x32x32xf32> to vector<32x32xf32>
    %cst_74 = arith.constant dense<0.000000e+00> : vector<32x32xf32>
    %132 = tpu.matmul %129, %131, %cst_74 {dimension_numbers = #tpu.dot_dimension_numbers<[1], [0], [0], [1], [0, 0, 1, 1], [], []>, precision = #tpu.contract_precision<fp32>} : vector<32x32xf32>, vector<32x32xf32>, vector<32x32xf32> -> vector<32x32xf32>
    %133 = arith.addf %128, %132 : vector<32x32xf32>
    %c0_75 = arith.constant 0 : index
    %c0_76 = arith.constant 0 : index
    %134 = vector.load %arg5[%c0_75, %c0_76] : memref<1x32xf32, #tpu.memory_space<vmem>>, vector<1x32xf32>
    %135 = vector.broadcast %134 : vector<1x32xf32> to vector<32x32xf32>
    %136 = arith.addf %133, %135 : vector<32x32xf32>
    %137 = arith.addf %136, %0 : vector<32x32xf32>
    %cst_77 = arith.constant dense<0.000000e+00> : vector<32xf32>
    %138 = vector.multi_reduction <add>, %137, %cst_77 [1] : vector<32x32xf32> to vector<32xf32>
    %139 = vector.shape_cast %138 : vector<32xf32> to vector<32x1xf32>
    %cst_78 = arith.constant 3.200000e+01 : f32
    %140 = vector.broadcast %cst_78 : f32 to vector<32x1xf32>
    %141 = arith.divf %139, %140 : vector<32x1xf32>
    %142 = vector.broadcast %141 : vector<32x1xf32> to vector<32x32xf32>
    %143 = arith.subf %137, %142 : vector<32x32xf32>
    %144 = arith.mulf %143, %143 : vector<32x32xf32>
    %cst_79 = arith.constant dense<0.000000e+00> : vector<32xf32>
    %145 = vector.multi_reduction <add>, %144, %cst_79 [1] : vector<32x32xf32> to vector<32xf32>
    %146 = vector.shape_cast %145 : vector<32xf32> to vector<32x1xf32>
    %cst_80 = arith.constant 3.200000e+01 : f32
    %147 = vector.broadcast %cst_80 : f32 to vector<32x1xf32>
    %148 = arith.divf %146, %147 : vector<32x1xf32>
    %149 = vector.broadcast %141 : vector<32x1xf32> to vector<32x32xf32>
    %150 = arith.subf %137, %149 : vector<32x32xf32>
    %cst_81 = arith.constant 9.99999974E-6 : f32
    %151 = vector.broadcast %cst_81 : f32 to vector<32x1xf32>
    %152 = arith.addf %148, %151 : vector<32x1xf32>
    %153 = math.rsqrt %152 : vector<32x1xf32>
    %154 = vector.broadcast %153 : vector<32x1xf32> to vector<32x32xf32>
    %155 = arith.mulf %150, %154 : vector<32x32xf32>
    %c0_82 = arith.constant 0 : index
    %c0_83 = arith.constant 0 : index
    %156 = vector.load %arg6[%c0_82, %c0_83] : memref<1x32xf32, #tpu.memory_space<vmem>>, vector<1x32xf32>
    %157 = vector.broadcast %156 : vector<1x32xf32> to vector<32x32xf32>
    %158 = arith.mulf %155, %157 : vector<32x32xf32>
    %c0_84 = arith.constant 0 : index
    %c0_85 = arith.constant 0 : index
    %159 = vector.load %arg7[%c0_84, %c0_85] : memref<1x32xf32, #tpu.memory_space<vmem>>, vector<1x32xf32>
    %160 = vector.broadcast %159 : vector<1x32xf32> to vector<32x32xf32>
    %161 = arith.addf %158, %160 : vector<32x32xf32>
    %c0_86 = arith.constant 0 : index
    %c0_87 = arith.constant 0 : index
    %162 = vector.load %arg8[%c0_86, %c0_87] : memref<32x32xf32, #tpu.memory_space<vmem>>, vector<32x32xf32>
    tpu.vector_store %arg8[%c0_86, %c0_87], %161 {strides = array<i32>} : memref<32x32xf32, #tpu.memory_space<vmem>>, vector<32x32xf32>,
    return
  }
  func.func @transform_0(%arg0: i32) -> (i32, i32) {
    %c0_i32 = arith.constant 0 : i32
    %c0_i32_0 = arith.constant 0 : i32
    %c0_i32_1 = arith.constant 0 : i32
    return %c0_i32, %c0_i32_0 : i32, i32
  }
  func.func @transform_1(%arg0: i32) -> (i32, i32, i32) {
    %c0_i32 = arith.constant 0 : i32
    %c0_i32_0 = arith.constant 0 : i32
    %c0_i32_1 = arith.constant 0 : i32
    %c0_i32_2 = arith.constant 0 : i32
    return %c0_i32, %c0_i32_0, %c0_i32_1 : i32, i32, i32
  }
  func.func @transform_2(%arg0: i32) -> (i32, i32) {
    %c0_i32 = arith.constant 0 : i32
    %c0_i32_0 = arith.constant 0 : i32
    %c0_i32_1 = arith.constant 0 : i32
    return %c0_i32, %c0_i32_0 : i32, i32
  }
  func.func @transform_3(%arg0: i32) -> (i32, i32, i32) {
    %c0_i32 = arith.constant 0 : i32
    %c0_i32_0 = arith.constant 0 : i32
    %c0_i32_1 = arith.constant 0 : i32
    %c0_i32_2 = arith.constant 0 : i32
    return %c0_i32, %c0_i32_0, %c0_i32_1 : i32, i32, i32
  }
  func.func @transform_4(%arg0: i32) -> (i32, i32) {
    %c0_i32 = arith.constant 0 : i32
    %c0_i32_0 = arith.constant 0 : i32
    %c0_i32_1 = arith.constant 0 : i32
    return %c0_i32, %c0_i32_0 : i32, i32
  }
  func.func @transform_5(%arg0: i32) -> (i32, i32) {
    %c0_i32 = arith.constant 0 : i32
    %c0_i32_0 = arith.constant 0 : i32
    %c0_i32_1 = arith.constant 0 : i32
    return %c0_i32, %c0_i32_0 : i32, i32
  }
  func.func @transform_6(%arg0: i32) -> (i32, i32) {
    %c0_i32 = arith.constant 0 : i32
    %c0_i32_0 = arith.constant 0 : i32
    %c0_i32_1 = arith.constant 0 : i32
    return %c0_i32, %c0_i32_0 : i32, i32
  }
  func.func @transform_7(%arg0: i32) -> (i32, i32) {
    %c0_i32 = arith.constant 0 : i32
    %c0_i32_0 = arith.constant 0 : i32
    %c0_i32_1 = arith.constant 0 : i32
    return %c0_i32, %c0_i32_0 : i32, i32
  }
}

</mosaic_0001>

<bundles_post_ra>
// kernel: decoder_block.1
= control target key start
LH: loop header
LB: loop body
LE: loop exit
PB: predicated region body
PF: predicated region fallthrough
CT: control target
= control target key end

     0   :  { %12 = vsyncpa [#allocation3], 0  ;;  %s16840_s0 = inlined_call_operand.hbm [shape: f32[32,32], index: 0, kind: input, shape index: {}]   ;;  %s16841_s1 = inlined_call_operand.hbm [shape: f32[5,32,32], index: 1, kind: input, shape index: {}]   ;;  %s16842_s2 = inlined_call_operand.vmem [shape: f32[1,32], index: 2, kind: input, shape index: {}]   ;;  %s16843_s3 = inlined_call_operand.hbm [shape: f32[5,32,32], index: 3, kind: input, shape index: {}]   ;;  %s16844_s4 = inlined_call_operand.vmem [shape: f32[1,32], index: 4, kind: input, shape index: {}]   ;;  %s16845_s5 = inlined_call_operand.vmem [shape: f32[1,32], index: 5, kind: input, shape index: {}]   ;;  %s16846_s6 = inlined_call_operand.vmem [shape: f32[1,32], index: 6, kind: input, shape index: {}]   ;;  %s16847_s7 = inlined_call_operand.hbm [shape: f32[32,32], index: 7, kind: output, shape index: {}]  }
   0x1   :  { %13 = vsyncpa [#allocation6], 0 }
   0x2   :  { %14 = vsyncpa [#allocation4], 0  ;;  %s14256_s24 = smov [#allocation5]   ;;  %s14257_s26 = smov [#allocation2]  }
   0x3   :  { %s32_s25 = sshll.u32 %s14256_s24, 4  ;;  %s20_s27 = sshll.u32 %s14257_s26, 4  ;;  %s33_s25 = int_to_ptr.vmem [resolvable:$true] %s32_s25  ;;  %s21_s27 = int_to_ptr.vmem [resolvable:$true] %s20_s27 }
   0x4   :  { %s14178_s28 = scalar_lea.vmem %s33_s25, 2560  ;;  %p14183_p1 = scmp.lt.s32.totalorder %s33_s25, %s33_s25 }
   0x5   :  { %p14179_p0 = scmp.ne.s32.totalorder %s33_s25, %s14178_s28  ;;  %p14184_p2 = scmp.lt.s32.totalorder %s14178_s28, %s14178_s28 }
   0x7   :  { %p14185_p3 = por %p14184_p2, %p14183_p1 }
   0x9   :  { %p14186_p4 = pnand %p14185_p3, %p14179_p0 }
   0xb   :  { %14189 = shalt.err (!%p14186_p4)
}
   0xc   :  { %s14258_s29 = smov 128   ;;  %s14259_s30 = smov 8  }
   0xd   :  { %38 = dma.hbm_to_vmem [thread:$0]  %s16841_s1, 2560, %s33_s25, [#allocation6], %s14258_s29, %s14258_s29, %s14259_s30  }
   0xe   :  { %s14198_s10 = scalar_lea.vmem %s21_s27, 512  ;;  %p14203_p6 = scmp.lt.s32.totalorder %s21_s27, %s21_s27 }
   0xf   :  { %p14199_p5 = scmp.ne.s32.totalorder %s21_s27, %s14198_s10  ;;  %p14204_p7 = scmp.lt.s32.totalorder %s14198_s10, %s14198_s10 }
  0x11   :  { %p14205_p8 = por %p14204_p7, %p14203_p6 }
  0x13   :  { %p14206_p9 = pnand %p14205_p8, %p14199_p5 }
  0x15   :  { %14209 = shalt.err (!%p14206_p9)
}
  0x16   :  { %26 = dma.hbm_to_vmem [thread:$0]  %s16840_s0, 512, %s21_s27, [#allocation3], %s14258_s29, %s14258_s29, %s14259_s30  }
  0x17   :  { %s14260_s13 = smov [#allocation7]  }
  0x18   :  { %s46_s14 = sshll.u32 %s14260_s13, 4  ;;  %s47_s14 = int_to_ptr.vmem [resolvable:$true] %s46_s14 }
  0x19   :  { %s14218_s15 = scalar_lea.vmem %s47_s14, 2560  ;;  %p14223_p11 = scmp.lt.s32.totalorder %s47_s14, %s47_s14 }
  0x1a   :  { %p14219_p10 = scmp.ne.s32.totalorder %s47_s14, %s14218_s15  ;;  %p14224_p12 = scmp.lt.s32.totalorder %s14218_s15, %s14218_s15 }
  0x1c   :  { %p14225_p13 = por %p14224_p12, %p14223_p11 }
  0x1e   :  { %p14226_p0 = pnand %p14225_p13, %p14219_p10 }
  0x20   :  { %14229 = shalt.err (!%p14226_p0)
}
  0x21   :  { %52 = dma.hbm_to_vmem [thread:$0]  %s16843_s3, 2560, %s47_s14, [#allocation6], %s14258_s29, %s14258_s29, %s14259_s30  }
  0x22   :  { %14250 = dma.done.wait [#allocation3], 512  }
  0x23   :  { %14251 = vsyncadd [#allocation3], 4294966784 }
  0x24   :  { %14252 = dma.done.wait [#allocation6], 5120  }
  0x25   :  { %14253 = vsyncadd [#allocation6], 4294962176  ;;  %v72_v0 = vlaneseq  ;;  %v14341_v11 = vld [vmem:[#allocation2 + $0x18] sm:$0xff]  ;;  %v14343_v12 = vld [vmem:[#allocation2 + $0x10] sm:$0xff]  ;;  %vm260_vm1 = vcmask 261120   ;;  %v16848_v23 = vmov 0.0  }
  0x26   :  { %v14345_v13 = vld [vmem:[#allocation2 + $0x8] sm:$0xff]  ;;  %v14350_v16 = vand.u32 4294901760, %v14341_v11  ;;  %v14353_v17 = vand.u32 4294901760, %v14343_v12  ;;  %v14358_v19 = vld [vmem:[#allocation2] sm:$0xff]  ;;  %v890_v63 = vld [vmem:[#allocation5 + $0x18] sm:$0xff] }
  0x27   :  { %v14321_v1 = vshrl.u32 %v72_v0, 7  ;;  %v14323_v2 = vand.u32 127, %v72_v0  ;;  %v14356_v18 = vand.u32 4294901760, %v14345_v13  ;;  %v14361_v20 = vand.u32 4294901760, %v14358_v19 }
  0x28   :  { %12639 = vmatprep.subr.mxu0 %v14350_v16  ;;  %v14372_v22 = vsub.f32 %v14341_v11, %v14350_v16  ;;  %v14379_v25 = vsub.f32 %v14343_v12, %v14353_v17  ;;  %v14556_v0 = vand.u32 4294901760, %v890_v63 }
  0x29   :  { %v16851_v3 = vand.u32 15, %v14321_v1  ;;  %v127_v4 = vadd.s32 4294967294, %v14321_v1  ;;  %v14328_v5 = vadd.s32 8, %v14321_v1  ;;  %v14331_v6 = vadd.s32 16, %v14321_v1  ;;  %12640 = vmatpush3.msra.mxu0 %v14350_v16 }
  0x2a   :  { %v14334_v7 = vadd.s32 24, %v14321_v1  ;;  %v14391_v29 = vsub.f32 %v14345_v13, %v14356_v18  ;;  %12641 = vmatprep.subr.mxu0 %v14353_v17  ;;  %v14397_v30 = vand.u32 4294901760, %v14372_v22  ;;  %v14402_v32 = vand.u32 4294901760, %v14379_v25 }
  0x2b   :  { %vm131_vm0 = vcmp.eq.s32.totalorder %v14323_v2, %v127_v4  ;;  %v135_v8 = vadd.s32 4294967294, %v16851_v3  ;;  %v128_v9 = vadd.s32 4294967294, %v14328_v5  ;;  %v16850_v10 = vand.u32 15, %v14331_v6  ;;  %12642 = vmatpush3.msra.mxu0 %v14353_v17  ;;  %v889_v4 = vld [vmem:[#allocation5 + $0x10] sm:$0xff] }
  0x2c   :  { %v129_v14 = vadd.s32 4294967294, %v14331_v6  ;;  %v130_v15 = vadd.s32 4294967294, %v14334_v7  ;;  %16948 = vst [vmem:[#allocation14_spill] sm:$0xff] %v14397_v30  ;;  %16950 = vst [vmem:[#allocation16_spill] sm:$0xff] %v14402_v32  ;;  %v14410_v34 = vand.u32 4294901760, %v14391_v29  ;;  %v14417_v36 = vsub.f32 %v14358_v19, %v14361_v20  ;;  %12643 = vmatprep.subr.mxu0 %v14356_v18 }
  0x2d   :  { %vm139_vm2 = vcmp.ge.s32.totalorder %v135_v8, 0  ;;  %vm132_vm4 = vcmp.eq.s32.totalorder %v14323_v2, %v128_v9  ;;  %v137_v21 = vadd.s32 4294967294, %v16850_v10  ;;  %v410_v37 = vsub.f32 %v14372_v22, %v14397_v30  ;;  %12644 = vmatpush3.msra.mxu0 %v14356_v18 }
  0x2e   :  { %vm151_vm3 = vmand %vm131_vm0, %vm139_vm2  ;;  %vm133_vm5 = vcmp.eq.s32.totalorder %v14323_v2, %v129_v14  ;;  %v14382_v26 = vsel %vm132_vm4, 1.0, %v16848_v23  ;;  %16952 = vst [vmem:[#allocation18_spill] sm:$0xff] %v14410_v34  ;;  %vm134_vm8 = vcmp.eq.s32.totalorder %v14323_v2, %v130_v15  ;;  %v417_v39 = vsub.f32 %v14379_v25, %v14402_v32  ;;  %12645 = vmatprep.subr.mxu0 %v14361_v20  ;;  %v888_v14 = vld [vmem:[#allocation5 + $0x8] sm:$0xff] }
  0x2f   :  { %v14375_v24 = vsel %vm151_vm3, 1.0, %v16848_v23  ;;  %16947 = vst [vmem:[#allocation13_spill] sm:$0xff] %v14382_v26  ;;  %v265_v28 = vsel %vm260_vm1, %v14382_v26, 0  ;;  %vm141_vm6 = vcmp.ge.s32.totalorder %v137_v21, 0  ;;  %16954 = vst [vmem:[#allocation20_spill] sm:$0xff] %v14417_v36  ;;  %v424_v41 = vsub.f32 %v14391_v29, %v14410_v34  ;;  %12646 = vmatpush3.msra.mxu0 %v14361_v20 }
  0x30   :  { %16946 = vst [vmem:[#allocation12_spill] sm:$0xff] %v14375_v24  ;;  %v262_v27 = vsel %vm260_vm1, %v14375_v24, 0  ;;  %12661 = vmatprep.mubr.msk.f32.mxu1 %vm260_vm1, %v14375_v24  ;;  %v14404_v33 = vsub.f32 %v265_v28, %v265_v28  ;;  %vm153_vm7 = vmand %vm133_vm5, %vm141_vm6  ;;  %v14437_v43 = vand.u32 4294901760, %v14417_v36  ;;  %v14440_v44 = vsel %vm134_vm8, 1.0, %v16848_v23  ;;  %12667 = vmatprep.subr.mxu0 %v14372_v22  ;;  %v887_v28 = vld [vmem:[#allocation5] sm:$0xff] }
  0x31   :  { %v14399_v31 = vsub.f32 %v262_v27, %v262_v27  ;;  %v14413_v35 = vsel %vm153_vm7, 1.0, %v16848_v23  ;;  %16958 = vst [vmem:[#allocation24_spill] sm:$0xff] %v14440_v44  ;;  %v14442_v45 = vand.u32 4294901760, %v410_v37  ;;  %v14447_v47 = vand.u32 4294901760, %v417_v39 }
  0x32   :  { %16951 = vst [vmem:[#allocation17_spill] sm:$0xff] %v14404_v33  ;;  %16953 = vst [vmem:[#allocation19_spill] sm:$0xff] %v14413_v35  ;;  %v14429_v40 = vand.u32 4294901760, %v14404_v33  ;;  %v268_v42 = vsel %vm260_vm1, %v14413_v35, 0  ;;  %v431_v50 = vsub.f32 %v14417_v36, %v14437_v43  ;;  %v271_v51 = vsel %vm260_vm1, %v14440_v44, 0 }
  0x33   :  { %16949 = vst [vmem:[#allocation15_spill] sm:$0xff] %v14399_v31  ;;  %v14424_v38 = vand.u32 4294901760, %v14399_v31  ;;  %16957 = vst [vmem:[#allocation23_spill] sm:$0xff] %v14437_v43  ;;  %v14452_v49 = vsub.f32 %v268_v42, %v268_v42  ;;  %12653 = vmatprep.subr.mxu1 %v14442_v45  ;;  %v14464_v54 = vand.u32 4294901760, %v424_v41  ;;  %v14466_v55 = vsub.f32 %v271_v51, %v271_v51 }
  0x34   :  { %16956 = vst [vmem:[#allocation22_spill] sm:$0xff] %v14429_v40  ;;  %v355_v48 = vsub.f32 %v14404_v33, %v14429_v40  ;;  %12654 = vmatpush3.msra.mxu1 %v14442_v45  ;;  %v14474_v57 = vand.u32 4294901760, %v431_v50  ;;  %v14559_v8 = vsub.f32 %v890_v63, %v14556_v0  ;;  %v14561_v9 = vand.u32 4294901760, %v889_v4 }
  0x35   :  { %16955 = vst [vmem:[#allocation21_spill] sm:$0xff] %v14424_v38  ;;  %v345_v46 = vsub.f32 %v14399_v31, %v14424_v38  ;;  %16959 = vst [vmem:[#allocation25_spill] sm:$0xff] %v14452_v49  ;;  %v14470_v56 = vand.u32 4294901760, %v14452_v49  ;;  %12655 = vmatprep.subr.mxu1 %v14447_v47  ;;  %v14477_v58 = vand.u32 4294901760, %v14466_v55  ;;  %v14571_v27 = vand.u32 4294901760, %v888_v14 }
  0x36   :  { %v14461_v53 = vand.u32 4294901760, %v355_v48  ;;  %16962 = vst [vmem:[#allocation28_spill] sm:$0xff] %v14466_v55  ;;  %12656 = vmatpush3.msra.mxu1 %v14447_v47  ;;  %v14566_v15 = vand.u32 4294901760, %v14559_v8  ;;  %v14569_v21 = vsub.f32 %v889_v4, %v14561_v9  ;;  %v14583_v42 = vand.u32 4294901760, %v887_v28 }
  0x37   :  { %v14459_v52 = vand.u32 4294901760, %v345_v46  ;;  %16963 = vst [vmem:[#allocation29_spill] sm:$0xff] %v14470_v56  ;;  %16964 = vst [vmem:[#allocation30_spill] sm:$0xff] %v14477_v58  ;;  %v365_v59 = vsub.f32 %v14452_v49, %v14470_v56  ;;  %12657 = vmatprep.subr.mxu1 %v14464_v54  ;;  %v375_v60 = vsub.f32 %v14466_v55, %v14477_v58 }
  0x38   :  { %16961 = vst [vmem:[#allocation27_spill] sm:$0xff] %v14461_v53  ;;  %12658 = vmatpush3.msra.mxu1 %v14464_v54  ;;  %v1040_v37 = vsub.f32 %v14559_v8, %v14566_v15  ;;  %v14578_v39 = vand.u32 4294901760, %v14569_v21  ;;  %v14581_v41 = vsub.f32 %v888_v14, %v14571_v27  ;;  %v14593_v51 = vsub.f32 %v887_v28, %v14583_v42 }
  0x39   :  { %16960 = vst [vmem:[#allocation26_spill] sm:$0xff] %v14459_v52  ;;  %12647 = vmatprep.mubr.f32.mxu0 %v14459_v52  ;;  %v14489_v61 = vand.u32 4294901760, %v365_v59  ;;  %12659 = vmatprep.subr.mxu1 %v14474_v57  ;;  %v14493_v62 = vand.u32 4294901760, %v375_v60 }
  0x3a   :  { %12648 = vmatmul.mubr.f32.vlgmr.msra.gmra.mxu0 %v14461_v53  ;;  %12660 = vmatpush3.msra.mxu1 %v14474_v57  ;;  %v1041_v46 = vand.u32 4294901760, %v1040_v37  ;;  %v1047_v48 = vsub.f32 %v14569_v21, %v14578_v39  ;;  %v14590_v50 = vand.u32 4294901760, %v14581_v41  ;;  %v14600_v63 = vand.u32 4294901760, %v14593_v51 }
  0x3b   :  { %12668 = vmatpush3.msra.mxu0 %v14372_v22  ;;  %16965 = vst [vmem:[#allocation31_spill] sm:$0xff] %v14489_v61  ;;  %16966 = vst [vmem:[#allocation32_spill] sm:$0xff] %v14493_v62  ;;  %12650 = vmatprep.mubr.f32.mxu0 %v14489_v61 }
  0x3c   :  { %12669 = vmatprep.subr.mxu0 %v14379_v25  ;;  %12662 = vmatmul.mubr.msk.f32.vlgmr.msra.gmra.mxu1 %vm260_vm1, %v14382_v26  ;;  %v1048_v59 = vand.u32 4294901760, %v1047_v48  ;;  %v1054_v60 = vsub.f32 %v14581_v41, %v14590_v50  ;;  %v1061_v14 = vsub.f32 %v14593_v51, %v14600_v63 }
  0x3d   :  { %12670 = vmatpush3.msra.mxu0 %v14379_v25  ;;  %12681 = vmatprep.subr.mxu1 %v14350_v16 }
  0x3e   :  { %12651 = vmatmul.mubr.f32.gmra.mxu0 %v14493_v62  ;;  %12671 = vmatprep.subr.mxu0 %v14391_v29  ;;  %v1055_v4 = vand.u32 4294901760, %v1054_v60  ;;  %v1062_v28 = vand.u32 4294901760, %v1061_v14 }
  0x3f   :  { %12672 = vmatpush3.msra.mxu0 %v14391_v29  ;;  %12682 = vmatpush3.msra.mxu1 %v14350_v16 }
  0x40   :  { %12673 = vmatprep.subr.mxu0 %v14417_v36  ;;  %12675 = vmatprep.mubr.f32.mxu0 %v14399_v31 }
  0x41   :  { %12674 = vmatpush3.msra.mxu0 %v14417_v36  ;;  %12683 = vmatprep.subr.mxu1 %v14353_v17 }
  0x42   :  { %12664 = vmatprep.mubr.msk.f32.mxu1 %vm260_vm1, %v14413_v35  ;;  %12676 = vmatmul.mubr.f32.vlgmr.msra.gmra.mxu0 %v14404_v33 }
  0x43   :  { %12684 = vmatpush3.msra.mxu1 %v14353_v17  ;;  %12695 = vmatprep.subr.mxu0 %v14397_v30 }
  0x44   :  { %12665 = vmatmul.mubr.msk.f32.gmra.mxu1 %vm260_vm1, %v14440_v44  ;;  %12685 = vmatprep.subr.mxu1 %v14356_v18 }
  0x45   :  { %12696 = vmatpush3.msra.mxu0 %v14397_v30  ;;  %12686 = vmatpush3.msra.mxu1 %v14356_v18 }
  0x46   :  { %12697 = vmatprep.subr.mxu0 %v14402_v32  ;;  %12678 = vmatprep.mubr.f32.mxu0 %v14452_v49 }
  0x47   :  { %12687 = vmatprep.subr.mxu1 %v14361_v20  ;;  %12698 = vmatpush3.msra.mxu0 %v14402_v32 }
  0x48   :  { %12679 = vmatmul.mubr.f32.gmra.mxu0 %v14466_v55  ;;  %12688 = vmatpush3.msra.mxu1 %v14361_v20 }
  0x49   :  { %12689 = vmatprep.mubr.f32.mxu1 %v14424_v38  ;;  %12699 = vmatprep.subr.mxu0 %v14410_v34 }
  0x4a   :  { %12690 = vmatmul.mubr.f32.vlgmr.msra.gmra.mxu1 %v14429_v40  ;;  %12700 = vmatpush3.msra.mxu0 %v14410_v34 }
  0x4b   :  { %12709 = vmatprep.subr.mxu1 %v14350_v16  ;;  %12701 = vmatprep.subr.mxu0 %v14437_v43 }
  0x4c   :  { %12710 = vmatpush3.msra.mxu1 %v14350_v16  ;;  %12702 = vmatpush3.msra.mxu0 %v14437_v43 }
  0x4d   :  { %12703 = vmatprep.mubr.msk.f32.mxu0 %vm260_vm1, %v14375_v24  ;;  %12711 = vmatprep.subr.mxu1 %v14353_v17 }
  0x4e   :  { %12692 = vmatprep.mubr.f32.mxu1 %v14470_v56  ;;  %12704 = vmatmul.mubr.msk.f32.vlgmr.msra.gmra.mxu0 %vm260_vm1, %v14382_v26 }
  0x4f   :  { %12712 = vmatpush3.msra.mxu1 %v14353_v17  ;;  %12706 = vmatprep.mubr.msk.f32.mxu0 %vm260_vm1, %v14413_v35 }
  0x50   :  { %12693 = vmatmul.mubr.f32.gmra.mxu1 %v14477_v58  ;;  %12713 = vmatprep.subr.mxu1 %v14356_v18 }
  0x51   :  { %12714 = vmatpush3.msra.mxu1 %v14356_v18  ;;  %12717 = vmatprep.mubr.msk.f32.mxu1 %vm260_vm1, %v14375_v24 }
  0x52   :  { %12715 = vmatprep.subr.mxu1 %v14361_v20  ;;  %12707 = vmatmul.mubr.msk.f32.gmra.mxu0 %vm260_vm1, %v14440_v44 }
  0x53   :  { %12716 = vmatpush3.msra.mxu1 %v14361_v20  ;;  %12723 = vmatprep.subr.mxu0 %v14556_v0 }
  0x54   :  { %12718 = vmatmul.mubr.msk.f32.vlgmr.msra.gmra.mxu1 %vm260_vm1, %v14382_v26  ;;  %12724 = vmatpush3.msra.mxu0 %v14556_v0 }
  0x55   :  { %12720 = vmatprep.mubr.msk.f32.mxu1 %vm260_vm1, %v14413_v35  ;;  %12725 = vmatprep.subr.mxu0 %v14561_v9 }
  0x56   :  { %12726 = vmatpush3.msra.mxu0 %v14561_v9  ;;  %12737 = vmatprep.subr.mxu1 %v1041_v46 }
  0x57   :  { %12727 = vmatprep.subr.mxu0 %v14571_v27  ;;  %12738 = vmatpush3.msra.mxu1 %v1041_v46 }
  0x58   :  { %12721 = vmatmul.mubr.msk.f32.gmra.mxu1 %vm260_vm1, %v14440_v44  ;;  %12728 = vmatpush3.msra.mxu0 %v14571_v27 }
  0x59   :  { %12729 = vmatprep.subr.mxu0 %v14583_v42  ;;  %12739 = vmatprep.subr.mxu1 %v1048_v59 }
  0x5a   :  { %12730 = vmatpush3.msra.mxu0 %v14583_v42  ;;  %12740 = vmatpush3.msra.mxu1 %v1048_v59 }
  0x5b   :  { %12751 = vmatprep.subr.mxu0 %v14559_v8  ;;  %12741 = vmatprep.subr.mxu1 %v1055_v4 }
  0x5c   :  { %12742 = vmatpush3.msra.mxu1 %v1055_v4 }
  0x5d   :  { %12743 = vmatprep.subr.mxu1 %v1062_v28 }
  0x5e   :  { %12744 = vmatpush3.msra.mxu1 %v1062_v28 }
  0x5f   :  { %12765 = vmatprep.subr.mxu1 %v14556_v0 }
  0xfa   :  { %v12649_v37 = vpop.f32.mrf.mxu0 }
  0xfc   :  { %v348_v48 = vpop.f32.mrf.mxu0  ;;  %v12663_v10 = vpop.f32.mrf.mxu1 }
  0xfd   :  { %v476_v55 = vadd.f32 %v12663_v10, %v12649_v37 }
  0xfe   :  { %v12652_v23 = vpop.f32.mrf.mxu0  ;;  %v469_v58 = vpop.f32.mrf.mxu1 }
  0xff   :  { %v470_v14 = vadd.f32 %v469_v58, %v348_v48 }
 0x100   :  { %v368_v3 = vpop.f32.mrf.mxu0 }
 0x102   :  { %v12677_v46 = vpop.f32.mrf.mxu0 }
 0x103   :  { %v575_v44 = vadd.f32 %v12677_v46, %v476_v55 }
 0x104   :  { %v12666_v56 = vpop.f32.mrf.mxu1  ;;  %v567_v60 = vpop.f32.mrf.mxu0 }
 0x105   :  { %v488_v28 = vadd.f32 %v12666_v56, %v12652_v23  ;;  %v568_v33 = vadd.f32 %v567_v60, %v470_v14 }
 0x106   :  { %v481_v40 = vpop.f32.mrf.mxu1 }
 0x107   :  { %v482_v31 = vadd.f32 %v481_v40, %v368_v3 }
 0x108   :  { %v12680_v38 = vpop.f32.mrf.mxu0 }
 0x109   :  { %v589_v53 = vadd.f32 %v12680_v38, %v488_v28 }
 0x10a   :  { %v12691_v59 = vpop.f32.mrf.mxu1  ;;  %v581_v49 = vpop.f32.mrf.mxu0 }
 0x10b   :  { %v674_v26 = vadd.f32 %v12691_v59, %v575_v44  ;;  %v582_v34 = vadd.f32 %v581_v49, %v482_v31  ;;  %v259_v49 = vld [vmem:[#allocation5 + $0x58] sm:$0xff] }
 0x10c   :  { %v665_v4 = vpop.f32.mrf.mxu1 }
 0x10d   :  { %v666_v52 = vadd.f32 %v665_v4, %v568_v33  ;;  %v14637_v4 = vand.u32 4294901760, %v259_v49 }
 0x10e   :  { %v12705_v35 = vpop.f32.mrf.mxu0 }
 0x10f   :  { %v779_v32 = vadd.f32 %v12705_v35, %v674_v26 }
 0x110   :  { %v12694_v62 = vpop.f32.mrf.mxu1  ;;  %v772_v61 = vpop.f32.mrf.mxu0 }
 0x111   :  { %v690_v30 = vadd.f32 %v12694_v62, %v589_v53  ;;  %v773_v37 = vadd.f32 %v772_v61, %v666_v52 }
 0x112   :  { %v681_v24 = vpop.f32.mrf.mxu1  ;;  %v12708_v43 = vpop.f32.mrf.mxu0 }
 0x113   :  { %v682_v36 = vadd.f32 %v681_v24, %v582_v34  ;;  %v791_v23 = vadd.f32 %v12708_v43, %v690_v30 }
 0x114   :  { %v12719_v10 = vpop.f32.mrf.mxu1  ;;  %v784_v48 = vpop.f32.mrf.mxu0 }
 0x115   :  { %v872_v58 = vadd.f32 %v12719_v10, %v779_v32  ;;  %v785_v38 = vadd.f32 %v784_v48, %v682_v36 }
 0x116   :  { %v865_v55 = vpop.f32.mrf.mxu1 }
 0x117   :  { %v895_v56 = vsel %vm260_vm1, %v872_v58, 0  ;;  %v866_v3 = vadd.f32 %v865_v55, %v773_v37  ;;  %v14648_v55 = vsub.f32 %v259_v49, %v14637_v4 }
 0x118   :  { %v14607_v40 = vand.u32 4294901760, %v895_v56  ;;  %v12722_v44 = vpop.f32.mrf.mxu1 }
 0x119   :  { %v892_v33 = vsel %vm260_vm1, %v866_v3, 0  ;;  %v884_v46 = vadd.f32 %v12722_v44, %v791_v23  ;;  %v258_v23 = vld [vmem:[#allocation5 + $0x50] sm:$0xff]  ;;  %v257_v44 = vld [vmem:[#allocation5 + $0x48] sm:$0xff] }
 0x11a   :  { %v14611_v26 = vsub.f32 %v895_v56, %v14607_v40  ;;  %v14613_v31 = vand.u32 4294901760, %v892_v33  ;;  %v877_v24 = vpop.f32.mrf.mxu1  ;;  %v14653_v3 = vand.u32 4294901760, %v258_v23 }
 0x11b   :  { %v901_v32 = vsel %vm260_vm1, %v884_v46, 0  ;;  %v878_v34 = vadd.f32 %v877_v24, %v785_v38  ;;  %v256_v46 = vld [vmem:[#allocation5 + $0x40] sm:$0xff] }
 0x11c   :  { %v984_v30 = vand.u32 4294901760, %v14611_v26  ;;  %v973_v35 = vsub.f32 %v892_v33, %v14613_v31  ;;  %v14618_v43 = vand.u32 4294901760, %v901_v32  ;;  %12745 = vmatprep.mubr.f32.mxu1 %v14613_v31  ;;  %v14658_v33 = vand.u32 4294901760, %v14648_v55 }
 0x11d   :  { %v898_v36 = vsel %vm260_vm1, %v878_v34, 0  ;;  %12746 = vmatmul.mubr.f32.vlgmr.msra.gmra.mxu1 %v14607_v40  ;;  %v14668_v24 = vsub.f32 %v258_v23, %v14653_v3 }
 0x11e   :  { %v14624_v52 = vsub.f32 %v901_v32, %v14618_v43  ;;  %v14626_v53 = vand.u32 4294901760, %v898_v36  ;;  %12766 = vmatpush3.msra.mxu1 %v14556_v0  ;;  %v974_v61 = vand.u32 4294901760, %v973_v35  ;;  %v985_v62 = vsub.f32 %v14611_v26, %v984_v30 }
 0x11f   :  { %12767 = vmatprep.subr.mxu1 %v14561_v9  ;;  %v1521_v32 = vsel %vm260_vm1, %v14345_v13, 0 }
 0x120   :  { %v14632_v60 = vsub.f32 %v898_v36, %v14626_v53  ;;  %12748 = vmatprep.mubr.f32.mxu1 %v14626_v53  ;;  %12768 = vmatpush3.msra.mxu1 %v14561_v9  ;;  %v975_v59 = vsub.f32 %v973_v35, %v974_v61  ;;  %v1004_v14 = vand.u32 4294901760, %v14624_v52  ;;  %v986_v37 = vand.u32 4294901760, %v985_v62 }
 0x121   :  { %12749 = vmatmul.mubr.f32.gmra.mxu1 %v14618_v43  ;;  %12769 = vmatprep.subr.mxu1 %v14571_v27  ;;  %v14686_v34 = vand.u32 4294901760, %v1521_v32  ;;  %v1527_v36 = vsel %vm260_vm1, %v14341_v11, 0 }
 0x122   :  { %12770 = vmatpush3.msra.mxu1 %v14571_v27  ;;  %12773 = vmatprep.mubr.f32.mxu1 %v974_v61  ;;  %v976_v28 = vand.u32 4294901760, %v975_v59  ;;  %v994_v10 = vand.u32 4294901760, %v14632_v60  ;;  %v1005_v48 = vsub.f32 %v14624_v52, %v1004_v14 }
 0x123   :  { %12771 = vmatprep.subr.mxu1 %v14583_v42 }
 0x124   :  { %12731 = vmatprep.mubr.f32.mxu0 %v976_v28  ;;  %12772 = vmatpush3.msra.mxu1 %v14583_v42  ;;  %v995_v58 = vsub.f32 %v14632_v60, %v994_v10  ;;  %v1006_v38 = vand.u32 4294901760, %v1005_v48 }
 0x125   :  { %12732 = vmatmul.mubr.f32.vlgmr.msra.gmra.mxu0 %v986_v37  ;;  %12774 = vmatmul.mubr.f32.vlgmr.msra.gmra.mxu1 %v984_v30 }
 0x126   :  { %12793 = vmatprep.subr.mxu1 %v14556_v0  ;;  %12752 = vmatpush3.msra.mxu0 %v14559_v8  ;;  %v996_v56 = vand.u32 4294901760, %v995_v58  ;;  %v14662_v8 = vand.u32 4294901760, %v257_v44 }
 0x127   :  { %12776 = vmatprep.mubr.f32.mxu1 %v994_v10  ;;  %12794 = vmatpush3.msra.mxu1 %v14556_v0  ;;  %v1518_v0 = vsel %vm260_vm1, %v14358_v19, 0 }
 0x128   :  { %12753 = vmatprep.subr.mxu0 %v14569_v21  ;;  %12795 = vmatprep.subr.mxu1 %v14561_v9  ;;  %v14679_v19 = vand.u32 4294901760, %v1518_v0  ;;  %v14684_v13 = vsub.f32 %v257_v44, %v14662_v8  ;;  %v16967_v44 = vand.u32 15, %v14321_v1 }
 0x129   :  { %12734 = vmatprep.mubr.f32.mxu0 %v996_v56  ;;  %12754 = vmatpush3.msra.mxu0 %v14569_v21  ;;  %v14676_v21 = vand.u32 4294901760, %v256_v46  ;;  %v159_v56 = vadd.s32 4294967295, %v14321_v1 }
 0x12a   :  { %12796 = vmatpush3.msra.mxu1 %v14561_v9  ;;  %12735 = vmatmul.mubr.f32.gmra.mxu0 %v1006_v38  ;;  %v1666_v9 = vsub.f32 %v14648_v55, %v14658_v33  ;;  %v167_v38 = vadd.s32 4294967295, %v16967_v44 }
 0x12b   :  { %12755 = vmatprep.subr.mxu0 %v14581_v41  ;;  %12777 = vmatmul.mubr.f32.gmra.mxu1 %v1004_v14  ;;  %vm163_vm9 = vcmp.eq.s32.totalorder %v14323_v2, %v159_v56 }
 0x12c   :  { %12797 = vmatprep.subr.mxu1 %v14571_v27  ;;  %12756 = vmatpush3.msra.mxu0 %v14581_v41  ;;  %v14691_v41 = vand.u32 4294901760, %v14668_v24  ;;  %v1667_v30 = vand.u32 4294901760, %v1666_v9  ;;  %vm171_vm10 = vcmp.ge.s32.totalorder %v167_v38, 0 }
 0x12d   :  { %12759 = vmatprep.mubr.f32.mxu0 %v973_v35  ;;  %12798 = vmatpush3.msra.mxu1 %v14571_v27  ;;  %v1524_v27 = vsel %vm260_vm1, %v14343_v12, 0  ;;  %v14698_v35 = vsub.f32 %v256_v46, %v14676_v21  ;;  %v14710_v12 = vand.u32 4294901760, %v14684_v13  ;;  %v161_v46 = vadd.s32 4294967295, %v14331_v6  ;;  %vm183_vm11 = vmand %vm163_vm9, %vm171_vm10 }
 0x12e   :  { %12801 = vmatprep.mubr.f32.mxu1 %v14613_v31  ;;  %12757 = vmatprep.subr.mxu0 %v14593_v51  ;;  %v1673_v49 = vsub.f32 %v14668_v24, %v14691_v41 }
 0x12f   :  { %12799 = vmatprep.subr.mxu1 %v14583_v42  ;;  %12758 = vmatpush3.msra.mxu0 %v14593_v51  ;;  %v14703_v51 = vsub.f32 %v1518_v0, %v14679_v19  ;;  %v14723_v11 = vand.u32 4294901760, %v14698_v35  ;;  %v1680_v62 = vsub.f32 %v14684_v13, %v14710_v12  ;;  %v16968_v0 = vand.u32 15, %v14331_v6 }
 0x130   :  { %12800 = vmatpush3.msra.mxu1 %v14583_v42  ;;  %12760 = vmatmul.mubr.f32.vlgmr.msra.gmra.mxu0 %v14611_v26  ;;  %v14713_v42 = vsub.f32 %v1521_v32, %v14686_v34  ;;  %v14715_v26 = vand.u32 4294901760, %v1524_v27  ;;  %vm165_vm13 = vcmp.eq.s32.totalorder %v14323_v2, %v161_v46  ;;  %v16969_v32 = vmov 0.0  }
 0x131   :  { %12779 = vmatprep.subr.mxu0 %v14566_v15  ;;  %12802 = vmatmul.mubr.f32.vlgmr.msra.gmra.mxu1 %v14607_v40  ;;  %v1600_v61 = vand.u32 4294901760, %v14703_v51  ;;  %v1687_v59 = vsub.f32 %v14698_v35, %v14723_v11  ;;  %v14809_v9 = vsel %vm183_vm11, 1.0, %v16969_v32 }
 0x132   :  { %12762 = vmatprep.mubr.f32.mxu0 %v14632_v60  ;;  %12780 = vmatpush3.msra.mxu0 %v14566_v15  ;;  %v14725_v15 = vand.u32 4294901760, %v1527_v36  ;;  %v14736_v60 = vsub.f32 %v1524_v27, %v14715_v26  ;;  %16970 = vst [vmem:[#allocation33_spill] sm:$0xff] %v14809_v9 }
 0x133   :  { %12804 = vmatprep.mubr.f32.mxu1 %v14626_v53  ;;  %12781 = vmatprep.subr.mxu0 %v14578_v39 }
 0x134   :  { %12782 = vmatpush3.msra.mxu0 %v14578_v39  ;;  %12821 = vmatprep.subr.mxu1 %v1667_v30  ;;  %v1610_v39 = vand.u32 4294901760, %v14713_v42  ;;  %v1620_v28 = vand.u32 4294901760, %v14736_v60 }
 0x135   :  { %12763 = vmatmul.mubr.f32.gmra.mxu0 %v14624_v52  ;;  %12783 = vmatprep.subr.mxu0 %v14590_v50  ;;  %v1674_v52 = vand.u32 4294901760, %v1673_v49 }
 0x136   :  { %12805 = vmatmul.mubr.f32.gmra.mxu1 %v14618_v43  ;;  %12784 = vmatpush3.msra.mxu0 %v14590_v50  ;;  %v14744_v50 = vsub.f32 %v1527_v36, %v14725_v15  ;;  %v1611_v14 = vsub.f32 %v14713_v42, %v1610_v39  ;;  %v1621_v58 = vsub.f32 %v14736_v60, %v1620_v28 }
 0x137   :  { %12787 = vmatprep.mubr.f32.mxu0 %v14613_v31  ;;  %12785 = vmatprep.subr.mxu0 %v14600_v63  ;;  %v1601_v31 = vsub.f32 %v14703_v51, %v1600_v61 }
 0x138   :  { %12786 = vmatpush3.msra.mxu0 %v14600_v63  ;;  %12822 = vmatpush3.msra.mxu1 %v1667_v30  ;;  %v1681_v63 = vand.u32 4294901760, %v1680_v62  ;;  %v1630_v10 = vand.u32 4294901760, %v14744_v50  ;;  %v1612_v37 = vand.u32 4294901760, %v1611_v14  ;;  %v1622_v48 = vand.u32 4294901760, %v1621_v58  ;;  %v2773_v14 = vld [vmem:[#allocation5 + $0x38] sm:$0xff] }
 0x139   :  { %12788 = vmatmul.mubr.f32.vlgmr.msra.gmra.mxu0 %v14607_v40  ;;  %12807 = vmatprep.subr.mxu0 %v14637_v4  ;;  %v1688_v40 = vand.u32 4294901760, %v1687_v59  ;;  %v2144_v30 = vsel %vm260_vm1, %v14809_v9, 0  ;;  %v16987_v59 = vld [vmem:[#allocation14_spill] sm:$0xff] }
 0x13a   :  { %12790 = vmatprep.mubr.f32.mxu0 %v14626_v53  ;;  %12808 = vmatpush3.msra.mxu0 %v14637_v4  ;;  %v1602_v53 = vand.u32 4294901760, %v1601_v31  ;;  %v16989_v31 = vld [vmem:[#allocation18_spill] sm:$0xff] }
 0x13b   :  { %12809 = vmatprep.subr.mxu0 %v14653_v3  ;;  %12823 = vmatprep.subr.mxu1 %v1674_v52 }
 0x13c   :  { %12810 = vmatpush3.msra.mxu0 %v14653_v3  ;;  %12824 = vmatpush3.msra.mxu1 %v1674_v52  ;;  %v16986_v52 = vld [vmem:[#allocation20_spill] sm:$0xff] }
 0x13d   :  { %12791 = vmatmul.mubr.f32.gmra.mxu0 %v14618_v43  ;;  %12811 = vmatprep.subr.mxu0 %v14662_v8  ;;  %v1631_v43 = vsub.f32 %v14744_v50, %v1630_v10 }
 0x13e   :  { %12825 = vmatprep.subr.mxu1 %v1681_v63  ;;  %12812 = vmatpush3.msra.mxu0 %v14662_v8 }
 0x13f   :  { %12826 = vmatpush3.msra.mxu1 %v1681_v63  ;;  %12813 = vmatprep.subr.mxu0 %v14676_v21  ;;  %v1632_v23 = vand.u32 4294901760, %v1631_v43  ;;  %v16990_v63 = vld [vmem:[#allocation23_spill] sm:$0xff] }
 0x140   :  { %12827 = vmatprep.subr.mxu1 %v1688_v40  ;;  %12814 = vmatpush3.msra.mxu0 %v14676_v21 }
 0x141   :  { %12815 = vmatprep.mubr.f32.mxu0 %v1602_v53  ;;  %12828 = vmatpush3.msra.mxu1 %v1688_v40  ;;  %v2772_v40 = vld [vmem:[#allocation5 + $0x30] sm:$0xff] }
 0x142   :  { %12829 = vmatprep.mubr.f32.mxu1 %v14679_v19  ;;  %12816 = vmatmul.mubr.f32.vlgmr.msra.gmra.mxu0 %v1612_v37  ;;  %v14984_v53 = vand.u32 4294901760, %v2772_v40  ;;  %v2771_v37 = vld [vmem:[#allocation5 + $0x28] sm:$0xff] }
 0x143   :  { %12830 = vmatmul.mubr.f32.vlgmr.msra.gmra.mxu1 %v14686_v34  ;;  %12835 = vmatprep.subr.mxu0 %v14648_v55 }
 0x144   :  { %12849 = vmatprep.subr.mxu1 %v14637_v4  ;;  %12836 = vmatpush3.msra.mxu0 %v14648_v55  ;;  %v160_v55 = vadd.s32 4294967295, %v14328_v5  ;;  %v14992_v43 = vsub.f32 %v2772_v40, %v14984_v53 }
 0x145   :  { %12850 = vmatpush3.msra.mxu1 %v14637_v4  ;;  %12837 = vmatprep.subr.mxu0 %v14668_v24 }
 0x146   :  { %12851 = vmatprep.subr.mxu1 %v14653_v3  ;;  %12818 = vmatprep.mubr.f32.mxu0 %v1622_v48  ;;  %vm164_vm12 = vcmp.eq.s32.totalorder %v14323_v2, %v160_v55  ;;  %v14994_v48 = vand.u32 4294901760, %v2771_v37  ;;  %v15001_v44 = vand.u32 4294901760, %v14992_v43 }
 0x147   :  { %12832 = vmatprep.mubr.f32.mxu1 %v14715_v26  ;;  %12838 = vmatpush3.msra.mxu0 %v14668_v24  ;;  %v169_v24 = vadd.s32 4294967295, %v16968_v0  ;;  %v14815_v27 = vsel %vm164_vm12, 1.0, %v16969_v32 }
 0x148   :  { %12852 = vmatpush3.msra.mxu1 %v14653_v3  ;;  %12819 = vmatmul.mubr.f32.gmra.mxu0 %v1632_v23  ;;  %16971 = vst [vmem:[#allocation34_spill] sm:$0xff] %v14815_v27  ;;  %v2770_v23 = vld [vmem:[#allocation5 + $0x20] sm:$0xff]  ;;  %v15004_v38 = vsub.f32 %v2771_v37, %v14994_v48  ;;  %v2930_v0 = vsub.f32 %v14992_v43, %v15001_v44 }
 0x149   :  { %12833 = vmatmul.mubr.f32.gmra.mxu1 %v14725_v15  ;;  %12839 = vmatprep.subr.mxu0 %v14684_v13  ;;  %vm173_vm14 = vcmp.ge.s32.totalorder %v169_v24, 0  ;;  %v15006_v55 = vand.u32 4294901760, %v2770_v23 }
 0x14a   :  { %12853 = vmatprep.subr.mxu1 %v14662_v8  ;;  %12840 = vmatpush3.msra.mxu0 %v14684_v13  ;;  %v162_v13 = vadd.s32 4294967295, %v14334_v7  ;;  %vm185_vm15 = vmand %vm165_vm13, %vm173_vm14  ;;  %v15013_v24 = vand.u32 4294901760, %v15004_v38 }
 0x14b   :  { %12854 = vmatpush3.msra.mxu1 %v14662_v8  ;;  %12841 = vmatprep.subr.mxu0 %v14698_v35 }
 0x14c   :  { %12855 = vmatprep.subr.mxu1 %v14676_v21  ;;  %12842 = vmatpush3.msra.mxu0 %v14698_v35  ;;  %vm166_vm0 = vcmp.eq.s32.totalorder %v14323_v2, %v162_v13  ;;  %v14837_v35 = vsub.f32 %v2144_v30, %v2144_v30  ;;  %v15016_v13 = vsub.f32 %v2770_v23, %v15006_v55  ;;  %v2931_v30 = vand.u32 4294901760, %v2930_v0 }
 0x14d   :  { %12843 = vmatprep.mubr.f32.mxu0 %v14703_v51  ;;  %12856 = vmatpush3.msra.mxu1 %v14676_v21 }
 0x14e   :  { %12857 = vmatprep.mubr.f32.mxu1 %v1600_v61  ;;  %12844 = vmatmul.mubr.f32.vlgmr.msra.gmra.mxu0 %v14713_v42  ;;  %16973 = vst [vmem:[#allocation36_spill] sm:$0xff] %v14837_v35  ;;  %v14855_v36 = vand.u32 4294901760, %v14837_v35 }
 0x14f   :  { %12858 = vmatmul.mubr.f32.vlgmr.msra.gmra.mxu1 %v1610_v39  ;;  %12863 = vmatprep.subr.mxu0 %v14658_v33 }
 0x150   :  { %12877 = vmatprep.subr.mxu1 %v14637_v4  ;;  %12864 = vmatpush3.msra.mxu0 %v14658_v33  ;;  %v2147_v33 = vsel %vm260_vm1, %v14815_v27, 0  ;;  %16976 = vst [vmem:[#allocation39_spill] sm:$0xff] %v14855_v36 }
 0x151   :  { %12878 = vmatpush3.msra.mxu1 %v14637_v4  ;;  %12865 = vmatprep.subr.mxu0 %v14691_v41  ;;  %v14832_v4 = vsel %vm185_vm15, 1.0, %v16969_v32 }
 0x152   :  { %12879 = vmatprep.subr.mxu1 %v14653_v3  ;;  %12846 = vmatprep.mubr.f32.mxu0 %v14736_v60  ;;  %16972 = vst [vmem:[#allocation35_spill] sm:$0xff] %v14832_v4  ;;  %v2150_v51 = vsel %vm260_vm1, %v14832_v4, 0 }
 0x153   :  { %12860 = vmatprep.mubr.f32.mxu1 %v1620_v28  ;;  %12866 = vmatpush3.msra.mxu0 %v14691_v41  ;;  %v14841_v41 = vsub.f32 %v2147_v33, %v2147_v33  ;;  %v14864_v42 = vsub.f32 %v2150_v51, %v2150_v51  ;;  %v14979_v28 = vand.u32 4294901760, %v2773_v14  ;;  %v2937_v33 = vsub.f32 %v15004_v38, %v15013_v24 }
 0x154   :  { %12880 = vmatpush3.msra.mxu1 %v14653_v3  ;;  %12847 = vmatmul.mubr.f32.gmra.mxu0 %v14744_v50  ;;  %v14844_v3 = vsel %vm166_vm0, 1.0, %v16969_v32  ;;  %v16988_v50 = vld [vmem:[#allocation16_spill] sm:$0xff]  ;;  %v15023_v51 = vand.u32 4294901760, %v15016_v13 }
 0x155   :  { %12861 = vmatmul.mubr.f32.gmra.mxu1 %v1630_v10  ;;  %12867 = vmatprep.subr.mxu0 %v14710_v12  ;;  %16974 = vst [vmem:[#allocation37_spill] sm:$0xff] %v14841_v41  ;;  %16975 = vst [vmem:[#allocation38_spill] sm:$0xff] %v14844_v3  ;;  %v14881_v49 = vand.u32 4294901760, %v14864_v42  ;;  %v14982_v10 = vsub.f32 %v2773_v14, %v14979_v28 }
 0x156   :  { %12881 = vmatprep.subr.mxu1 %v14662_v8  ;;  %12868 = vmatpush3.msra.mxu0 %v14710_v12  ;;  %v2153_v12 = vsel %vm260_vm1, %v14844_v3, 0  ;;  %16978 = vst [vmem:[#allocation41_spill] sm:$0xff] %v14864_v42 }
 0x157   :  { %12882 = vmatpush3.msra.mxu1 %v14662_v8  ;;  %12869 = vmatprep.subr.mxu0 %v14723_v11  ;;  %v14862_v8 = vand.u32 4294901760, %v14841_v41  ;;  %16980 = vst [vmem:[#allocation43_spill] sm:$0xff] %v14881_v49  ;;  %v2247_v62 = vsub.f32 %v14864_v42, %v14881_v49  ;;  %v14989_v58 = vand.u32 4294901760, %v14982_v10 }
 0x158   :  { %12883 = vmatprep.subr.mxu1 %v14676_v21  ;;  %12870 = vmatpush3.msra.mxu0 %v14723_v11 }
 0x159   :  { %12871 = vmatprep.mubr.f32.mxu0 %v14679_v19  ;;  %12884 = vmatpush3.msra.mxu1 %v14676_v21  ;;  %16977 = vst [vmem:[#allocation40_spill] sm:$0xff] %v14862_v8  ;;  %v14870_v21 = vsub.f32 %v2153_v12, %v2153_v12  ;;  %v14911_v39 = vand.u32 4294901760, %v2247_v62  ;;  %v2923_v56 = vsub.f32 %v14982_v10, %v14989_v58  ;;  %v2938_v12 = vand.u32 4294901760, %v2937_v33 }
 0x15a   :  { %12885 = vmatprep.mubr.f32.mxu1 %v14679_v19  ;;  %12872 = vmatmul.mubr.f32.vlgmr.msra.gmra.mxu0 %v14686_v34  ;;  %v2227_v19 = vsub.f32 %v14837_v35, %v14855_v36 }
 0x15b   :  { %12886 = vmatmul.mubr.f32.vlgmr.msra.gmra.mxu1 %v14686_v34  ;;  %12891 = vmatprep.subr.mxu0 %v14350_v16  ;;  %16979 = vst [vmem:[#allocation42_spill] sm:$0xff] %v14870_v21  ;;  %v2237_v34 = vsub.f32 %v14841_v41, %v14862_v8  ;;  %v14888_v11 = vand.u32 4294901760, %v14870_v21  ;;  %16984 = vst [vmem:[#allocation47_spill] sm:$0xff] %v14911_v39  ;;  %v2924_v46 = vand.u32 4294901760, %v2923_v56 }
 0x15c   :  { %12905 = vmatprep.subr.mxu1 %v14442_v45  ;;  %12892 = vmatpush3.msra.mxu0 %v14350_v16  ;;  %v14892_v61 = vand.u32 4294901760, %v2227_v19  ;;  %v2944_v19 = vsub.f32 %v15016_v13, %v15023_v51 }
 0x15d   :  { %12906 = vmatpush3.msra.mxu1 %v14442_v45  ;;  %12893 = vmatprep.subr.mxu0 %v14353_v17  ;;  %16981 = vst [vmem:[#allocation44_spill] sm:$0xff] %v14888_v11 }
 0x15e   :  { %12907 = vmatprep.subr.mxu1 %v14447_v47  ;;  %12874 = vmatprep.mubr.f32.mxu0 %v14715_v26  ;;  %16982 = vst [vmem:[#allocation45_spill] sm:$0xff] %v14892_v61 }
 0x15f   :  { %12888 = vmatprep.mubr.f32.mxu1 %v14715_v26  ;;  %12894 = vmatpush3.msra.mxu0 %v14353_v17  ;;  %v14896_v26 = vand.u32 4294901760, %v2237_v34  ;;  %v2945_v34 = vand.u32 4294901760, %v2944_v19 }
 0x160   :  { %12908 = vmatpush3.msra.mxu1 %v14447_v47  ;;  %12875 = vmatmul.mubr.f32.gmra.mxu0 %v14725_v15 }
 0x161   :  { %12889 = vmatmul.mubr.f32.gmra.mxu1 %v14725_v15  ;;  %12895 = vmatprep.subr.mxu0 %v14356_v18  ;;  %16983 = vst [vmem:[#allocation46_spill] sm:$0xff] %v14896_v26  ;;  %v2257_v15 = vsub.f32 %v14870_v21, %v14888_v11 }
 0x162   :  { %12909 = vmatprep.subr.mxu1 %v14464_v54  ;;  %12896 = vmatpush3.msra.mxu0 %v14356_v18 }
 0x163   :  { %12910 = vmatpush3.msra.mxu1 %v14464_v54  ;;  %12897 = vmatprep.subr.mxu0 %v14361_v20  ;;  %v14918_v60 = vand.u32 4294901760, %v2257_v15 }
 0x164   :  { %12911 = vmatprep.subr.mxu1 %v14474_v57  ;;  %12898 = vmatpush3.msra.mxu0 %v14361_v20 }
 0x165   :  { %12899 = vmatprep.mubr.f32.mxu0 %v14892_v61  ;;  %12912 = vmatpush3.msra.mxu1 %v14474_v57  ;;  %16985 = vst [vmem:[#allocation48_spill] sm:$0xff] %v14918_v60 }
 0x166   :  { %12913 = vmatprep.mubr.msk.f32.mxu1 %vm260_vm1, %v14809_v9  ;;  %12900 = vmatmul.mubr.f32.vlgmr.msra.gmra.mxu0 %v14896_v26 }
 0x167   :  { %12914 = vmatmul.mubr.msk.f32.vlgmr.msra.gmra.mxu1 %vm260_vm1, %v14815_v27  ;;  %12919 = vmatprep.subr.mxu0 %v14372_v22 }
 0x168   :  { %12933 = vmatprep.subr.mxu1 %v14350_v16  ;;  %12920 = vmatpush3.msra.mxu0 %v14372_v22 }
 0x169   :  { %12934 = vmatpush3.msra.mxu1 %v14350_v16  ;;  %12921 = vmatprep.subr.mxu0 %v14379_v25 }
 0x16a   :  { %12935 = vmatprep.subr.mxu1 %v14353_v17  ;;  %12902 = vmatprep.mubr.f32.mxu0 %v14911_v39 }
 0x16b   :  { %12916 = vmatprep.mubr.msk.f32.mxu1 %vm260_vm1, %v14832_v4  ;;  %12922 = vmatpush3.msra.mxu0 %v14379_v25 }
 0x16c   :  { %12936 = vmatpush3.msra.mxu1 %v14353_v17  ;;  %12903 = vmatmul.mubr.f32.gmra.mxu0 %v14918_v60 }
 0x16d   :  { %12917 = vmatmul.mubr.msk.f32.gmra.mxu1 %vm260_vm1, %v14844_v3  ;;  %12923 = vmatprep.subr.mxu0 %v14391_v29 }
 0x16e   :  { %12937 = vmatprep.subr.mxu1 %v14356_v18  ;;  %12924 = vmatpush3.msra.mxu0 %v14391_v29 }
 0x16f   :  { %12938 = vmatpush3.msra.mxu1 %v14356_v18  ;;  %12925 = vmatprep.subr.mxu0 %v16986_v52 }
 0x170   :  { %12939 = vmatprep.subr.mxu1 %v14361_v20  ;;  %12926 = vmatpush3.msra.mxu0 %v16986_v52 }
 0x171   :  { %12927 = vmatprep.mubr.f32.mxu0 %v14837_v35  ;;  %12940 = vmatpush3.msra.mxu1 %v14361_v20 }
 0x172   :  { %12941 = vmatprep.mubr.f32.mxu1 %v14855_v36  ;;  %12928 = vmatmul.mubr.f32.vlgmr.msra.gmra.mxu0 %v14841_v41 }
 0x173   :  { %12942 = vmatmul.mubr.f32.vlgmr.msra.gmra.mxu1 %v14862_v8  ;;  %12947 = vmatprep.subr.mxu0 %v16987_v59 }
 0x174   :  { %12961 = vmatprep.subr.mxu1 %v14350_v16  ;;  %12948 = vmatpush3.msra.mxu0 %v16987_v59 }
 0x175   :  { %12962 = vmatpush3.msra.mxu1 %v14350_v16  ;;  %12949 = vmatprep.subr.mxu0 %v16988_v50 }
 0x176   :  { %12963 = vmatprep.subr.mxu1 %v14353_v17  ;;  %12930 = vmatprep.mubr.f32.mxu0 %v14864_v42 }
 0x177   :  { %12944 = vmatprep.mubr.f32.mxu1 %v14881_v49  ;;  %12950 = vmatpush3.msra.mxu0 %v16988_v50 }
 0x178   :  { %12964 = vmatpush3.msra.mxu1 %v14353_v17  ;;  %12931 = vmatmul.mubr.f32.gmra.mxu0 %v14870_v21 }
 0x179   :  { %12945 = vmatmul.mubr.f32.gmra.mxu1 %v14888_v11  ;;  %12951 = vmatprep.subr.mxu0 %v16989_v31 }
 0x17a   :  { %12965 = vmatprep.subr.mxu1 %v14356_v18  ;;  %12952 = vmatpush3.msra.mxu0 %v16989_v31 }
 0x17b   :  { %12966 = vmatpush3.msra.mxu1 %v14356_v18  ;;  %12953 = vmatprep.subr.mxu0 %v16990_v63 }
 0x17c   :  { %12967 = vmatprep.subr.mxu1 %v14361_v20  ;;  %12954 = vmatpush3.msra.mxu0 %v16990_v63 }
 0x17d   :  { %12955 = vmatprep.mubr.msk.f32.mxu0 %vm260_vm1, %v14809_v9  ;;  %12968 = vmatpush3.msra.mxu1 %v14361_v20 }
 0x17e   :  { %12969 = vmatprep.mubr.msk.f32.mxu1 %vm260_vm1, %v14809_v9  ;;  %12956 = vmatmul.mubr.msk.f32.vlgmr.msra.gmra.mxu0 %vm260_vm1, %v14815_v27 }
 0x17f   :  { %12970 = vmatmul.mubr.msk.f32.vlgmr.msra.gmra.mxu1 %vm260_vm1, %v14815_v27  ;;  %12958 = vmatprep.mubr.msk.f32.mxu0 %vm260_vm1, %v14832_v4 }
 0x180   :  { %12972 = vmatprep.mubr.msk.f32.mxu1 %vm260_vm1, %v14832_v4  ;;  %12975 = vmatprep.subr.mxu0 %v14979_v28 }
 0x181   :  { %12976 = vmatpush3.msra.mxu0 %v14979_v28  ;;  %12989 = vmatprep.subr.mxu1 %v2924_v46 }
 0x182   :  { %12959 = vmatmul.mubr.msk.f32.gmra.mxu0 %vm260_vm1, %v14844_v3  ;;  %12977 = vmatprep.subr.mxu0 %v14984_v53 }
 0x183   :  { %12973 = vmatmul.mubr.msk.f32.gmra.mxu1 %vm260_vm1, %v14844_v3  ;;  %12978 = vmatpush3.msra.mxu0 %v14984_v53 }
 0x184   :  { %12979 = vmatprep.subr.mxu0 %v14994_v48  ;;  %12990 = vmatpush3.msra.mxu1 %v2924_v46 }
 0x185   :  { %12980 = vmatpush3.msra.mxu0 %v14994_v48  ;;  %12991 = vmatprep.subr.mxu1 %v2931_v30 }
 0x186   :  { %12981 = vmatprep.subr.mxu0 %v15006_v55  ;;  %12992 = vmatpush3.msra.mxu1 %v2931_v30 }
 0x187   :  { %12982 = vmatpush3.msra.mxu0 %v15006_v55  ;;  %12993 = vmatprep.subr.mxu1 %v2938_v12 }
 0x188   :  { %13003 = vmatprep.subr.mxu0 %v14982_v10  ;;  %12994 = vmatpush3.msra.mxu1 %v2938_v12 }
 0x189   :  { %12995 = vmatprep.subr.mxu1 %v2945_v34 }
 0x18a   :  { %12996 = vmatpush3.msra.mxu1 %v2945_v34 }
 0x18b   :  { %13017 = vmatprep.subr.mxu1 %v14979_v28 }
 0x1dd   :  { %v12747_v62 = vpop.f32.mrf.mxu1 }
 0x1df   :  { %v15029_v15 = vpop.f32.mrf.mxu1 }
 0x1e0   :  { %16991 = vst [vmem:[#allocation20_spill] sm:$0xff] %v15029_v15 }
 0x1e1   :  { %v12750_v14 = vpop.f32.mrf.mxu1 }
 0x1e3   :  { %v15031_v40 = vpop.f32.mrf.mxu1 }
 0x1e4   :  { %16992 = vst [vmem:[#allocation14_spill] sm:$0xff] %v15031_v40 }
 0x1e5   :  { %v12733_v37 = vpop.f32.mrf.mxu0  ;;  %v12775_v23 = vpop.f32.mrf.mxu1 }
 0x1e6   :  { %v1106_v56 = vadd.f32 %v12747_v62, %v12733_v37 }
 0x1e7   :  { %v15033_v46 = vpop.f32.mrf.mxu0  ;;  %v15035_v0 = vpop.f32.mrf.mxu1 }
 0x1e8   :  { %16993 = vst [vmem:[#allocation16_spill] sm:$0xff] %v15033_v46  ;;  %16994 = vst [vmem:[#allocation49_spill] sm:$0xff] %v15035_v0 }
 0x1ea   :  { %v12736_v30 = vpop.f32.mrf.mxu0 }
 0x1eb   :  { %v1118_v33 = vadd.f32 %v12750_v14, %v12736_v30  ;;  %v12778_v19 = vpop.f32.mrf.mxu1 }
 0x1ec   :  { %v15037_v12 = vpop.f32.mrf.mxu0 }
 0x1ed   :  { %16995 = vst [vmem:[#allocation50_spill] sm:$0xff] %v15037_v12  ;;  %v15039_v21 = vpop.f32.mrf.mxu1 }
 0x1ee   :  { %16996 = vst [vmem:[#allocation51_spill] sm:$0xff] %v15039_v21 }
 0x1f0   :  { %v12761_v34 = vpop.f32.mrf.mxu0 }
 0x1f1   :  { %v1205_v11 = vadd.f32 %v12761_v34, %v1106_v56  ;;  %v12803_v41 = vpop.f32.mrf.mxu1 }
 0x1f2   :  { %v15041_v49 = vpop.f32.mrf.mxu0 }
 0x1f3   :  { %16997 = vst [vmem:[#allocation52_spill] sm:$0xff] %v15041_v49  ;;  %v1304_v42 = vadd.f32 %v12775_v23, %v1205_v11  ;;  %v15045_v39 = vpop.f32.mrf.mxu1 }
 0x1f4   :  { %16999 = vst [vmem:[#allocation54_spill] sm:$0xff] %v15045_v39 }
 0x1f5   :  { %v12764_v35 = vpop.f32.mrf.mxu0 }
 0x1f6   :  { %v1219_v60 = vadd.f32 %v12764_v35, %v1118_v33  ;;  %v12806_v36 = vpop.f32.mrf.mxu1 }
 0x1f7   :  { %v15043_v62 = vpop.f32.mrf.mxu0 }
 0x1f8   :  { %16998 = vst [vmem:[#allocation53_spill] sm:$0xff] %v15043_v62  ;;  %v1320_v37 = vadd.f32 %v12778_v19, %v1219_v60  ;;  %v15051_v11 = vpop.f32.mrf.mxu1 }
 0x1f9   :  { %v12789_v8 = vpop.f32.mrf.mxu0  ;;  %17002 = vst [vmem:[#allocation57_spill] sm:$0xff] %v15051_v11 }
 0x1fa   :  { %v1409_v14 = vadd.f32 %v12789_v8, %v1304_v42 }
 0x1fb   :  { %v15047_v30 = vpop.f32.mrf.mxu0 }
 0x1fc   :  { %17000 = vst [vmem:[#allocation55_spill] sm:$0xff] %v15047_v30  ;;  %v1502_v26 = vadd.f32 %v12803_v41, %v1409_v14 }
 0x1fd   :  { %v12792_v61 = vpop.f32.mrf.mxu0 }
 0x1fe   :  { %v1421_v3 = vadd.f32 %v12792_v61, %v1320_v37 }
 0x1ff   :  { %v15049_v56 = vpop.f32.mrf.mxu0 }
 0x200   :  { %17001 = vst [vmem:[#allocation56_spill] sm:$0xff] %v15049_v56  ;;  %v1514_v34 = vadd.f32 %v12806_v36, %v1421_v3 }
 0x202   :  { %v12817_v23 = vpop.f32.mrf.mxu0 }
 0x203   :  { %v1615_v35 = vadd.f32 %v12817_v23, %v1502_v26  ;;  %v12831_v33 = vpop.f32.mrf.mxu1 }
 0x204   :  { %v15053_v4 = vpop.f32.mrf.mxu0 }
 0x205   :  { %17003 = vst [vmem:[#allocation58_spill] sm:$0xff] %v15053_v4  ;;  %v1732_v60 = vadd.f32 %v12831_v33, %v1615_v35  ;;  %v15055_v19 = vpop.f32.mrf.mxu1 }
 0x206   :  { %17004 = vst [vmem:[#allocation59_spill] sm:$0xff] %v15055_v19 }
 0x208   :  { %v12820_v8 = vpop.f32.mrf.mxu0 }
 0x209   :  { %v1635_v42 = vadd.f32 %v12820_v8, %v1514_v34  ;;  %v12834_v27 = vpop.f32.mrf.mxu1 }
 0x20a   :  { %v15057_v41 = vpop.f32.mrf.mxu0 }
 0x20b   :  { %17005 = vst [vmem:[#allocation60_spill] sm:$0xff] %v15057_v41  ;;  %v1744_v14 = vadd.f32 %v12834_v27, %v1635_v42  ;;  %v15059_v61 = vpop.f32.mrf.mxu1 }
 0x20c   :  { %17006 = vst [vmem:[#allocation61_spill] sm:$0xff] %v15059_v61 }
 0x20e   :  { %v12845_v37 = vpop.f32.mrf.mxu0 }
 0x20f   :  { %v1831_v3 = vadd.f32 %v12845_v37, %v1732_v60  ;;  %v12859_v36 = vpop.f32.mrf.mxu1 }
 0x210   :  { %v15061_v9 = vpop.f32.mrf.mxu0 }
 0x211   :  { %17007 = vst [vmem:[#allocation62_spill] sm:$0xff] %v15061_v9  ;;  %v1930_v26 = vadd.f32 %v12859_v36, %v1831_v3  ;;  %v15063_v23 = vpop.f32.mrf.mxu1 }
 0x212   :  { %17008 = vst [vmem:[#allocation63_spill] sm:$0xff] %v15063_v23 }
 0x214   :  { %v12848_v11 = vpop.f32.mrf.mxu0 }
 0x215   :  { %v1845_v35 = vadd.f32 %v12848_v11, %v1744_v14  ;;  %v12862_v33 = vpop.f32.mrf.mxu1 }
 0x216   :  { %v15065_v19 = vpop.f32.mrf.mxu0 }
 0x217   :  { %17009 = vst [vmem:[#allocation64_spill] sm:$0xff] %v15065_v19  ;;  %v1946_v34 = vadd.f32 %v12862_v33, %v1845_v35  ;;  %v15067_v8 = vpop.f32.mrf.mxu1 }
 0x218   :  { %17010 = vst [vmem:[#allocation65_spill] sm:$0xff] %v15067_v8 }
 0x21a   :  { %v12873_v41 = vpop.f32.mrf.mxu0 }
 0x21b   :  { %v2035_v27 = vadd.f32 %v12873_v41, %v1930_v26  ;;  %v12887_v42 = vpop.f32.mrf.mxu1 }
 0x21c   :  { %v15069_v61 = vpop.f32.mrf.mxu0 }
 0x21d   :  { %17011 = vst [vmem:[#allocation66_spill] sm:$0xff] %v15069_v61  ;;  %v15071_v60 = vadd.f32 %v12887_v42, %v2035_v27  ;;  %v15073_v37 = vpop.f32.mrf.mxu1 }
 0x21e   :  { %17013 = vst [vmem:[#allocation68_spill] sm:$0xff] %v15073_v37 }
 0x21f   :  { %17012 = vst [vmem:[#allocation67_spill] sm:$0xff] %v15071_v60 }
 0x220   :  { %v12876_v3 = vpop.f32.mrf.mxu0 }
 0x221   :  { %v2047_v36 = vadd.f32 %v12876_v3, %v1946_v34  ;;  %v12890_v23 = vpop.f32.mrf.mxu1 }
 0x222   :  { %v15075_v9 = vpop.f32.mrf.mxu0 }
 0x223   :  { %17014 = vst [vmem:[#allocation69_spill] sm:$0xff] %v15075_v9  ;;  %v15077_v11 = vadd.f32 %v12890_v23, %v2047_v36  ;;  %v15079_v14 = vpop.f32.mrf.mxu1 }
 0x224   :  { %17016 = vst [vmem:[#allocation71_spill] sm:$0xff] %v15079_v14 }
 0x225   :  { %17015 = vst [vmem:[#allocation70_spill] sm:$0xff] %v15077_v11 }
 0x226   :  { %v12901_v35 = vpop.f32.mrf.mxu0 }
 0x227   :  { %v12915_v33 = vpop.f32.mrf.mxu1 }
 0x228   :  { %v2230_v8 = vpop.f32.mrf.mxu0  ;;  %v2358_v34 = vadd.f32 %v12915_v33, %v12901_v35 }
 0x229   :  { %v2351_v41 = vpop.f32.mrf.mxu1 }
 0x22a   :  { %v2352_v39 = vadd.f32 %v2351_v41, %v2230_v8 }
 0x22c   :  { %v12904_v26 = vpop.f32.mrf.mxu0 }
 0x22d   :  { %v12918_v19 = vpop.f32.mrf.mxu1 }
 0x22e   :  { %v2250_v61 = vpop.f32.mrf.mxu0  ;;  %v2370_v21 = vadd.f32 %v12918_v19, %v12904_v26 }
 0x22f   :  { %v2363_v27 = vpop.f32.mrf.mxu1 }
 0x230   :  { %v2364_v62 = vadd.f32 %v2363_v27, %v2250_v61 }
 0x232   :  { %v12929_v42 = vpop.f32.mrf.mxu0 }
 0x233   :  { %v12943_v4 = vpop.f32.mrf.mxu1  ;;  %v2457_v9 = vadd.f32 %v12929_v42, %v2358_v34 }
 0x234   :  { %v2449_v37 = vpop.f32.mrf.mxu0 }
 0x235   :  { %v2547_v56 = vpop.f32.mrf.mxu1  ;;  %v2450_v14 = vadd.f32 %v2449_v37, %v2352_v39  ;;  %v2556_v0 = vadd.f32 %v12943_v4, %v2457_v9 }
 0x237   :  { %v2548_v49 = vadd.f32 %v2547_v56, %v2450_v14  ;;  %v16905_v14 = vand.u32 15, %v14328_v5 }
 0x238   :  { %v12932_v3 = vpop.f32.mrf.mxu0 }
 0x239   :  { %v12946_v23 = vpop.f32.mrf.mxu1  ;;  %v2471_v40 = vadd.f32 %v12932_v3, %v2370_v21 }
 0x23a   :  { %v2463_v36 = vpop.f32.mrf.mxu0 }
 0x23b   :  { %v2563_v30 = vpop.f32.mrf.mxu1  ;;  %v2464_v15 = vadd.f32 %v2463_v36, %v2364_v62  ;;  %v2572_v63 = vadd.f32 %v12946_v23, %v2471_v40 }
 0x23d   :  { %v2564_v41 = vadd.f32 %v2563_v30, %v2464_v15 }
 0x23e   :  { %v12957_v12 = vpop.f32.mrf.mxu0 }
 0x23f   :  { %v2661_v46 = vadd.f32 %v12957_v12, %v2556_v0  ;;  %v12971_v11 = vpop.f32.mrf.mxu1 }
 0x240   :  { %v2654_v60 = vpop.f32.mrf.mxu0 }
 0x241   :  { %v2754_v31 = vadd.f32 %v12971_v11, %v2661_v46  ;;  %v2655_v35 = vadd.f32 %v2654_v60, %v2548_v49  ;;  %v2747_v33 = vpop.f32.mrf.mxu1 }
 0x242   :  { %v12960_v8 = vpop.f32.mrf.mxu0 }
 0x243   :  { %v2778_v42 = vsel %vm260_vm1, %v2754_v31, 0  ;;  %v2748_v19 = vadd.f32 %v2747_v33, %v2655_v35  ;;  %v2673_v39 = vadd.f32 %v12960_v8, %v2572_v63  ;;  %v12974_v37 = vpop.f32.mrf.mxu1  ;;  %v192_v35 = vadd.s32 1, %v14328_v5 }
 0x244   :  { %v15082_v61 = vand.u32 4294901760, %v2778_v42  ;;  %v2666_v9 = vpop.f32.mrf.mxu0  ;;  %v200_v33 = vadd.s32 1, %v16905_v14 }
 0x245   :  { %v2775_v4 = vsel %vm260_vm1, %v2748_v19, 0  ;;  %v2766_v21 = vadd.f32 %v12974_v37, %v2673_v39  ;;  %v2667_v0 = vadd.f32 %v2666_v9, %v2564_v41  ;;  %v2759_v49 = vpop.f32.mrf.mxu1  ;;  %v191_v19 = vadd.s32 1, %v14321_v1 }
 0x246   :  { %v15086_v12 = vsub.f32 %v2778_v42, %v15082_v61  ;;  %v15088_v40 = vand.u32 4294901760, %v2775_v4  ;;  %v16904_v39 = vand.u32 15, %v14334_v7  ;;  %vm196_vm2 = vcmp.eq.s32.totalorder %v14323_v2, %v192_v35  ;;  %v4032_v35 = vld [vmem:[#allocation5 + $0x68] sm:$0xff] }
 0x247   :  { %v2784_v15 = vsel %vm260_vm1, %v2766_v21, 0  ;;  %v2760_v46 = vadd.f32 %v2759_v49, %v2667_v0  ;;  %vm208_vm3 = vcmp.lt.s32.totalorder %v200_v33, 16  ;;  %vm195_vm4 = vcmp.eq.s32.totalorder %v14323_v2, %v191_v19 }
 0x248   :  { %v2867_v31 = vand.u32 4294901760, %v15086_v12  ;;  %v2856_v63 = vsub.f32 %v2775_v4, %v15088_v40  ;;  %v15093_v62 = vand.u32 4294901760, %v2784_v15  ;;  %12997 = vmatprep.mubr.f32.mxu1 %v15088_v40  ;;  %v194_v4 = vadd.s32 1, %v14334_v7  ;;  %vm216_vm5 = vmand %vm196_vm2, %vm208_vm3 }
 0x249   :  { %v2781_v30 = vsel %vm260_vm1, %v2760_v46, 0  ;;  %12998 = vmatmul.mubr.f32.vlgmr.msra.gmra.mxu1 %v15082_v61  ;;  %v202_v21 = vadd.s32 1, %v16904_v39  ;;  %v15146_v0 = vsel %vm216_vm5, 1.0, %v16969_v32 }
 0x24a   :  { %v15099_v56 = vsub.f32 %v2784_v15, %v15093_v62  ;;  %v15101_v60 = vand.u32 4294901760, %v2781_v30  ;;  %13018 = vmatpush3.msra.mxu1 %v14979_v28  ;;  %v2857_v11 = vand.u32 4294901760, %v2856_v63  ;;  %v2868_v26 = vsub.f32 %v15086_v12, %v2867_v31  ;;  %17018 = vst [vmem:[#allocation73_spill] sm:$0xff] %v15146_v0 }
 0x24b   :  { %13019 = vmatprep.subr.mxu1 %v14984_v53  ;;  %vm198_vm6 = vcmp.eq.s32.totalorder %v14323_v2, %v194_v4  ;;  %vm210_vm7 = vcmp.lt.s32.totalorder %v202_v21, 16 }
 0x24c   :  { %v15108_v27 = vsub.f32 %v2781_v30, %v15101_v60  ;;  %13000 = vmatprep.mubr.f32.mxu1 %v15101_v60  ;;  %13020 = vmatpush3.msra.mxu1 %v14984_v53  ;;  %v2858_v34 = vsub.f32 %v2856_v63, %v2857_v11  ;;  %v2887_v3 = vand.u32 4294901760, %v15099_v56  ;;  %v2869_v8 = vand.u32 4294901760, %v2868_v26  ;;  %vm218_vm9 = vmand %vm198_vm6, %vm210_vm7  ;;  %v17034_v26 = vld [vmem:[#allocation23_spill] sm:$0xff] }
 0x24d   :  { %13001 = vmatmul.mubr.f32.gmra.mxu1 %v15093_v62  ;;  %13021 = vmatprep.subr.mxu1 %v14994_v48  ;;  %v15173_v49 = vsel %vm218_vm9, 1.0, %v16969_v32 }
 0x24e   :  { %13022 = vmatpush3.msra.mxu1 %v14994_v48  ;;  %13025 = vmatprep.mubr.f32.mxu1 %v2857_v11  ;;  %v2859_v23 = vand.u32 4294901760, %v2858_v34  ;;  %v2877_v36 = vand.u32 4294901760, %v15108_v27  ;;  %v2888_v42 = vsub.f32 %v15099_v56, %v2887_v3  ;;  %17022 = vst [vmem:[#allocation77_spill] sm:$0xff] %v15173_v49  ;;  %v17033_v11 = vld [vmem:[#allocation18_spill] sm:$0xff] }
 0x24f   :  { %13023 = vmatprep.subr.mxu1 %v15006_v55 }
 0x250   :  { %12983 = vmatprep.mubr.f32.mxu0 %v2859_v23  ;;  %13024 = vmatpush3.msra.mxu1 %v15006_v55  ;;  %v2878_v41 = vsub.f32 %v15108_v27, %v2877_v36  ;;  %v2889_v9 = vand.u32 4294901760, %v2888_v42  ;;  %v4031_v42 = vld [vmem:[#allocation5 + $0x60] sm:$0xff] }
 0x251   :  { %12984 = vmatmul.mubr.f32.vlgmr.msra.gmra.mxu0 %v2869_v8  ;;  %13026 = vmatmul.mubr.f32.vlgmr.msra.gmra.mxu1 %v2867_v31  ;;  %v15335_v4 = vand.u32 4294901760, %v4031_v42 }
 0x252   :  { %13045 = vmatprep.subr.mxu1 %v14979_v28  ;;  %13004 = vmatpush3.msra.mxu0 %v14982_v10  ;;  %v2879_v37 = vand.u32 4294901760, %v2878_v41  ;;  %v193_v10 = vadd.s32 1, %v14331_v6  ;;  %v15323_v41 = vand.u32 4294901760, %v4032_v35 }
 0x253   :  { %13028 = vmatprep.mubr.f32.mxu1 %v2877_v36  ;;  %13046 = vmatpush3.msra.mxu1 %v14979_v28  ;;  %v15141_v28 = vsel %vm195_vm4, 1.0, %v16969_v32 }
 0x254   :  { %13005 = vmatprep.subr.mxu0 %v14992_v43  ;;  %13047 = vmatprep.subr.mxu1 %v14984_v53  ;;  %17017 = vst [vmem:[#allocation72_spill] sm:$0xff] %v15141_v28  ;;  %vm197_vm8 = vcmp.eq.s32.totalorder %v14323_v2, %v193_v10 }
 0x255   :  { %12986 = vmatprep.mubr.f32.mxu0 %v2879_v37  ;;  %13006 = vmatpush3.msra.mxu0 %v14992_v43  ;;  %v3408_v43 = vsel %vm260_vm1, %v15146_v0, 0 }
 0x256   :  { %13048 = vmatpush3.msra.mxu1 %v14984_v53  ;;  %12987 = vmatmul.mubr.f32.gmra.mxu0 %v2889_v9  ;;  %v3405_v53 = vsel %vm260_vm1, %v15141_v28, 0  ;;  %v15333_v9 = vsub.f32 %v4032_v35, %v15323_v41 }
 0x257   :  { %13007 = vmatprep.subr.mxu0 %v15004_v38  ;;  %13029 = vmatmul.mubr.f32.gmra.mxu1 %v2887_v3  ;;  %v4033_v3 = vld [vmem:[#allocation5 + $0x70] sm:$0xff] }
 0x258   :  { %13049 = vmatprep.subr.mxu1 %v14994_v48  ;;  %13008 = vmatpush3.msra.mxu0 %v15004_v38  ;;  %v15166_v38 = vsub.f32 %v3405_v53, %v3405_v53  ;;  %v15313_v36 = vand.u32 4294901760, %v4033_v3  ;;  %v15342_v53 = vand.u32 4294901760, %v15333_v9 }
 0x259   :  { %13011 = vmatprep.mubr.f32.mxu0 %v2856_v63  ;;  %13050 = vmatpush3.msra.mxu1 %v14994_v48  ;;  %v15162_v48 = vsel %vm197_vm8, 1.0, %v16969_v32 }
 0x25a   :  { %13053 = vmatprep.mubr.f32.mxu1 %v15088_v40  ;;  %13009 = vmatprep.subr.mxu0 %v15016_v13  ;;  %17019 = vst [vmem:[#allocation74_spill] sm:$0xff] %v15162_v48  ;;  %17020 = vst [vmem:[#allocation75_spill] sm:$0xff] %v15166_v38  ;;  %v15321_v8 = vsub.f32 %v4033_v3, %v15313_v36 }
 0x25b   :  { %13051 = vmatprep.subr.mxu1 %v15006_v55  ;;  %13010 = vmatpush3.msra.mxu0 %v15016_v13  ;;  %v15170_v13 = vsub.f32 %v3408_v43, %v3408_v43  ;;  %v15345_v43 = vsub.f32 %v4031_v42, %v15335_v4 }
 0x25c   :  { %13052 = vmatpush3.msra.mxu1 %v15006_v55  ;;  %13012 = vmatmul.mubr.f32.vlgmr.msra.gmra.mxu0 %v15086_v12  ;;  %v3411_v55 = vsel %vm260_vm1, %v15162_v48, 0  ;;  %v3414_v12 = vsel %vm260_vm1, %v15173_v49, 0  ;;  %v15330_v37 = vand.u32 4294901760, %v15321_v8 }
 0x25d   :  { %13031 = vmatprep.subr.mxu0 %v14989_v58  ;;  %13054 = vmatmul.mubr.f32.vlgmr.msra.gmra.mxu1 %v15082_v61  ;;  %17021 = vst [vmem:[#allocation76_spill] sm:$0xff] %v15170_v13  ;;  %v15191_v15 = vand.u32 4294901760, %v15170_v13  ;;  %v15199_v46 = vsub.f32 %v3414_v12, %v3414_v12  ;;  %v4198_v12 = vsub.f32 %v15333_v9, %v15342_v53 }
 0x25e   :  { %13014 = vmatprep.mubr.f32.mxu0 %v15108_v27  ;;  %13032 = vmatpush3.msra.mxu0 %v14989_v58  ;;  %v15184_v58 = vand.u32 4294901760, %v15166_v38  ;;  %v4034_v27 = vld [vmem:[#allocation5 + $0x78] sm:$0xff]  ;;  %v4191_v10 = vsub.f32 %v15321_v8, %v15330_v37 }
 0x25f   :  { %13056 = vmatprep.mubr.f32.mxu1 %v15101_v60  ;;  %13033 = vmatprep.subr.mxu0 %v15001_v44  ;;  %17024 = vst [vmem:[#allocation79_spill] sm:$0xff] %v15191_v15  ;;  %17026 = vst [vmem:[#allocation81_spill] sm:$0xff] %v15199_v46  ;;  %v15308_v34 = vand.u32 4294901760, %v4034_v27 }
 0x260   :  { %13034 = vmatpush3.msra.mxu0 %v15001_v44  ;;  %13073 = vmatprep.subr.mxu1 %v14442_v45  ;;  %17023 = vst [vmem:[#allocation78_spill] sm:$0xff] %v15184_v58  ;;  %v15193_v44 = vsub.f32 %v3411_v55, %v3411_v55  ;;  %v4192_v55 = vand.u32 4294901760, %v4191_v10 }
 0x261   :  { %13015 = vmatmul.mubr.f32.gmra.mxu0 %v15099_v56  ;;  %13035 = vmatprep.subr.mxu0 %v15013_v24  ;;  %v15311_v23 = vsub.f32 %v4034_v27, %v15308_v34 }
 0x262   :  { %13057 = vmatmul.mubr.f32.gmra.mxu1 %v15093_v62  ;;  %13036 = vmatpush3.msra.mxu0 %v15013_v24  ;;  %17025 = vst [vmem:[#allocation80_spill] sm:$0xff] %v15193_v44  ;;  %v3488_v24 = vsub.f32 %v15166_v38, %v15184_v58 }
 0x263   :  { %13039 = vmatprep.mubr.f32.mxu0 %v15088_v40  ;;  %13037 = vmatprep.subr.mxu0 %v15023_v51  ;;  %v3498_v40 = vsub.f32 %v15170_v13, %v15191_v15  ;;  %v15318_v33 = vand.u32 4294901760, %v15311_v23 }
 0x264   :  { %13038 = vmatpush3.msra.mxu0 %v15023_v51  ;;  %13074 = vmatpush3.msra.mxu1 %v14442_v45  ;;  %v15210_v51 = vand.u32 4294901760, %v15193_v44  ;;  %v15221_v31 = vand.u32 4294901760, %v3488_v24  ;;  %v15352_v24 = vand.u32 4294901760, %v15345_v43 }
 0x265   :  { %13040 = vmatmul.mubr.f32.vlgmr.msra.gmra.mxu0 %v15082_v61  ;;  %13059 = vmatprep.subr.mxu0 %v14350_v16  ;;  %v15217_v61 = vand.u32 4294901760, %v15199_v46  ;;  %v15225_v63 = vand.u32 4294901760, %v3498_v40  ;;  %v4184_v19 = vsub.f32 %v15311_v23, %v15318_v33  ;;  %v4199_v40 = vand.u32 4294901760, %v4198_v12 }
 0x266   :  { %13042 = vmatprep.mubr.f32.mxu0 %v15101_v60  ;;  %13060 = vmatpush3.msra.mxu0 %v14350_v16  ;;  %17027 = vst [vmem:[#allocation82_spill] sm:$0xff] %v15210_v51  ;;  %17029 = vst [vmem:[#allocation84_spill] sm:$0xff] %v15221_v31  ;;  %v3508_v30 = vsub.f32 %v15193_v44, %v15210_v51 }
 0x267   :  { %13061 = vmatprep.subr.mxu0 %v14353_v17  ;;  %13075 = vmatprep.subr.mxu1 %v14447_v47  ;;  %17028 = vst [vmem:[#allocation83_spill] sm:$0xff] %v15217_v61  ;;  %17030 = vst [vmem:[#allocation85_spill] sm:$0xff] %v15225_v63  ;;  %v4185_v21 = vand.u32 4294901760, %v4184_v19 }
 0x268   :  { %13062 = vmatpush3.msra.mxu0 %v14353_v17  ;;  %13076 = vmatpush3.msra.mxu1 %v14447_v47  ;;  %v15240_v56 = vand.u32 4294901760, %v3508_v30  ;;  %v4205_v30 = vsub.f32 %v15345_v43, %v15352_v24 }
 0x269   :  { %13043 = vmatmul.mubr.f32.gmra.mxu0 %v15093_v62  ;;  %13063 = vmatprep.subr.mxu0 %v14356_v18  ;;  %v3518_v62 = vsub.f32 %v15199_v46, %v15217_v61 }
 0x26a   :  { %13077 = vmatprep.subr.mxu1 %v14464_v54  ;;  %13064 = vmatpush3.msra.mxu0 %v14356_v18  ;;  %17031 = vst [vmem:[#allocation86_spill] sm:$0xff] %v15240_v56 }
 0x26b   :  { %13078 = vmatpush3.msra.mxu1 %v14464_v54  ;;  %13065 = vmatprep.subr.mxu0 %v14361_v20  ;;  %v15247_v60 = vand.u32 4294901760, %v3518_v62  ;;  %v4206_v62 = vand.u32 4294901760, %v4205_v30 }
 0x26c   :  { %13079 = vmatprep.subr.mxu1 %v14474_v57  ;;  %13066 = vmatpush3.msra.mxu0 %v14361_v20 }
 0x26d   :  { %13067 = vmatprep.mubr.f32.mxu0 %v15221_v31  ;;  %13080 = vmatpush3.msra.mxu1 %v14474_v57  ;;  %17032 = vst [vmem:[#allocation87_spill] sm:$0xff] %v15247_v60 }
 0x26e   :  { %13081 = vmatprep.mubr.msk.f32.mxu1 %vm260_vm1, %v15141_v28  ;;  %13068 = vmatmul.mubr.f32.vlgmr.msra.gmra.mxu0 %v15225_v63 }
 0x26f   :  { %13082 = vmatmul.mubr.msk.f32.vlgmr.msra.gmra.mxu1 %vm260_vm1, %v15146_v0  ;;  %13087 = vmatprep.subr.mxu0 %v14372_v22 }
 0x270   :  { %13101 = vmatprep.subr.mxu1 %v14350_v16  ;;  %13088 = vmatpush3.msra.mxu0 %v14372_v22 }
 0x271   :  { %13102 = vmatpush3.msra.mxu1 %v14350_v16  ;;  %13089 = vmatprep.subr.mxu0 %v14379_v25 }
 0x272   :  { %13103 = vmatprep.subr.mxu1 %v14353_v17  ;;  %13070 = vmatprep.mubr.f32.mxu0 %v15240_v56 }
 0x273   :  { %13084 = vmatprep.mubr.msk.f32.mxu1 %vm260_vm1, %v15162_v48  ;;  %13090 = vmatpush3.msra.mxu0 %v14379_v25 }
 0x274   :  { %13104 = vmatpush3.msra.mxu1 %v14353_v17  ;;  %13071 = vmatmul.mubr.f32.gmra.mxu0 %v15247_v60 }
 0x275   :  { %13085 = vmatmul.mubr.msk.f32.gmra.mxu1 %vm260_vm1, %v15173_v49  ;;  %13091 = vmatprep.subr.mxu0 %v14391_v29 }
 0x276   :  { %13105 = vmatprep.subr.mxu1 %v14356_v18  ;;  %13092 = vmatpush3.msra.mxu0 %v14391_v29 }
 0x277   :  { %13106 = vmatpush3.msra.mxu1 %v14356_v18  ;;  %13093 = vmatprep.subr.mxu0 %v16986_v52 }
 0x278   :  { %13107 = vmatprep.subr.mxu1 %v14361_v20  ;;  %13094 = vmatpush3.msra.mxu0 %v16986_v52 }
 0x279   :  { %13095 = vmatprep.mubr.f32.mxu0 %v15166_v38  ;;  %13108 = vmatpush3.msra.mxu1 %v14361_v20 }
 0x27a   :  { %13109 = vmatprep.mubr.f32.mxu1 %v15184_v58  ;;  %13096 = vmatmul.mubr.f32.vlgmr.msra.gmra.mxu0 %v15170_v13 }
 0x27b   :  { %13110 = vmatmul.mubr.f32.vlgmr.msra.gmra.mxu1 %v15191_v15  ;;  %13115 = vmatprep.subr.mxu0 %v16987_v59 }
 0x27c   :  { %13129 = vmatprep.subr.mxu1 %v14350_v16  ;;  %13116 = vmatpush3.msra.mxu0 %v16987_v59 }
 0x27d   :  { %13130 = vmatpush3.msra.mxu1 %v14350_v16  ;;  %13117 = vmatprep.subr.mxu0 %v16988_v50 }
 0x27e   :  { %13131 = vmatprep.subr.mxu1 %v14353_v17  ;;  %13098 = vmatprep.mubr.f32.mxu0 %v15193_v44 }
 0x27f   :  { %13112 = vmatprep.mubr.f32.mxu1 %v15210_v51  ;;  %13118 = vmatpush3.msra.mxu0 %v16988_v50 }
 0x280   :  { %13132 = vmatpush3.msra.mxu1 %v14353_v17  ;;  %13099 = vmatmul.mubr.f32.gmra.mxu0 %v15199_v46 }
 0x281   :  { %13113 = vmatmul.mubr.f32.gmra.mxu1 %v15217_v61  ;;  %13119 = vmatprep.subr.mxu0 %v17033_v11 }
 0x282   :  { %13133 = vmatprep.subr.mxu1 %v14356_v18  ;;  %13120 = vmatpush3.msra.mxu0 %v17033_v11 }
 0x283   :  { %13134 = vmatpush3.msra.mxu1 %v14356_v18  ;;  %13121 = vmatprep.subr.mxu0 %v17034_v26 }
 0x284   :  { %13135 = vmatprep.subr.mxu1 %v14361_v20  ;;  %13122 = vmatpush3.msra.mxu0 %v17034_v26 }
 0x285   :  { %13123 = vmatprep.mubr.msk.f32.mxu0 %vm260_vm1, %v15141_v28  ;;  %13136 = vmatpush3.msra.mxu1 %v14361_v20 }
 0x286   :  { %13137 = vmatprep.mubr.msk.f32.mxu1 %vm260_vm1, %v15141_v28  ;;  %13124 = vmatmul.mubr.msk.f32.vlgmr.msra.gmra.mxu0 %vm260_vm1, %v15146_v0 }
 0x287   :  { %13138 = vmatmul.mubr.msk.f32.vlgmr.msra.gmra.mxu1 %vm260_vm1, %v15146_v0  ;;  %13126 = vmatprep.mubr.msk.f32.mxu0 %vm260_vm1, %v15162_v48 }
 0x288   :  { %13140 = vmatprep.mubr.msk.f32.mxu1 %vm260_vm1, %v15162_v48  ;;  %13143 = vmatprep.subr.mxu0 %v15308_v34 }
 0x289   :  { %13144 = vmatpush3.msra.mxu0 %v15308_v34  ;;  %13157 = vmatprep.subr.mxu1 %v4185_v21 }
 0x28a   :  { %13127 = vmatmul.mubr.msk.f32.gmra.mxu0 %vm260_vm1, %v15173_v49  ;;  %13145 = vmatprep.subr.mxu0 %v15313_v36 }
 0x28b   :  { %13141 = vmatmul.mubr.msk.f32.gmra.mxu1 %vm260_vm1, %v15173_v49  ;;  %13146 = vmatpush3.msra.mxu0 %v15313_v36  ;;  %v17045_v49 = vld [vmem:[#allocation67_spill] sm:$0xff] }
 0x28c   :  { %13147 = vmatprep.subr.mxu0 %v15323_v41  ;;  %13158 = vmatpush3.msra.mxu1 %v4185_v21 }
 0x28d   :  { %13148 = vmatpush3.msra.mxu0 %v15323_v41  ;;  %13159 = vmatprep.subr.mxu1 %v4192_v55 }
 0x28e   :  { %13149 = vmatprep.subr.mxu0 %v15335_v4  ;;  %13160 = vmatpush3.msra.mxu1 %v4192_v55 }
 0x28f   :  { %13150 = vmatpush3.msra.mxu0 %v15335_v4  ;;  %13161 = vmatprep.subr.mxu1 %v4199_v40 }
 0x290   :  { %13171 = vmatprep.subr.mxu0 %v15311_v23  ;;  %13162 = vmatpush3.msra.mxu1 %v4199_v40 }
 0x291   :  { %13163 = vmatprep.subr.mxu1 %v4206_v62 }
 0x292   :  { %13164 = vmatpush3.msra.mxu1 %v4206_v62 }
 0x293   :  { %13185 = vmatprep.subr.mxu1 %v15308_v34 }
 0x309   :  { %v12999_v27 = vpop.f32.mrf.mxu1 }
 0x30b   :  { %v15358_v3 = vpop.f32.mrf.mxu1 }
 0x30c   :  { %17035 = vst [vmem:[#allocation88_spill] sm:$0xff] %v15358_v3 }
 0x30d   :  { %v13002_v35 = vpop.f32.mrf.mxu1 }
 0x30f   :  { %v15360_v42 = vpop.f32.mrf.mxu1 }
 0x310   :  { %17036 = vst [vmem:[#allocation89_spill] sm:$0xff] %v15360_v42 }
 0x311   :  { %v12985_v19 = vpop.f32.mrf.mxu0  ;;  %v13027_v21 = vpop.f32.mrf.mxu1 }
 0x312   :  { %v2989_v10 = vadd.f32 %v12999_v27, %v12985_v19 }
 0x313   :  { %v15362_v12 = vpop.f32.mrf.mxu0  ;;  %v15364_v39 = vpop.f32.mrf.mxu1 }
 0x314   :  { %17037 = vst [vmem:[#allocation90_spill] sm:$0xff] %v15362_v12  ;;  %17038 = vst [vmem:[#allocation91_spill] sm:$0xff] %v15364_v39 }
 0x316   :  { %v12988_v55 = vpop.f32.mrf.mxu0 }
 0x317   :  { %v3001_v30 = vadd.f32 %v13002_v35, %v12988_v55  ;;  %v13030_v62 = vpop.f32.mrf.mxu1 }
 0x318   :  { %v15366_v40 = vpop.f32.mrf.mxu0 }
 0x319   :  { %17039 = vst [vmem:[#allocation92_spill] sm:$0xff] %v15366_v40  ;;  %v15368_v46 = vpop.f32.mrf.mxu1 }
 0x31a   :  { %17040 = vst [vmem:[#allocation93_spill] sm:$0xff] %v15368_v46 }
 0x31c   :  { %v13013_v14 = vpop.f32.mrf.mxu0 }
 0x31d   :  { %v3088_v61 = vadd.f32 %v13013_v14, %v2989_v10  ;;  %v13055_v13 = vpop.f32.mrf.mxu1 }
 0x31e   :  { %v15370_v51 = vpop.f32.mrf.mxu0 }
 0x31f   :  { %17041 = vst [vmem:[#allocation94_spill] sm:$0xff] %v15370_v51  ;;  %v3187_v44 = vadd.f32 %v13027_v21, %v3088_v61  ;;  %v15374_v56 = vpop.f32.mrf.mxu1 }
 0x320   :  { %17043 = vst [vmem:[#allocation96_spill] sm:$0xff] %v15374_v56 }
 0x321   :  { %v13016_v38 = vpop.f32.mrf.mxu0 }
 0x322   :  { %v3102_v60 = vadd.f32 %v13016_v38, %v3001_v30  ;;  %v13058_v58 = vpop.f32.mrf.mxu1  ;;  %v17049_v30 = vld [vmem:[#allocation70_spill] sm:$0xff] }
 0x323   :  { %v15372_v27 = vpop.f32.mrf.mxu0 }
 0x324   :  { %17042 = vst [vmem:[#allocation95_spill] sm:$0xff] %v15372_v27  ;;  %v3203_v19 = vadd.f32 %v13030_v62, %v3102_v60  ;;  %v15383_v38 = vpop.f32.mrf.mxu1 }
 0x325   :  { %v13041_v15 = vpop.f32.mrf.mxu0  ;;  %17048 = vst [vmem:[#allocation99_spill] sm:$0xff] %v15383_v38 }
 0x326   :  { %v3292_v35 = vadd.f32 %v13041_v15, %v3187_v44 }
 0x327   :  { %v15376_v55 = vpop.f32.mrf.mxu0 }
 0x328   :  { %17044 = vst [vmem:[#allocation97_spill] sm:$0xff] %v15376_v55  ;;  %v3385_v63 = vadd.f32 %v13055_v13, %v3292_v35 }
 0x329   :  { %v13044_v31 = vpop.f32.mrf.mxu0 }
 0x32a   :  { %v15379_v14 = vadd.f32 %v3385_v63, %v17045_v49  ;;  %v3304_v10 = vadd.f32 %v13044_v31, %v3203_v19 }
 0x32b   :  { %v15381_v61 = vpop.f32.mrf.mxu0 }
 0x32c   :  { %17046 = vst [vmem:[#allocation67_spill] sm:$0xff] %v15379_v14  ;;  %17047 = vst [vmem:[#allocation98_spill] sm:$0xff] %v15381_v61  ;;  %v3397_v21 = vadd.f32 %v13058_v58, %v3304_v10 }
 0x32e   :  { %v15386_v60 = vadd.f32 %v3397_v21, %v17049_v30  ;;  %v13069_v62 = vpop.f32.mrf.mxu0 }
 0x32f   :  { %v13083_v48 = vpop.f32.mrf.mxu1 }
 0x330   :  { %17050 = vst [vmem:[#allocation70_spill] sm:$0xff] %v15386_v60  ;;  %v3491_v15 = vpop.f32.mrf.mxu0  ;;  %v3619_v19 = vadd.f32 %v13083_v48, %v13069_v62 }
 0x331   :  { %v3612_v44 = vpop.f32.mrf.mxu1 }
 0x332   :  { %v3613_v58 = vadd.f32 %v3612_v44, %v3491_v15 }
 0x334   :  { %v13072_v0 = vpop.f32.mrf.mxu0 }
 0x335   :  { %v13086_v13 = vpop.f32.mrf.mxu1 }
 0x336   :  { %v3511_v35 = vpop.f32.mrf.mxu0  ;;  %v3631_v21 = vadd.f32 %v13086_v13, %v13072_v0 }
 0x337   :  { %v3624_v28 = vpop.f32.mrf.mxu1 }
 0x338   :  { %v3625_v27 = vadd.f32 %v3624_v28, %v3511_v35 }
 0x33a   :  { %v13097_v46 = vpop.f32.mrf.mxu0 }
 0x33b   :  { %v13111_v49 = vpop.f32.mrf.mxu1  ;;  %v3718_v10 = vadd.f32 %v13097_v46, %v3619_v19 }
 0x33c   :  { %v3710_v63 = vpop.f32.mrf.mxu0 }
 0x33d   :  { %v3808_v31 = vpop.f32.mrf.mxu1  ;;  %v3711_v30 = vadd.f32 %v3710_v63, %v3613_v58  ;;  %v3817_v39 = vadd.f32 %v13111_v49, %v3718_v10 }
 0x33f   :  { %v3809_v51 = vadd.f32 %v3808_v31, %v3711_v30  ;;  %v224_v30 = vadd.s32 2, %v14328_v5 }
 0x340   :  { %v13100_v61 = vpop.f32.mrf.mxu0 }
 0x341   :  { %v13114_v38 = vpop.f32.mrf.mxu1  ;;  %v3732_v42 = vadd.f32 %v13100_v61, %v3631_v21  ;;  %vm228_vm10 = vcmp.eq.s32.totalorder %v14323_v2, %v224_v30 }
 0x342   :  { %v3724_v56 = vpop.f32.mrf.mxu0 }
 0x343   :  { %v3824_v55 = vpop.f32.mrf.mxu1  ;;  %v3725_v3 = vadd.f32 %v3724_v56, %v3625_v27  ;;  %v3833_v26 = vadd.f32 %v13114_v38, %v3732_v42 }
 0x345   :  { %v3825_v46 = vadd.f32 %v3824_v55, %v3725_v3 }
 0x346   :  { %v13125_v40 = vpop.f32.mrf.mxu0 }
 0x347   :  { %v3922_v12 = vadd.f32 %v13125_v40, %v3817_v39  ;;  %v13139_v60 = vpop.f32.mrf.mxu1 }
 0x348   :  { %v3915_v14 = vpop.f32.mrf.mxu0 }
 0x349   :  { %v4015_v11 = vadd.f32 %v13139_v60, %v3922_v12  ;;  %v3916_v48 = vadd.f32 %v3915_v14, %v3809_v51  ;;  %v4008_v62 = vpop.f32.mrf.mxu1 }
 0x34a   :  { %v13128_v15 = vpop.f32.mrf.mxu0 }
 0x34b   :  { %v4039_v44 = vsel %vm260_vm1, %v4015_v11, 0  ;;  %v4009_v0 = vadd.f32 %v4008_v62, %v3916_v48  ;;  %v3934_v13 = vadd.f32 %v13128_v15, %v3833_v26  ;;  %v13142_v63 = vpop.f32.mrf.mxu1  ;;  %v17051_v48 = vand.u32 15, %v14328_v5 }
 0x34c   :  { %v15389_v28 = vand.u32 4294901760, %v4039_v44  ;;  %v3927_v61 = vpop.f32.mrf.mxu0 }
 0x34d   :  { %v4036_v35 = vsel %vm260_vm1, %v4009_v0, 0  ;;  %v4027_v56 = vadd.f32 %v13142_v63, %v3934_v13  ;;  %v3928_v39 = vadd.f32 %v3927_v61, %v3825_v46  ;;  %v4020_v51 = vpop.f32.mrf.mxu1  ;;  %v232_v62 = vadd.s32 2, %v17051_v48 }
 0x34e   :  { %v15393_v40 = vsub.f32 %v4039_v44, %v15389_v28  ;;  %v15395_v42 = vand.u32 4294901760, %v4036_v35  ;;  %v223_v0 = vadd.s32 2, %v14321_v1  ;;  %v226_v1 = vadd.s32 2, %v14334_v7 }
 0x34f   :  { %v4045_v3 = vsel %vm260_vm1, %v4027_v56, 0  ;;  %v4021_v12 = vadd.f32 %v4020_v51, %v3928_v39  ;;  %vm240_vm11 = vcmp.lt.s32.totalorder %v232_v62, 16  ;;  %v17052_v63 = vand.u32 15, %v14334_v7  ;;  %v5292_v51 = vld [vmem:[#allocation5 + $0x80] sm:$0xff] }
 0x350   :  { %v4128_v11 = vand.u32 4294901760, %v15393_v40  ;;  %v4117_v26 = vsub.f32 %v4036_v35, %v15395_v42  ;;  %v15400_v27 = vand.u32 4294901760, %v4045_v3  ;;  %13165 = vmatprep.mubr.f32.mxu1 %v15395_v42  ;;  %vm227_vm12 = vcmp.eq.s32.totalorder %v14323_v2, %v223_v0  ;;  %vm248_vm13 = vmand %vm228_vm10, %vm240_vm11 }
 0x351   :  { %v4042_v55 = vsel %vm260_vm1, %v4021_v12, 0  ;;  %13166 = vmatmul.mubr.f32.vlgmr.msra.gmra.mxu1 %v15389_v28  ;;  %v234_v61 = vadd.s32 2, %v17052_v63  ;;  %v15451_v7 = vsel %vm248_vm13, 1.0, %v16969_v32  ;;  %vm230_vm14 = vcmp.eq.s32.totalorder %v14323_v2, %v226_v1 }
 0x352   :  { %v15406_v14 = vsub.f32 %v4045_v3, %v15400_v27  ;;  %v15408_v38 = vand.u32 4294901760, %v4042_v55  ;;  %13186 = vmatpush3.msra.mxu1 %v15308_v34  ;;  %v4118_v60 = vand.u32 4294901760, %v4117_v26  ;;  %v4129_v49 = vsub.f32 %v15393_v40, %v4128_v11  ;;  %17053 = vst [vmem:[#allocation100_spill] sm:$0xff] %v15451_v7 }
 0x353   :  { %13187 = vmatprep.subr.mxu1 %v15313_v36  ;;  %vm242_vm15 = vcmp.lt.s32.totalorder %v234_v61, 16 }
 0x354   :  { %v15414_v31 = vsub.f32 %v4042_v55, %v15408_v38  ;;  %13168 = vmatprep.mubr.f32.mxu1 %v15408_v38  ;;  %13188 = vmatpush3.msra.mxu1 %v15313_v36  ;;  %v4119_v19 = vsub.f32 %v4117_v26, %v4118_v60  ;;  %v4148_v58 = vand.u32 4294901760, %v15406_v14  ;;  %v4130_v15 = vand.u32 4294901760, %v4129_v49  ;;  %vm250_vm2 = vmand %vm230_vm14, %vm242_vm15 }
 0x355   :  { %13169 = vmatmul.mubr.f32.gmra.mxu1 %v15400_v27  ;;  %13189 = vmatprep.subr.mxu1 %v15323_v41 }
 0x356   :  { %13190 = vmatpush3.msra.mxu1 %v15323_v41  ;;  %13193 = vmatprep.mubr.f32.mxu1 %v4118_v60  ;;  %v4120_v10 = vand.u32 4294901760, %v4119_v19  ;;  %v4138_v21 = vand.u32 4294901760, %v15414_v31  ;;  %v4149_v44 = vsub.f32 %v15406_v14, %v4148_v58 }
 0x357   :  { %13191 = vmatprep.subr.mxu1 %v15335_v4 }
 0x358   :  { %13151 = vmatprep.mubr.f32.mxu0 %v4120_v10  ;;  %13192 = vmatpush3.msra.mxu1 %v15335_v4  ;;  %v4139_v46 = vsub.f32 %v15414_v31, %v4138_v21  ;;  %v4150_v13 = vand.u32 4294901760, %v4149_v44 }
 0x359   :  { %13152 = vmatmul.mubr.f32.vlgmr.msra.gmra.mxu0 %v4130_v15  ;;  %13194 = vmatmul.mubr.f32.vlgmr.msra.gmra.mxu1 %v4128_v11 }
 0x35a   :  { %13213 = vmatprep.subr.mxu1 %v15308_v34  ;;  %13172 = vmatpush3.msra.mxu0 %v15311_v23  ;;  %v4140_v5 = vand.u32 4294901760, %v4139_v46  ;;  %v225_v23 = vadd.s32 2, %v14331_v6 }
 0x35b   :  { %13196 = vmatprep.mubr.f32.mxu1 %v4138_v21  ;;  %13214 = vmatpush3.msra.mxu1 %v15308_v34  ;;  %v15446_v34 = vsel %vm227_vm12, 1.0, %v16969_v32 }
 0x35c   :  { %13173 = vmatprep.subr.mxu0 %v15321_v8  ;;  %13215 = vmatprep.subr.mxu1 %v15313_v36  ;;  %vm229_vm0 = vcmp.eq.s32.totalorder %v14323_v2, %v225_v23  ;;  %v4666_v6 = vsel %vm260_vm1, %v15446_v34, 0 }
 0x35d   :  { %13154 = vmatprep.mubr.f32.mxu0 %v4140_v5  ;;  %13174 = vmatpush3.msra.mxu0 %v15321_v8  ;;  %v15467_v2 = vsel %vm229_vm0, 1.0, %v16969_v32  ;;  %v15471_v8 = vsub.f32 %v4666_v6, %v4666_v6 }
 0x35e   :  { %13216 = vmatpush3.msra.mxu1 %v15313_v36  ;;  %13155 = vmatmul.mubr.f32.gmra.mxu0 %v4150_v13  ;;  %v4669_v36 = vsel %vm260_vm1, %v15451_v7, 0  ;;  %17054 = vst [vmem:[#allocation101_spill] sm:$0xff] %v15467_v2 }
 0x35f   :  { %13175 = vmatprep.subr.mxu0 %v15333_v9  ;;  %13197 = vmatmul.mubr.f32.gmra.mxu1 %v4148_v58  ;;  %17055 = vst [vmem:[#allocation102_spill] sm:$0xff] %v15471_v8 }
 0x360   :  { %13217 = vmatprep.subr.mxu1 %v15323_v41  ;;  %13176 = vmatpush3.msra.mxu0 %v15333_v9  ;;  %v15478_v9 = vsel %vm250_vm2, 1.0, %v16969_v32 }
 0x361   :  { %13179 = vmatprep.mubr.f32.mxu0 %v4117_v26  ;;  %13218 = vmatpush3.msra.mxu1 %v15323_v41  ;;  %v15475_v41 = vsub.f32 %v4669_v36, %v4669_v36  ;;  %17057 = vst [vmem:[#allocation104_spill] sm:$0xff] %v15478_v9  ;;  %v4675_v32 = vsel %vm260_vm1, %v15478_v9, 0  ;;  %v15640_v26 = vand.u32 4294901760, %v5292_v51 }
 0x362   :  { %13221 = vmatprep.mubr.f32.mxu1 %v15395_v42  ;;  %13177 = vmatprep.subr.mxu0 %v15345_v43  ;;  %v15504_v35 = vsub.f32 %v4675_v32, %v4675_v32 }
 0x363   :  { %13219 = vmatprep.subr.mxu1 %v15335_v4  ;;  %13178 = vmatpush3.msra.mxu0 %v15345_v43  ;;  %17056 = vst [vmem:[#allocation103_spill] sm:$0xff] %v15475_v41  ;;  %v15496_v43 = vand.u32 4294901760, %v15475_v41 }
 0x364   :  { %13220 = vmatpush3.msra.mxu1 %v15335_v4  ;;  %13180 = vmatmul.mubr.f32.vlgmr.msra.gmra.mxu0 %v15393_v40  ;;  %v4672_v4 = vsel %vm260_vm1, %v15467_v2, 0  ;;  %17061 = vst [vmem:[#allocation108_spill] sm:$0xff] %v15504_v35 }
 0x365   :  { %13199 = vmatprep.subr.mxu0 %v15318_v33  ;;  %13222 = vmatmul.mubr.f32.vlgmr.msra.gmra.mxu1 %v15389_v28  ;;  %17059 = vst [vmem:[#allocation106_spill] sm:$0xff] %v15496_v43  ;;  %v4759_v56 = vsub.f32 %v15475_v41, %v15496_v43 }
 0x366   :  { %13182 = vmatprep.mubr.f32.mxu0 %v15414_v31  ;;  %13200 = vmatpush3.msra.mxu0 %v15318_v33  ;;  %v15489_v33 = vand.u32 4294901760, %v15471_v8 }
 0x367   :  { %13224 = vmatprep.mubr.f32.mxu1 %v15408_v38  ;;  %13201 = vmatprep.subr.mxu0 %v15330_v37  ;;  %v15530_v39 = vand.u32 4294901760, %v4759_v56 }
 0x368   :  { %13202 = vmatpush3.msra.mxu0 %v15330_v37  ;;  %13241 = vmatprep.subr.mxu1 %v14442_v45  ;;  %17058 = vst [vmem:[#allocation105_spill] sm:$0xff] %v15489_v33  ;;  %v15498_v37 = vsub.f32 %v4672_v4, %v4672_v4 }
 0x369   :  { %13183 = vmatmul.mubr.f32.gmra.mxu0 %v15406_v14  ;;  %13203 = vmatprep.subr.mxu0 %v15342_v53  ;;  %17065 = vst [vmem:[#allocation112_spill] sm:$0xff] %v15530_v39 }
 0x36a   :  { %13225 = vmatmul.mubr.f32.gmra.mxu1 %v15400_v27  ;;  %13204 = vmatpush3.msra.mxu0 %v15342_v53  ;;  %17060 = vst [vmem:[#allocation107_spill] sm:$0xff] %v15498_v37  ;;  %v4749_v53 = vsub.f32 %v15471_v8, %v15489_v33 }
 0x36b   :  { %13207 = vmatprep.mubr.f32.mxu0 %v15395_v42  ;;  %13205 = vmatprep.subr.mxu0 %v15352_v24 }
 0x36c   :  { %13206 = vmatpush3.msra.mxu0 %v15352_v24  ;;  %13242 = vmatpush3.msra.mxu1 %v14442_v45  ;;  %v15515_v24 = vand.u32 4294901760, %v15498_v37  ;;  %v15522_v45 = vand.u32 4294901760, %v15504_v35 }
 0x36d   :  { %13208 = vmatmul.mubr.f32.vlgmr.msra.gmra.mxu0 %v15389_v28  ;;  %13227 = vmatprep.subr.mxu0 %v14350_v16  ;;  %v15526_v28 = vand.u32 4294901760, %v4749_v53 }
 0x36e   :  { %13210 = vmatprep.mubr.f32.mxu0 %v15408_v38  ;;  %13228 = vmatpush3.msra.mxu0 %v14350_v16  ;;  %17062 = vst [vmem:[#allocation109_spill] sm:$0xff] %v15515_v24  ;;  %17063 = vst [vmem:[#allocation110_spill] sm:$0xff] %v15522_v45  ;;  %v4769_v40 = vsub.f32 %v15498_v37, %v15515_v24  ;;  %v15650_v38 = vsub.f32 %v5292_v51, %v15640_v26 }
 0x36f   :  { %13229 = vmatprep.subr.mxu0 %v14353_v17  ;;  %13243 = vmatprep.subr.mxu1 %v14447_v47  ;;  %17064 = vst [vmem:[#allocation111_spill] sm:$0xff] %v15526_v28 }
 0x370   :  { %13230 = vmatpush3.msra.mxu0 %v14353_v17  ;;  %13244 = vmatpush3.msra.mxu1 %v14447_v47  ;;  %v4779_v47 = vsub.f32 %v15504_v35, %v15522_v45  ;;  %v15545_v42 = vand.u32 4294901760, %v4769_v40  ;;  %v15657_v31 = vand.u32 4294901760, %v15650_v38 }
 0x371   :  { %13211 = vmatmul.mubr.f32.gmra.mxu0 %v15400_v27  ;;  %13231 = vmatprep.subr.mxu0 %v14356_v18 }
 0x372   :  { %13245 = vmatprep.subr.mxu1 %v14464_v54  ;;  %13232 = vmatpush3.msra.mxu0 %v14356_v18  ;;  %17066 = vst [vmem:[#allocation113_spill] sm:$0xff] %v15545_v42  ;;  %v5466_v58 = vsub.f32 %v15650_v38, %v15657_v31 }
 0x373   :  { %13246 = vmatpush3.msra.mxu1 %v14464_v54  ;;  %13233 = vmatprep.subr.mxu0 %v14361_v20  ;;  %v15552_v54 = vand.u32 4294901760, %v4779_v47 }
 0x374   :  { %13247 = vmatprep.subr.mxu1 %v14474_v57  ;;  %13234 = vmatpush3.msra.mxu0 %v14361_v20  ;;  %v5467_v10 = vand.u32 4294901760, %v5466_v58 }
 0x375   :  { %13235 = vmatprep.mubr.f32.mxu0 %v15526_v28  ;;  %13248 = vmatpush3.msra.mxu1 %v14474_v57  ;;  %17067 = vst [vmem:[#allocation114_spill] sm:$0xff] %v15552_v54  ;;  %v5293_v57 = vld [vmem:[#allocation5 + $0x88] sm:$0xff] }
 0x376   :  { %13249 = vmatprep.mubr.msk.f32.mxu1 %vm260_vm1, %v15446_v34  ;;  %13236 = vmatmul.mubr.f32.vlgmr.msra.gmra.mxu0 %v15530_v39 }
 0x377   :  { %13250 = vmatmul.mubr.msk.f32.vlgmr.msra.gmra.mxu1 %vm260_vm1, %v15451_v7  ;;  %13255 = vmatprep.subr.mxu0 %v14372_v22 }
 0x378   :  { %13269 = vmatprep.subr.mxu1 %v14350_v16  ;;  %13256 = vmatpush3.msra.mxu0 %v14372_v22  ;;  %v17068_v22 = vld [vmem:[#allocation18_spill] sm:$0xff] }
 0x379   :  { %13270 = vmatpush3.msra.mxu1 %v14350_v16  ;;  %13257 = vmatprep.subr.mxu0 %v14379_v25 }
 0x37a   :  { %13271 = vmatprep.subr.mxu1 %v14353_v17  ;;  %13238 = vmatprep.mubr.f32.mxu0 %v15545_v42 }
 0x37b   :  { %13252 = vmatprep.mubr.msk.f32.mxu1 %vm260_vm1, %v15467_v2  ;;  %13258 = vmatpush3.msra.mxu0 %v14379_v25 }
 0x37c   :  { %13272 = vmatpush3.msra.mxu1 %v14353_v17  ;;  %13239 = vmatmul.mubr.f32.gmra.mxu0 %v15552_v54 }
 0x37d   :  { %13253 = vmatmul.mubr.msk.f32.gmra.mxu1 %vm260_vm1, %v15478_v9  ;;  %13259 = vmatprep.subr.mxu0 %v14391_v29 }
 0x37e   :  { %13273 = vmatprep.subr.mxu1 %v14356_v18  ;;  %13260 = vmatpush3.msra.mxu0 %v14391_v29 }
 0x37f   :  { %13274 = vmatpush3.msra.mxu1 %v14356_v18  ;;  %13261 = vmatprep.subr.mxu0 %v16986_v52 }
 0x380   :  { %13275 = vmatprep.subr.mxu1 %v14361_v20  ;;  %13262 = vmatpush3.msra.mxu0 %v16986_v52 }
 0x381   :  { %13263 = vmatprep.mubr.f32.mxu0 %v15471_v8  ;;  %13276 = vmatpush3.msra.mxu1 %v14361_v20 }
 0x382   :  { %13277 = vmatprep.mubr.f32.mxu1 %v15489_v33  ;;  %13264 = vmatmul.mubr.f32.vlgmr.msra.gmra.mxu0 %v15475_v41 }
 0x383   :  { %13278 = vmatmul.mubr.f32.vlgmr.msra.gmra.mxu1 %v15496_v43  ;;  %13283 = vmatprep.subr.mxu0 %v16987_v59 }
 0x384   :  { %13297 = vmatprep.subr.mxu1 %v14350_v16  ;;  %13284 = vmatpush3.msra.mxu0 %v16987_v59 }
 0x385   :  { %13298 = vmatpush3.msra.mxu1 %v14350_v16  ;;  %13285 = vmatprep.subr.mxu0 %v16988_v50  ;;  %v17069_v16 = vld [vmem:[#allocation23_spill] sm:$0xff] }
 0x386   :  { %13299 = vmatprep.subr.mxu1 %v14353_v17  ;;  %13266 = vmatprep.mubr.f32.mxu0 %v15498_v37 }
 0x387   :  { %13280 = vmatprep.mubr.f32.mxu1 %v15515_v24  ;;  %13286 = vmatpush3.msra.mxu0 %v16988_v50  ;;  %v15628_v50 = vand.u32 4294901760, %v5293_v57 }
 0x388   :  { %13300 = vmatpush3.msra.mxu1 %v14353_v17  ;;  %13267 = vmatmul.mubr.f32.gmra.mxu0 %v15504_v35  ;;  %v5295_v17 = vld [vmem:[#allocation5 + $0x98] sm:$0xff] }
 0x389   :  { %13281 = vmatmul.mubr.f32.gmra.mxu1 %v15522_v45  ;;  %13287 = vmatprep.subr.mxu0 %v17068_v22  ;;  %v15638_v11 = vsub.f32 %v5293_v57, %v15628_v50 }
 0x38a   :  { %13301 = vmatprep.subr.mxu1 %v14356_v18  ;;  %13288 = vmatpush3.msra.mxu0 %v17068_v22 }
 0x38b   :  { %13302 = vmatpush3.msra.mxu1 %v14356_v18  ;;  %13289 = vmatprep.subr.mxu0 %v17069_v16  ;;  %v15613_v18 = vand.u32 4294901760, %v5295_v17  ;;  %v15647_v14 = vand.u32 4294901760, %v15638_v11 }
 0x38c   :  { %13303 = vmatprep.subr.mxu1 %v14361_v20  ;;  %13290 = vmatpush3.msra.mxu0 %v17069_v16 }
 0x38d   :  { %13291 = vmatprep.mubr.msk.f32.mxu0 %vm260_vm1, %v15446_v34  ;;  %13304 = vmatpush3.msra.mxu1 %v14361_v20  ;;  %v5294_v20 = vld [vmem:[#allocation5 + $0x90] sm:$0xff]  ;;  %v15616_v25 = vsub.f32 %v5295_v17, %v15613_v18  ;;  %v5459_v49 = vsub.f32 %v15638_v11, %v15647_v14 }
 0x38e   :  { %13305 = vmatprep.mubr.msk.f32.mxu1 %vm260_vm1, %v15446_v34  ;;  %13292 = vmatmul.mubr.msk.f32.vlgmr.msra.gmra.mxu0 %vm260_vm1, %v15451_v7  ;;  %v15618_v29 = vand.u32 4294901760, %v5294_v20 }
 0x38f   :  { %13306 = vmatmul.mubr.msk.f32.vlgmr.msra.gmra.mxu1 %vm260_vm1, %v15451_v7  ;;  %13294 = vmatprep.mubr.msk.f32.mxu0 %vm260_vm1, %v15467_v2  ;;  %v15623_v52 = vand.u32 4294901760, %v15616_v25  ;;  %v5460_v19 = vand.u32 4294901760, %v5459_v49 }
 0x390   :  { %13308 = vmatprep.mubr.msk.f32.mxu1 %vm260_vm1, %v15467_v2  ;;  %13311 = vmatprep.subr.mxu0 %v15613_v18  ;;  %v15626_v59 = vsub.f32 %v5294_v20, %v15618_v29 }
 0x391   :  { %13312 = vmatpush3.msra.mxu0 %v15613_v18  ;;  %v5445_v3 = vsub.f32 %v15616_v25, %v15623_v52 }
 0x392   :  { %13295 = vmatmul.mubr.msk.f32.gmra.mxu0 %vm260_vm1, %v15478_v9  ;;  %13313 = vmatprep.subr.mxu0 %v15618_v29  ;;  %v15635_v12 = vand.u32 4294901760, %v15626_v59 }
 0x393   :  { %13309 = vmatmul.mubr.msk.f32.gmra.mxu1 %vm260_vm1, %v15478_v9  ;;  %13314 = vmatpush3.msra.mxu0 %v15618_v29  ;;  %v5446_v27 = vand.u32 4294901760, %v5445_v3 }
 0x394   :  { %13315 = vmatprep.subr.mxu0 %v15628_v50  ;;  %v5452_v55 = vsub.f32 %v15626_v59, %v15635_v12 }
 0x395   :  { %13316 = vmatpush3.msra.mxu0 %v15628_v50  ;;  %13325 = vmatprep.subr.mxu1 %v5446_v27 }
 0x396   :  { %13317 = vmatprep.subr.mxu0 %v15640_v26  ;;  %v5453_v60 = vand.u32 4294901760, %v5452_v55  ;;  %13326 = vmatpush3.msra.mxu1 %v5446_v27  ;;  %v17070_v55 = vld [vmem:[#allocation67_spill] sm:$0xff] }
 0x397   :  { %13318 = vmatpush3.msra.mxu0 %v15640_v26 }
 0x398   :  { %13339 = vmatprep.subr.mxu0 %v15616_v25  ;;  %13327 = vmatprep.subr.mxu1 %v5453_v60 }
 0x399   :  { %13328 = vmatpush3.msra.mxu1 %v5453_v60 }
 0x39a   :  { %13329 = vmatprep.subr.mxu1 %v5460_v19 }
 0x39b   :  { %13330 = vmatpush3.msra.mxu1 %v5460_v19 }
 0x39c   :  { %13331 = vmatprep.subr.mxu1 %v5467_v10 }
 0x39d   :  { %13332 = vmatpush3.msra.mxu1 %v5467_v10 }
 0x39e   :  { %13353 = vmatprep.subr.mxu1 %v15613_v18 }
 0x411   :  { %v13167_v21 = vpop.f32.mrf.mxu1 }
 0x413   :  { %v15663_v30 = vpop.f32.mrf.mxu1 }
 0x415   :  { %v13170_v48 = vpop.f32.mrf.mxu1 }
 0x417   :  { %v15665_v62 = vpop.f32.mrf.mxu1 }
 0x419   :  { %v13153_v15 = vpop.f32.mrf.mxu0  ;;  %v13195_v46 = vpop.f32.mrf.mxu1 }
 0x41a   :  { %v4250_v44 = vadd.f32 %v13167_v21, %v13153_v15  ;;  %v17071_v21 = vld [vmem:[#allocation70_spill] sm:$0xff] }
 0x41b   :  { %v15667_v0 = vpop.f32.mrf.mxu0  ;;  %v15669_v5 = vpop.f32.mrf.mxu1 }
 0x41e   :  { %v13156_v13 = vpop.f32.mrf.mxu0 }
 0x41f   :  { %v4262_v1 = vadd.f32 %v13170_v48, %v13156_v13  ;;  %v13198_v61 = vpop.f32.mrf.mxu1 }
 0x420   :  { %v15671_v63 = vpop.f32.mrf.mxu0 }
 0x421   :  { %v15673_v6 = vpop.f32.mrf.mxu1 }
 0x424   :  { %v13181_v23 = vpop.f32.mrf.mxu0 }
 0x425   :  { %v4349_v36 = vadd.f32 %v13181_v23, %v4250_v44  ;;  %v13223_v53 = vpop.f32.mrf.mxu1 }
 0x426   :  { %v15675_v4 = vpop.f32.mrf.mxu0 }
 0x427   :  { %v4448_v32 = vadd.f32 %v13195_v46, %v4349_v36  ;;  %v15679_v16 = vpop.f32.mrf.mxu1 }
 0x429   :  { %v13184_v56 = vpop.f32.mrf.mxu0 }
 0x42a   :  { %v4363_v40 = vadd.f32 %v13184_v56, %v4262_v1  ;;  %v13226_v3 = vpop.f32.mrf.mxu1 }
 0x42b   :  { %v15677_v47 = vpop.f32.mrf.mxu0 }
 0x42c   :  { %v4464_v22 = vadd.f32 %v13198_v61, %v4363_v40  ;;  %v15688_v10 = vpop.f32.mrf.mxu1 }
 0x42d   :  { %v13209_v17 = vpop.f32.mrf.mxu0 }
 0x42e   :  { %v4553_v20 = vadd.f32 %v13209_v17, %v4448_v32 }
 0x42f   :  { %v15681_v57 = vpop.f32.mrf.mxu0 }
 0x430   :  { %v4646_v51 = vadd.f32 %v13223_v53, %v4553_v20 }
 0x431   :  { %v13212_v27 = vpop.f32.mrf.mxu0 }
 0x432   :  { %v15684_v60 = vadd.f32 %v4646_v51, %v17070_v55  ;;  %v4565_v49 = vadd.f32 %v13212_v27, %v4464_v22 }
 0x433   :  { %v15686_v19 = vpop.f32.mrf.mxu0 }
 0x434   :  { %v4658_v58 = vadd.f32 %v13226_v3, %v4565_v49 }
 0x436   :  { %v15691_v48 = vadd.f32 %v4658_v58, %v17071_v21  ;;  %v13237_v15 = vpop.f32.mrf.mxu0 }
 0x437   :  { %v13251_v46 = vpop.f32.mrf.mxu1 }
 0x438   :  { %v4752_v44 = vpop.f32.mrf.mxu0  ;;  %v4880_v22 = vadd.f32 %v13251_v46, %v13237_v15 }
 0x439   :  { %v4873_v13 = vpop.f32.mrf.mxu1 }
 0x43a   :  { %v4874_v20 = vadd.f32 %v4873_v13, %v4752_v44 }
 0x43c   :  { %v13240_v1 = vpop.f32.mrf.mxu0 }
 0x43d   :  { %v13254_v61 = vpop.f32.mrf.mxu1 }
 0x43e   :  { %v4772_v23 = vpop.f32.mrf.mxu0  ;;  %v4892_v55 = vadd.f32 %v13254_v61, %v13240_v1 }
 0x43f   :  { %v4885_v36 = vpop.f32.mrf.mxu1 }
 0x440   :  { %v4886_v21 = vadd.f32 %v4885_v36, %v4772_v23 }
 0x442   :  { %v13265_v32 = vpop.f32.mrf.mxu0 }
 0x443   :  { %v13279_v53 = vpop.f32.mrf.mxu1  ;;  %v4979_v51 = vadd.f32 %v13265_v32, %v4880_v22 }
 0x444   :  { %v4971_v56 = vpop.f32.mrf.mxu0 }
 0x445   :  { %v5069_v40 = vpop.f32.mrf.mxu1  ;;  %v4972_v49 = vadd.f32 %v4971_v56, %v4874_v20  ;;  %v5078_v35 = vadd.f32 %v13279_v53, %v4979_v51 }
 0x447   :  { %v5070_v37 = vadd.f32 %v5069_v40, %v4972_v49 }
 0x448   :  { %v13268_v17 = vpop.f32.mrf.mxu0 }
 0x449   :  { %v13282_v3 = vpop.f32.mrf.mxu1  ;;  %v4993_v45 = vadd.f32 %v13268_v17, %v4892_v55 }
 0x44a   :  { %v4985_v27 = vpop.f32.mrf.mxu0 }
 0x44b   :  { %v5085_v58 = vpop.f32.mrf.mxu1  ;;  %v4986_v41 = vadd.f32 %v4985_v27, %v4886_v21  ;;  %v5094_v43 = vadd.f32 %v13282_v3, %v4993_v45 }
 0x44d   :  { %v5086_v13 = vadd.f32 %v5085_v58, %v4986_v41 }
 0x44e   :  { %v13293_v24 = vpop.f32.mrf.mxu0 }
 0x44f   :  { %v5183_v8 = vadd.f32 %v13293_v24, %v5078_v35  ;;  %v13307_v54 = vpop.f32.mrf.mxu1 }
 0x450   :  { %v5176_v42 = vpop.f32.mrf.mxu0 }
 0x451   :  { %v5276_v39 = vadd.f32 %v13307_v54, %v5183_v8  ;;  %v5177_v15 = vadd.f32 %v5176_v42, %v5070_v37  ;;  %v5269_v46 = vpop.f32.mrf.mxu1 }
 0x452   :  { %v13296_v44 = vpop.f32.mrf.mxu0 }
 0x453   :  { %v5300_v32 = vsel %vm260_vm1, %v5276_v39, 0  ;;  %v5270_v1 = vadd.f32 %v5269_v46, %v5177_v15  ;;  %v5195_v61 = vadd.f32 %v13296_v44, %v5094_v43  ;;  %v13310_v56 = vpop.f32.mrf.mxu1 }
 0x454   :  { %v15694_v23 = vand.u32 4294901760, %v5300_v32  ;;  %v5188_v36 = vpop.f32.mrf.mxu0 }
 0x455   :  { %v5297_v53 = vsel %vm260_vm1, %v5270_v1, 0  ;;  %v5288_v40 = vadd.f32 %v13310_v56, %v5195_v61  ;;  %v5189_v35 = vadd.f32 %v5188_v36, %v5086_v13  ;;  %v5281_v8 = vpop.f32.mrf.mxu1  ;;  %v17080_v56 = vld [vmem:[#allocation53_spill] sm:$0xff]  ;;  %v17081_v36 = vld [vmem:[#allocation55_spill] sm:$0xff] }
 0x456   :  { %v5388_v24 = vsub.f32 %v5300_v32, %v15694_v23  ;;  %v15698_v45 = vand.u32 4294901760, %v5297_v53  ;;  %v17079_v32 = vld [vmem:[#allocation49_spill] sm:$0xff] }
 0x457   :  { %v5306_v37 = vsel %vm260_vm1, %v5288_v40, 0  ;;  %v5282_v41 = vadd.f32 %v5281_v8, %v5189_v35 }
 0x458   :  { %v5389_v42 = vand.u32 4294901760, %v5388_v24  ;;  %v5378_v39 = vsub.f32 %v5297_v53, %v15698_v45  ;;  %v15702_v43 = vand.u32 4294901760, %v5306_v37  ;;  %13333 = vmatprep.mubr.f32.mxu1 %v15698_v45 }
 0x459   :  { %v5303_v54 = vsel %vm260_vm1, %v5282_v41, 0  ;;  %13334 = vmatmul.mubr.f32.vlgmr.msra.gmra.mxu1 %v15694_v23 }
 0x45a   :  { %v5408_v22 = vsub.f32 %v5306_v37, %v15702_v43  ;;  %v15708_v17 = vand.u32 4294901760, %v5303_v54  ;;  %13354 = vmatpush3.msra.mxu1 %v15613_v18  ;;  %v5379_v20 = vand.u32 4294901760, %v5378_v39  ;;  %v5390_v51 = vsub.f32 %v5388_v24, %v5389_v42  ;;  %v17083_v37 = vld [vmem:[#allocation54_spill] sm:$0xff] }
 0x45b   :  { %13355 = vmatprep.subr.mxu1 %v15618_v29 }
 0x45c   :  { %v5398_v3 = vsub.f32 %v5303_v54, %v15708_v17  ;;  %13336 = vmatprep.mubr.f32.mxu1 %v15708_v17  ;;  %13356 = vmatpush3.msra.mxu1 %v15618_v29  ;;  %v5380_v27 = vsub.f32 %v5378_v39, %v5379_v20  ;;  %v5409_v55 = vand.u32 4294901760, %v5408_v22  ;;  %v5391_v21 = vand.u32 4294901760, %v5390_v51  ;;  %v17085_v54 = vld [vmem:[#allocation58_spill] sm:$0xff] }
 0x45d   :  { %13337 = vmatmul.mubr.f32.gmra.mxu1 %v15702_v43  ;;  %13357 = vmatprep.subr.mxu1 %v15628_v50  ;;  %v17086_v51 = vld [vmem:[#allocation90_spill] sm:$0xff] }
 0x45e   :  { %13358 = vmatpush3.msra.mxu1 %v15628_v50  ;;  %13361 = vmatprep.mubr.f32.mxu1 %v5379_v20  ;;  %v5381_v49 = vand.u32 4294901760, %v5380_v27  ;;  %v5399_v58 = vand.u32 4294901760, %v5398_v3  ;;  %v5410_v46 = vsub.f32 %v5408_v22, %v5409_v55 }
 0x45f   :  { %13359 = vmatprep.subr.mxu1 %v15640_v26 }
 0x460   :  { %13319 = vmatprep.mubr.f32.mxu0 %v5381_v49  ;;  %13360 = vmatpush3.msra.mxu1 %v15640_v26  ;;  %v5400_v15 = vsub.f32 %v5398_v3, %v5399_v58  ;;  %v5411_v13 = vand.u32 4294901760, %v5410_v46  ;;  %v17090_v46 = vld [vmem:[#allocation94_spill] sm:$0xff] }
 0x461   :  { %13320 = vmatmul.mubr.f32.vlgmr.msra.gmra.mxu0 %v5391_v21  ;;  %13362 = vmatmul.mubr.f32.vlgmr.msra.gmra.mxu1 %v5389_v42 }
 0x462   :  { %13381 = vmatprep.subr.mxu1 %v15613_v18  ;;  %13340 = vmatpush3.msra.mxu0 %v15616_v25  ;;  %v5401_v44 = vand.u32 4294901760, %v5400_v15  ;;  %v17073_v25 = vld [vmem:[#allocation26_spill] sm:$0xff] }
 0x463   :  { %13364 = vmatprep.mubr.f32.mxu1 %v5399_v58  ;;  %13382 = vmatpush3.msra.mxu1 %v15613_v18  ;;  %v17072_v18 = vld [vmem:[#allocation12_spill] sm:$0xff]  ;;  %v17089_v58 = vld [vmem:[#allocation57_spill] sm:$0xff] }
 0x464   :  { %13341 = vmatprep.subr.mxu0 %v15626_v59  ;;  %13383 = vmatprep.subr.mxu1 %v15618_v29 }
 0x465   :  { %13322 = vmatprep.mubr.f32.mxu0 %v5401_v44  ;;  %13342 = vmatpush3.msra.mxu0 %v15626_v59 }
 0x466   :  { %13384 = vmatpush3.msra.mxu1 %v15618_v29  ;;  %13323 = vmatmul.mubr.f32.gmra.mxu0 %v5411_v13  ;;  %v17074_v29 = vld [vmem:[#allocation16_spill] sm:$0xff]  ;;  %v4244_v13 = vadd.f32 %v15663_v30, %v15667_v0  ;;  %v17098_v0 = vld [vmem:[#allocation95_spill] sm:$0xff] }
 0x467   :  { %13343 = vmatprep.subr.mxu0 %v15638_v11  ;;  %13365 = vmatmul.mubr.f32.gmra.mxu1 %v5409_v55  ;;  %v17088_v55 = vld [vmem:[#allocation59_spill] sm:$0xff] }
 0x468   :  { %13385 = vmatprep.subr.mxu1 %v15628_v50  ;;  %13344 = vmatpush3.msra.mxu0 %v15638_v11 }
 0x469   :  { %13347 = vmatprep.mubr.f32.mxu0 %v5378_v39  ;;  %13386 = vmatpush3.msra.mxu1 %v15628_v50  ;;  %v17076_v50 = vld [vmem:[#allocation52_spill] sm:$0xff] }
 0x46a   :  { %13389 = vmatprep.mubr.f32.mxu1 %v15698_v45  ;;  %13345 = vmatprep.subr.mxu0 %v15650_v38  ;;  %v17084_v39 = vld [vmem:[#allocation56_spill] sm:$0xff] }
 0x46b   :  { %13387 = vmatprep.subr.mxu1 %v15640_v26  ;;  %13346 = vmatpush3.msra.mxu0 %v15650_v38  ;;  %v17078_v38 = vld [vmem:[#allocation14_spill] sm:$0xff] }
 0x46c   :  { %13388 = vmatpush3.msra.mxu1 %v15640_v26  ;;  %13348 = vmatmul.mubr.f32.vlgmr.msra.gmra.mxu0 %v5388_v24 }
 0x46d   :  { %13367 = vmatprep.subr.mxu0 %v15623_v52  ;;  %13390 = vmatmul.mubr.f32.vlgmr.msra.gmra.mxu1 %v15694_v23 }
 0x46e   :  { %13350 = vmatprep.mubr.f32.mxu0 %v5398_v3  ;;  %13368 = vmatpush3.msra.mxu0 %v15623_v52  ;;  %v17075_v52 = vld [vmem:[#allocation20_spill] sm:$0xff] }
 0x46f   :  { %13392 = vmatprep.mubr.f32.mxu1 %v15708_v17  ;;  %13369 = vmatprep.subr.mxu0 %v15635_v12  ;;  %v1100_v59 = vadd.f32 %v17075_v52, %v17074_v29  ;;  %v17087_v3 = vld [vmem:[#allocation88_spill] sm:$0xff] }
 0x470   :  { %13370 = vmatpush3.msra.mxu0 %v15635_v12  ;;  %v2983_v27 = vadd.f32 %v17087_v3, %v17086_v51  ;;  %v17091_v29 = vld [vmem:[#allocation60_spill] sm:$0xff] }
 0x471   :  { %13351 = vmatmul.mubr.f32.gmra.mxu0 %v5408_v22  ;;  %13371 = vmatprep.subr.mxu0 %v15647_v14  ;;  %v1198_v12 = vadd.f32 %v17076_v50, %v1100_v59  ;;  %v17092_v59 = vld [vmem:[#allocation62_spill] sm:$0xff] }
 0x472   :  { %13393 = vmatmul.mubr.f32.gmra.mxu1 %v15702_v43  ;;  %13372 = vmatpush3.msra.mxu0 %v15647_v14  ;;  %v17077_v14 = vld [vmem:[#allocation50_spill] sm:$0xff]  ;;  %v3081_v44 = vadd.f32 %v17090_v46, %v2983_v27 }
 0x473   :  { %13375 = vmatprep.mubr.f32.mxu0 %v15698_v45  ;;  %13373 = vmatprep.subr.mxu0 %v15657_v31  ;;  %v1296_v1 = vadd.f32 %v17079_v32, %v1198_v12  ;;  %v17082_v45 = vld [vmem:[#allocation51_spill] sm:$0xff]  ;;  %v4342_v12 = vadd.f32 %v15675_v4, %v4244_v13  ;;  %v4256_v4 = vadd.f32 %v15665_v62, %v15671_v63  ;;  %v17102_v13 = vld [vmem:[#allocation96_spill] sm:$0xff] }
 0x474   :  { %13374 = vmatpush3.msra.mxu0 %v15657_v31  ;;  %13417 = vmatprep.mubr.msk.f32.mxu1 %vm260_vm1, %v17072_v18  ;;  %v1112_v31 = vadd.f32 %v17078_v38, %v17077_v14  ;;  %v17093_v38 = vld [vmem:[#allocation92_spill] sm:$0xff] }
 0x475   :  { %13376 = vmatmul.mubr.f32.vlgmr.msra.gmra.mxu0 %v15694_v23  ;;  %v1403_v53 = vadd.f32 %v17081_v36, %v1296_v1  ;;  %v17095_v1 = vld [vmem:[#allocation91_spill] sm:$0xff]  ;;  %v17096_v36 = vld [vmem:[#allocation61_spill] sm:$0xff] }
 0x476   :  { %13378 = vmatprep.mubr.f32.mxu0 %v15708_v17  ;;  %v1212_v23 = vadd.f32 %v17080_v56, %v1112_v31  ;;  %v17094_v31 = vld [vmem:[#allocation89_spill] sm:$0xff]  ;;  %v3179_v56 = vadd.f32 %v17095_v1, %v3081_v44 }
 0x477   :  { %v1496_v41 = vadd.f32 %v17083_v37, %v1403_v53  ;;  %v2995_v32 = vadd.f32 %v17094_v31, %v17093_v38  ;;  %v17106_v38 = vld [vmem:[#allocation98_spill] sm:$0xff] }
 0x478   :  { %v1312_v8 = vadd.f32 %v17082_v45, %v1212_v23  ;;  %v17097_v45 = vld [vmem:[#allocation63_spill] sm:$0xff] }
 0x479   :  { %13379 = vmatmul.mubr.f32.gmra.mxu0 %v15702_v43  ;;  %v1605_v22 = vadd.f32 %v17085_v54, %v1496_v41  ;;  %v3095_v41 = vadd.f32 %v17098_v0, %v2995_v32  ;;  %v4440_v54 = vadd.f32 %v15669_v5, %v4342_v12  ;;  %v17104_v5 = vld [vmem:[#allocation65_spill] sm:$0xff]  ;;  %v17105_v12 = vld [vmem:[#allocation68_spill] sm:$0xff] }
 0x47a   :  { %13403 = vmatprep.mubr.f32.mxu0 %v17073_v25  ;;  %v1415_v43 = vadd.f32 %v17084_v39, %v1312_v8  ;;  %v17099_v39 = vld [vmem:[#allocation97_spill] sm:$0xff] }
 0x47b   :  { %v1726_v49 = vadd.f32 %v17088_v55, %v1605_v22  ;;  %v17100_v22 = vld [vmem:[#allocation64_spill] sm:$0xff]  ;;  %v17101_v55 = vld [vmem:[#allocation66_spill] sm:$0xff] }
 0x47c   :  { %v1508_v21 = vadd.f32 %v17089_v58, %v1415_v43  ;;  %v3286_v43 = vadd.f32 %v17099_v39, %v3179_v56  ;;  %v4356_v58 = vadd.f32 %v15677_v47, %v4256_v4 }
 0x47d   :  { %v1824_v50 = vadd.f32 %v17092_v59, %v1726_v49 }
 0x47e   :  { %v1625_v52 = vadd.f32 %v17091_v29, %v1508_v21  ;;  %v3379_v29 = vadd.f32 %v17102_v13, %v3286_v43  ;;  %v4456_v31 = vadd.f32 %v15673_v6, %v4356_v58  ;;  %v11723_v6 = vld [vmem:[%s16842_s2] ss:$0 sm:$0xff] }
 0x47f   :  { %v1922_v8 = vadd.f32 %v17097_v45, %v1824_v50 }
 0x480   :  { %v1738_v53 = vadd.f32 %v17096_v36, %v1625_v52  ;;  %v17103_v52 = vld [vmem:[#allocation93_spill] sm:$0xff] }
 0x481   :  { %v2029_v49 = vadd.f32 %v17101_v55, %v1922_v8  ;;  %v3195_v62 = vadd.f32 %v17103_v52, %v3095_v41  ;;  %v17107_v36 = vld [vmem:[#allocation69_spill] sm:$0xff] }
 0x482   :  { %v1838_v51 = vadd.f32 %v17100_v22, %v1738_v53  ;;  %v17109_v22 = vld [vmem:[#allocation71_spill] sm:$0xff] }
 0x483   :  { %v3298_v47 = vadd.f32 %v17106_v38, %v3195_v62 }
 0x484   :  { %v1938_v59 = vadd.f32 %v17104_v5, %v1838_v51 }
 0x486   :  { %v2041_v53 = vadd.f32 %v17107_v36, %v1938_v59 }
 0x519   :  { %v13335_v11 = vpop.f32.mrf.mxu1 }
 0x51b   :  { %v5504_v26 = vpop.f32.mrf.mxu1 }
 0x51d   :  { %v13338_v61 = vpop.f32.mrf.mxu1 }
 0x51f   :  { %v5516_v40 = vpop.f32.mrf.mxu1 }
 0x521   :  { %v13321_v35 = vpop.f32.mrf.mxu0  ;;  %v13363_v24 = vpop.f32.mrf.mxu1 }
 0x522   :  { %v5511_v37 = vadd.f32 %v13335_v11, %v13321_v35  ;;  %v4547_v11 = vadd.f32 %v15681_v57, %v4440_v54 }
 0x523   :  { %v5383_v42 = vpop.f32.mrf.mxu0  ;;  %v5700_v17 = vpop.f32.mrf.mxu1 }
 0x524   :  { %v5505_v3 = vadd.f32 %v5504_v26, %v5383_v42  ;;  %v4640_v57 = vadd.f32 %v15679_v16, %v4547_v11 }
 0x526   :  { %v13324_v20 = vpop.f32.mrf.mxu0 }
 0x527   :  { %v13366_v25 = vpop.f32.mrf.mxu1  ;;  %v5523_v46 = vadd.f32 %v13338_v61, %v13324_v20 }
 0x528   :  { %v5403_v15 = vpop.f32.mrf.mxu0 }
 0x529   :  { %v5716_v23 = vpop.f32.mrf.mxu1  ;;  %v5517_v50 = vadd.f32 %v5516_v40, %v5403_v15  ;;  %v4559_v40 = vadd.f32 %v15686_v19, %v4456_v31  ;;  %v2134_v19 = vadd.f32 %v17109_v22, %v2041_v53  ;;  %v6562_v22 = vld [vmem:[#allocation7 + $0x10] sm:$0xff] }
 0x52b   :  { %v4652_v51 = vadd.f32 %v15688_v10, %v4559_v40  ;;  %v17112_v40 = vld [vmem:[#allocation32_spill] sm:$0xff] }
 0x52c   :  { %v13349_v14 = vpop.f32.mrf.mxu0 }
 0x52d   :  { %v5610_v27 = vadd.f32 %v13349_v14, %v5511_v37  ;;  %v13391_v35 = vpop.f32.mrf.mxu1  ;;  %v2122_v14 = vadd.f32 %v17105_v12, %v2029_v49 }
 0x52e   :  { %v5602_v30 = vpop.f32.mrf.mxu0 }
 0x52f   :  { %v5603_v44 = vadd.f32 %v5602_v30, %v5505_v3  ;;  %v5709_v42 = vadd.f32 %v13363_v24, %v5610_v27  ;;  %v5900_v61 = vpop.f32.mrf.mxu1  ;;  %v3400_v45 = vadd.f32 %v3379_v29, %v2122_v14  ;;  %v17108_v30 = vld [vmem:[#allocation99_spill] sm:$0xff] }
 0x530   :  { %v3391_v0 = vadd.f32 %v17108_v30, %v3298_v47  ;;  %v17116_v30 = vld [vmem:[#allocation19_spill] sm:$0xff] }
 0x531   :  { %v13352_v21 = vpop.f32.mrf.mxu0  ;;  %v5701_v56 = vadd.f32 %v5700_v17, %v5603_v44  ;;  %v4661_v41 = vadd.f32 %v4640_v57, %v3400_v45  ;;  %v17111_v45 = vld [vmem:[#allocation31_spill] sm:$0xff] }
 0x532   :  { %v5624_v26 = vadd.f32 %v13352_v21, %v5523_v46  ;;  %v13394_v16 = vpop.f32.mrf.mxu1  ;;  %v3402_v58 = vadd.f32 %v3391_v0, %v2134_v19  ;;  %v17117_v0 = vld [vmem:[#allocation24_spill] sm:$0xff] }
 0x533   :  { %v5616_v63 = vpop.f32.mrf.mxu0 }
 0x534   :  { %v5617_v32 = vadd.f32 %v5616_v63, %v5517_v50  ;;  %v5725_v37 = vadd.f32 %v13366_v25, %v5624_v26  ;;  %v5912_v11 = vpop.f32.mrf.mxu1  ;;  %v4663_v44 = vadd.f32 %v4652_v51, %v3402_v58  ;;  %v15957_v51 = vand.u32 4294901760, %v6562_v22 }
 0x535   :  { %v13377_v20 = vpop.f32.mrf.mxu0 }
 0x536   :  { %v5814_v1 = vadd.f32 %v13377_v20, %v5709_v42  ;;  %v5717_v54 = vadd.f32 %v5716_v23, %v5617_v32 }
 0x537   :  { %v5807_v15 = vpop.f32.mrf.mxu0 }
 0x538   :  { %v5907_v24 = vadd.f32 %v13391_v35, %v5814_v1  ;;  %v5808_v8 = vadd.f32 %v5807_v15, %v5701_v56  ;;  %v17110_v1 = vld [vmem:[#allocation27_spill] sm:$0xff] }
 0x539   :  { %v13380_v39 = vpop.f32.mrf.mxu0 }
 0x53a   :  { %v5923_v17 = vadd.f32 %v5907_v24, %v15684_v60  ;;  %v5901_v43 = vadd.f32 %v5900_v61, %v5808_v8  ;;  %v5826_v4 = vadd.f32 %v13380_v39, %v5725_v37  ;;  %v17113_v24 = vld [vmem:[#allocation13_spill] sm:$0xff]  ;;  %v17114_v8 = vld [vmem:[#allocation15_spill] sm:$0xff]  ;;  %v17121_v39 = vld [vmem:[#allocation22_spill] sm:$0xff] }
 0x53b   :  { %v5819_v3 = vpop.f32.mrf.mxu0  ;;  %v17115_v37 = vld [vmem:[#allocation17_spill] sm:$0xff] }
 0x53c   :  { %v5934_v25 = vadd.f32 %v11723_v6, %v5923_v17  ;;  %v5922_v27 = vadd.f32 %v5901_v43, %v4661_v41  ;;  %v5919_v55 = vadd.f32 %v13394_v16, %v5826_v4  ;;  %v5820_v49 = vadd.f32 %v5819_v3, %v5717_v54  ;;  %v17118_v41 = vld [vmem:[#allocation25_spill] sm:$0xff]  ;;  %v17119_v16 = vld [vmem:[#allocation28_spill] sm:$0xff]  ;;  %v17123_v43 = vld [vmem:[#allocation30_spill] sm:$0xff] }
 0x53d   :  { %v17122_v17 = vld [vmem:[#allocation29_spill] sm:$0xff]  ;;  %v6563_v4 = vld [vmem:[#allocation7 + $0x18] sm:$0xff] }
 0x53e   :  { %v15806_v35 = vmax.f32 %v5934_v25, 0.0  ;;  %v5933_v21 = vadd.f32 %v11723_v6, %v5922_v27  ;;  %v5925_v46 = vadd.f32 %v5919_v55, %v15691_v48  ;;  %v5913_v60 = vadd.f32 %v5912_v11, %v5820_v49  ;;  %v6560_v55 = vld [vmem:[#allocation7] sm:$0xff] }
 0x53f   :  { %v15952_v54 = vand.u32 4294901760, %v6563_v4  ;;  %v15965_v25 = vsub.f32 %v6562_v22, %v15957_v51 }
 0x540   :  { %v15809_v13 = vmax.f32 %v5933_v21, 0.0  ;;  %v5936_v23 = vadd.f32 %v11723_v6, %v5925_v46  ;;  %v15812_v29 = vand.u32 4294901760, %v15806_v35  ;;  %v5924_v10 = vadd.f32 %v5913_v60, %v4663_v44 }
 0x541   :  { %v15955_v19 = vsub.f32 %v6563_v4, %v15952_v54  ;;  %v15974_v58 = vand.u32 4294901760, %v15965_v25  ;;  %v15979_v21 = vand.u32 4294901760, %v6560_v55 }
 0x542   :  { %v15814_v52 = vmax.f32 %v5936_v23, 0.0  ;;  %v5935_v62 = vadd.f32 %v11723_v6, %v5924_v10  ;;  %v15817_v63 = vand.u32 4294901760, %v15809_v13  ;;  %v15824_v48 = vsub.f32 %v15806_v35, %v15812_v29  ;;  %v17120_v6 = vld [vmem:[#allocation21_spill] sm:$0xff] }
 0x543   :  { %v15962_v3 = vand.u32 4294901760, %v15955_v19  ;;  %v6720_v60 = vsub.f32 %v15965_v25, %v15974_v58  ;;  %v15989_v23 = vsub.f32 %v6560_v55, %v15979_v21 }
 0x544   :  { %v15820_v5 = vand.u32 4294901760, %v15814_v52  ;;  %v15826_v59 = vmax.f32 %v5935_v62, 0.0  ;;  %v15839_v42 = vsub.f32 %v15809_v13, %v15817_v63  ;;  %v15845_v14 = vand.u32 4294901760, %v15824_v48 }
 0x545   :  { %v6713_v49 = vsub.f32 %v15955_v19, %v15962_v3  ;;  %v6721_v10 = vand.u32 4294901760, %v6720_v60 }
 0x546   :  { %v15830_v50 = vsub.f32 %v15814_v52, %v15820_v5  ;;  %13395 = vmatprep.subr.mxu0 %v15820_v5  ;;  %v15834_v26 = vand.u32 4294901760, %v15826_v59  ;;  %v15860_v31 = vand.u32 4294901760, %v15839_v42  ;;  %v6097_v32 = vsub.f32 %v15824_v48, %v15845_v14 }
 0x547   :  { %13396 = vmatpush3.msra.mxu0 %v15820_v5  ;;  %v6714_v46 = vand.u32 4294901760, %v6713_v49 }
 0x548   :  { %v15842_v12 = vand.u32 4294901760, %v15830_v50  ;;  %v15849_v38 = vsub.f32 %v15826_v59, %v15834_v26  ;;  %13397 = vmatprep.subr.mxu0 %v15834_v26  ;;  %v6104_v36 = vsub.f32 %v15839_v42, %v15860_v31  ;;  %v15882_v53 = vand.u32 4294901760, %v6097_v32 }
 0x549   :  { %13398 = vmatpush3.msra.mxu0 %v15834_v26 }
 0x54a   :  { %v6083_v47 = vsub.f32 %v15830_v50, %v15842_v12  ;;  %v15856_v57 = vand.u32 4294901760, %v15849_v38  ;;  %13399 = vmatprep.subr.mxu0 %v15812_v29  ;;  %v15890_v15 = vand.u32 4294901760, %v6104_v36 }
 0x54b   :  { %13400 = vmatpush3.msra.mxu0 %v15812_v29 }
 0x54c   :  { %v15863_v61 = vand.u32 4294901760, %v6083_v47  ;;  %13401 = vmatprep.subr.mxu0 %v15817_v63  ;;  %v6090_v20 = vsub.f32 %v15849_v38, %v15856_v57  ;;  %v15996_v47 = vand.u32 4294901760, %v15989_v23 }
 0x54d   :  { %13402 = vmatpush3.msra.mxu0 %v15817_v63 }
 0x54e   :  { %13409 = vmatprep.subr.mxu1 %v15863_v61  ;;  %13423 = vmatprep.subr.mxu0 %v15830_v50  ;;  %v15874_v56 = vand.u32 4294901760, %v6090_v20  ;;  %v6734_v32 = vsub.f32 %v15989_v23, %v15996_v47 }
 0x54f   :  { %13404 = vmatmul.mubr.f32.vlgmr.msra.gmra.mxu0 %v17110_v1  ;;  %13410 = vmatpush3.msra.mxu1 %v15863_v61 }
 0x550   :  { %13424 = vmatpush3.msra.mxu0 %v15830_v50  ;;  %13411 = vmatprep.subr.mxu1 %v15874_v56  ;;  %v6735_v1 = vand.u32 4294901760, %v6734_v32 }
 0x551   :  { %13425 = vmatprep.subr.mxu0 %v15849_v38  ;;  %13412 = vmatpush3.msra.mxu1 %v15874_v56 }
 0x552   :  { %13426 = vmatpush3.msra.mxu0 %v15849_v38  ;;  %13406 = vmatprep.mubr.f32.mxu0 %v17111_v45 }
 0x553   :  { %13413 = vmatprep.subr.mxu1 %v15882_v53  ;;  %13427 = vmatprep.subr.mxu0 %v15824_v48 }
 0x554   :  { %13407 = vmatmul.mubr.f32.gmra.mxu0 %v17112_v40  ;;  %13414 = vmatpush3.msra.mxu1 %v15882_v53 }
 0x555   :  { %13428 = vmatpush3.msra.mxu0 %v15824_v48  ;;  %13415 = vmatprep.subr.mxu1 %v15890_v15 }
 0x556   :  { %13429 = vmatprep.subr.mxu0 %v15839_v42  ;;  %13416 = vmatpush3.msra.mxu1 %v15890_v15 }
 0x557   :  { %13430 = vmatpush3.msra.mxu0 %v15839_v42  ;;  %13418 = vmatmul.mubr.msk.f32.vlgmr.msra.gmra.mxu1 %vm260_vm1, %v17113_v24 }
 0x558   :  { %13431 = vmatprep.mubr.f32.mxu0 %v17114_v8  ;;  %13437 = vmatprep.subr.mxu1 %v15820_v5 }
 0x559   :  { %13451 = vmatprep.subr.mxu0 %v15842_v12  ;;  %13432 = vmatmul.mubr.f32.vlgmr.msra.gmra.mxu0 %v17115_v37 }
 0x55a   :  { %13438 = vmatpush3.msra.mxu1 %v15820_v5  ;;  %13452 = vmatpush3.msra.mxu0 %v15842_v12 }
 0x55b   :  { %13439 = vmatprep.subr.mxu1 %v15834_v26  ;;  %13453 = vmatprep.subr.mxu0 %v15856_v57 }
 0x55c   :  { %13420 = vmatprep.mubr.msk.f32.mxu1 %vm260_vm1, %v17116_v30  ;;  %13440 = vmatpush3.msra.mxu1 %v15834_v26 }
 0x55d   :  { %13454 = vmatpush3.msra.mxu0 %v15856_v57  ;;  %13421 = vmatmul.mubr.msk.f32.gmra.mxu1 %vm260_vm1, %v17117_v0 }
 0x55e   :  { %13441 = vmatprep.subr.mxu1 %v15812_v29  ;;  %13455 = vmatprep.subr.mxu0 %v15845_v14 }
 0x55f   :  { %13434 = vmatprep.mubr.f32.mxu0 %v17118_v41  ;;  %13442 = vmatpush3.msra.mxu1 %v15812_v29 }
 0x560   :  { %13456 = vmatpush3.msra.mxu0 %v15845_v14  ;;  %13443 = vmatprep.subr.mxu1 %v15817_v63 }
 0x561   :  { %13435 = vmatmul.mubr.f32.gmra.mxu0 %v17119_v16  ;;  %13457 = vmatprep.subr.mxu0 %v15860_v31 }
 0x562   :  { %13444 = vmatpush3.msra.mxu1 %v15817_v63  ;;  %13445 = vmatprep.mubr.f32.mxu1 %v17120_v6 }
 0x563   :  { %13458 = vmatpush3.msra.mxu0 %v15860_v31  ;;  %13446 = vmatmul.mubr.f32.vlgmr.msra.gmra.mxu1 %v17121_v39 }
 0x564   :  { %13465 = vmatprep.subr.mxu1 %v15820_v5  ;;  %13459 = vmatprep.mubr.msk.f32.mxu0 %vm260_vm1, %v17072_v18 }
 0x565   :  { %13466 = vmatpush3.msra.mxu1 %v15820_v5  ;;  %13460 = vmatmul.mubr.msk.f32.vlgmr.msra.gmra.mxu0 %vm260_vm1, %v17113_v24 }
 0x566   :  { %13467 = vmatprep.subr.mxu1 %v15834_v26  ;;  %13448 = vmatprep.mubr.f32.mxu1 %v17122_v17 }
 0x567   :  { %13468 = vmatpush3.msra.mxu1 %v15834_v26  ;;  %13462 = vmatprep.mubr.msk.f32.mxu0 %vm260_vm1, %v17116_v30 }
 0x568   :  { %13449 = vmatmul.mubr.f32.gmra.mxu1 %v17123_v43  ;;  %13469 = vmatprep.subr.mxu1 %v15812_v29 }
 0x569   :  { %13470 = vmatpush3.msra.mxu1 %v15812_v29  ;;  %13463 = vmatmul.mubr.msk.f32.gmra.mxu0 %vm260_vm1, %v17117_v0 }
 0x56a   :  { %13471 = vmatprep.subr.mxu1 %v15817_v63  ;;  %13473 = vmatprep.mubr.msk.f32.mxu1 %vm260_vm1, %v17072_v18  ;;  %v6561_v18 = vld [vmem:[#allocation7 + $0x8] sm:$0xff] }
 0x56b   :  { %13472 = vmatpush3.msra.mxu1 %v15817_v63  ;;  %13479 = vmatprep.subr.mxu0 %v15952_v54  ;;  %v15967_v27 = vand.u32 4294901760, %v6561_v18 }
 0x56c   :  { %13474 = vmatmul.mubr.msk.f32.vlgmr.msra.gmra.mxu1 %vm260_vm1, %v17113_v24  ;;  %13480 = vmatpush3.msra.mxu0 %v15952_v54 }
 0x56d   :  { %13476 = vmatprep.mubr.msk.f32.mxu1 %vm260_vm1, %v17116_v30  ;;  %13481 = vmatprep.subr.mxu0 %v15957_v51  ;;  %v15977_v11 = vsub.f32 %v6561_v18, %v15967_v27 }
 0x56e   :  { %13482 = vmatpush3.msra.mxu0 %v15957_v51  ;;  %13493 = vmatprep.subr.mxu1 %v6714_v46 }
 0x56f   :  { %13483 = vmatprep.subr.mxu0 %v15967_v27  ;;  %v15986_v44 = vand.u32 4294901760, %v15977_v11  ;;  %13494 = vmatpush3.msra.mxu1 %v6714_v46 }
 0x570   :  { %13477 = vmatmul.mubr.msk.f32.gmra.mxu1 %vm260_vm1, %v17117_v0  ;;  %13484 = vmatpush3.msra.mxu0 %v15967_v27 }
 0x571   :  { %13485 = vmatprep.subr.mxu0 %v15979_v21  ;;  %v6727_v62 = vsub.f32 %v15977_v11, %v15986_v44  ;;  %13495 = vmatprep.subr.mxu1 %v6721_v10 }
 0x572   :  { %13486 = vmatpush3.msra.mxu0 %v15979_v21  ;;  %13496 = vmatpush3.msra.mxu1 %v6721_v10 }
 0x573   :  { %13507 = vmatprep.subr.mxu0 %v15955_v19  ;;  %v6728_v20 = vand.u32 4294901760, %v6727_v62 }
 0x575   :  { %13497 = vmatprep.subr.mxu1 %v6728_v20 }
 0x576   :  { %13498 = vmatpush3.msra.mxu1 %v6728_v20 }
 0x577   :  { %13499 = vmatprep.subr.mxu1 %v6735_v1 }
 0x578   :  { %13500 = vmatpush3.msra.mxu1 %v6735_v1 }
 0x579   :  { %13521 = vmatprep.subr.mxu1 %v15952_v54 }
 0x60f   :  { %v13405_v36 = vpop.f32.mrf.mxu0 }
 0x611   :  { %v6021_v45 = vpop.f32.mrf.mxu0 }
 0x614   :  { %v13408_v40 = vpop.f32.mrf.mxu0 }
 0x616   :  { %v6041_v24 = vpop.f32.mrf.mxu0 }
 0x617   :  { %v13419_v8 = vpop.f32.mrf.mxu1 }
 0x618   :  { %v6149_v6 = vadd.f32 %v13419_v8, %v13405_v36 }
 0x619   :  { %v6142_v37 = vpop.f32.mrf.mxu1  ;;  %v13433_v30 = vpop.f32.mrf.mxu0 }
 0x61a   :  { %v6143_v17 = vadd.f32 %v6142_v37, %v6021_v45  ;;  %v6248_v22 = vadd.f32 %v13433_v30, %v6149_v6 }
 0x61b   :  { %v6240_v0 = vpop.f32.mrf.mxu0 }
 0x61c   :  { %v6241_v46 = vadd.f32 %v6240_v0, %v6143_v17 }
 0x61d   :  { %v13422_v41 = vpop.f32.mrf.mxu1 }
 0x61e   :  { %v6161_v18 = vadd.f32 %v13422_v41, %v13408_v40 }
 0x61f   :  { %v6154_v16 = vpop.f32.mrf.mxu1 }
 0x620   :  { %v6155_v60 = vadd.f32 %v6154_v16, %v6041_v24 }
 0x621   :  { %v13436_v39 = vpop.f32.mrf.mxu0 }
 0x622   :  { %v6262_v32 = vadd.f32 %v13436_v39, %v6161_v18 }
 0x623   :  { %v6254_v43 = vpop.f32.mrf.mxu0  ;;  %v13447_v4 = vpop.f32.mrf.mxu1 }
 0x624   :  { %v6347_v10 = vadd.f32 %v13447_v4, %v6248_v22  ;;  %v6255_v9 = vadd.f32 %v6254_v43, %v6155_v60 }
 0x625   :  { %v6338_v55 = vpop.f32.mrf.mxu1  ;;  %v13461_v49 = vpop.f32.mrf.mxu0 }
 0x626   :  { %v6339_v1 = vadd.f32 %v6338_v55, %v6241_v46  ;;  %v6452_v2 = vadd.f32 %v13461_v49, %v6347_v10 }
 0x627   :  { %v6445_v20 = vpop.f32.mrf.mxu0 }
 0x628   :  { %v13450_v62 = vpop.f32.mrf.mxu1  ;;  %v6446_v45 = vadd.f32 %v6445_v20, %v6339_v1  ;;  %v5944_v20 = vld [vmem:[#allocation7 + $0x50] sm:$0xff] }
 0x629   :  { %v13464_v28 = vpop.f32.mrf.mxu0  ;;  %v6363_v36 = vadd.f32 %v13450_v62, %v6262_v32 }
 0x62a   :  { %v6354_v33 = vpop.f32.mrf.mxu1 }
 0x62b   :  { %v6355_v37 = vadd.f32 %v6354_v33, %v6255_v9  ;;  %v6457_v30 = vpop.f32.mrf.mxu0  ;;  %v6464_v41 = vadd.f32 %v13464_v28, %v6363_v36 }
 0x62c   :  { %v13475_v8 = vpop.f32.mrf.mxu1 }
 0x62d   :  { %v6545_v7 = vadd.f32 %v13475_v8, %v6452_v2  ;;  %v6458_v39 = vadd.f32 %v6457_v30, %v6355_v37  ;;  %v5945_v2 = vld [vmem:[#allocation7 + $0x58] sm:$0xff]  ;;  %v5943_v8 = vld [vmem:[#allocation7 + $0x48] sm:$0xff]  ;;  %v16044_v30 = vand.u32 4294901760, %v5944_v20 }
 0x62e   :  { %v6538_v40 = vpop.f32.mrf.mxu1  ;;  %v16021_v46 = vand.u32 4294901760, %v5945_v2 }
 0x62f   :  { %v6568_v0 = vsel %vm260_vm1, %v6545_v7, 0  ;;  %v6539_v24 = vadd.f32 %v6538_v40, %v6446_v45 }
 0x630   :  { %v16003_v16 = vand.u32 4294901760, %v6568_v0  ;;  %v13478_v6 = vpop.f32.mrf.mxu1  ;;  %v16042_v37 = vsub.f32 %v5945_v2, %v16021_v46 }
 0x631   :  { %v6565_v17 = vsel %vm260_vm1, %v6539_v24, 0  ;;  %v6557_v4 = vadd.f32 %v13478_v6, %v6464_v41  ;;  %v16049_v24 = vand.u32 4294901760, %v5943_v8  ;;  %v5942_v6 = vld [vmem:[#allocation7 + $0x40] sm:$0xff] }
 0x632   :  { %v16007_v43 = vsub.f32 %v6568_v0, %v16003_v16  ;;  %v16009_v22 = vand.u32 4294901760, %v6565_v17  ;;  %v6550_v9 = vpop.f32.mrf.mxu1 }
 0x633   :  { %v6574_v33 = vsel %vm260_vm1, %v6557_v4, 0  ;;  %v6551_v28 = vadd.f32 %v6550_v9, %v6458_v39  ;;  %v16056_v4 = vand.u32 4294901760, %v16042_v37  ;;  %v16059_v9 = vsub.f32 %v5944_v20, %v16044_v30 }
 0x634   :  { %v6657_v7 = vand.u32 4294901760, %v16007_v43  ;;  %v16014_v18 = vsub.f32 %v6565_v17, %v16009_v22  ;;  %v16016_v55 = vand.u32 4294901760, %v6574_v33  ;;  %13501 = vmatprep.mubr.f32.mxu1 %v16009_v22 }
 0x635   :  { %v6571_v49 = vsel %vm260_vm1, %v6551_v28, 0  ;;  %13502 = vmatmul.mubr.f32.vlgmr.msra.gmra.mxu1 %v16003_v16  ;;  %v16067_v28 = vsub.f32 %v5943_v8, %v16049_v24 }
 0x636   :  { %v16024_v60 = vsub.f32 %v6574_v33, %v16016_v55  ;;  %v16026_v10 = vand.u32 4294901760, %v6571_v49  ;;  %13522 = vmatpush3.msra.mxu1 %v15952_v54  ;;  %v6647_v62 = vand.u32 4294901760, %v16014_v18  ;;  %v6658_v32 = vsub.f32 %v16007_v43, %v6657_v7 }
 0x637   :  { %13523 = vmatprep.subr.mxu1 %v15957_v51  ;;  %v16062_v33 = vand.u32 4294901760, %v5942_v6 }
 0x638   :  { %v16033_v1 = vsub.f32 %v6571_v49, %v16026_v10  ;;  %13524 = vmatpush3.msra.mxu1 %v15957_v51  ;;  %13504 = vmatprep.mubr.f32.mxu1 %v16026_v10  ;;  %v6648_v36 = vsub.f32 %v16014_v18, %v6647_v62  ;;  %v6677_v45 = vand.u32 4294901760, %v16024_v60  ;;  %v6659_v0 = vand.u32 4294901760, %v6658_v32 }
 0x639   :  { %13525 = vmatprep.subr.mxu1 %v15967_v27  ;;  %13505 = vmatmul.mubr.f32.gmra.mxu1 %v16016_v55  ;;  %v7194_v32 = vsel %vm260_vm1, %v15806_v35, 0 }
 0x63a   :  { %13526 = vmatpush3.msra.mxu1 %v15967_v27  ;;  %13529 = vmatprep.mubr.f32.mxu1 %v6647_v62  ;;  %v6649_v40 = vand.u32 4294901760, %v6648_v36  ;;  %v6667_v41 = vand.u32 4294901760, %v16033_v1  ;;  %v6678_v17 = vsub.f32 %v16024_v60, %v6677_v45 }
 0x63b   :  { %13527 = vmatprep.subr.mxu1 %v15979_v21 }
 0x63c   :  { %13528 = vmatpush3.msra.mxu1 %v15979_v21  ;;  %13487 = vmatprep.mubr.f32.mxu0 %v6649_v40  ;;  %v6668_v39 = vsub.f32 %v16033_v1, %v6667_v41  ;;  %v6679_v49 = vand.u32 4294901760, %v6678_v17  ;;  %v17128_v17 = vld [vmem:[#allocation45_spill] sm:$0xff] }
 0x63d   :  { %13549 = vmatprep.subr.mxu1 %v15952_v54  ;;  %13488 = vmatmul.mubr.f32.vlgmr.msra.gmra.mxu0 %v6659_v0 }
 0x63e   :  { %13508 = vmatpush3.msra.mxu0 %v15955_v19  ;;  %13530 = vmatmul.mubr.f32.vlgmr.msra.gmra.mxu1 %v6657_v7  ;;  %v6669_v2 = vand.u32 4294901760, %v6668_v39  ;;  %v7339_v19 = vsub.f32 %v16042_v37, %v16056_v4  ;;  %v16075_v7 = vand.u32 4294901760, %v16059_v9 }
 0x63f   :  { %13550 = vmatpush3.msra.mxu1 %v15952_v54  ;;  %13509 = vmatprep.subr.mxu0 %v15965_v25  ;;  %v16079_v54 = vsub.f32 %v5942_v6, %v16062_v33 }
 0x640   :  { %13532 = vmatprep.mubr.f32.mxu1 %v6667_v41  ;;  %13551 = vmatprep.subr.mxu1 %v15957_v51  ;;  %v7346_v62 = vsub.f32 %v16059_v9, %v16075_v7 }
 0x641   :  { %13510 = vmatpush3.msra.mxu0 %v15965_v25  ;;  %13552 = vmatpush3.msra.mxu1 %v15957_v51  ;;  %v16083_v25 = vand.u32 4294901760, %v16067_v28  ;;  %v7340_v51 = vand.u32 4294901760, %v7339_v19  ;;  %v16093_v20 = vand.u32 4294901760, %v16079_v54  ;;  %v17135_v19 = vld [vmem:[#allocation37_spill] sm:$0xff] }
 0x642   :  { %13490 = vmatprep.mubr.f32.mxu0 %v6669_v2  ;;  %13511 = vmatprep.subr.mxu0 %v15977_v11  ;;  %v17131_v2 = vld [vmem:[#allocation40_spill] sm:$0xff] }
 0x643   :  { %13553 = vmatprep.subr.mxu1 %v15967_v27  ;;  %13491 = vmatmul.mubr.f32.gmra.mxu0 %v6679_v49  ;;  %v17134_v49 = vld [vmem:[#allocation36_spill] sm:$0xff] }
 0x644   :  { %13512 = vmatpush3.msra.mxu0 %v15977_v11  ;;  %13533 = vmatmul.mubr.f32.gmra.mxu1 %v6677_v45  ;;  %v7347_v11 = vand.u32 4294901760, %v7346_v62  ;;  %v8434_v62 = vld [vmem:[#allocation7 + $0x38] sm:$0xff] }
 0x645   :  { %13554 = vmatpush3.msra.mxu1 %v15967_v27  ;;  %13513 = vmatprep.subr.mxu0 %v15989_v23  ;;  %v7353_v27 = vsub.f32 %v16067_v28, %v16083_v25 }
 0x646   :  { %13515 = vmatprep.mubr.f32.mxu0 %v16014_v18  ;;  %13555 = vmatprep.subr.mxu1 %v15979_v21  ;;  %v7191_v18 = vsel %vm260_vm1, %v15809_v13, 0 }
 0x647   :  { %13557 = vmatprep.mubr.f32.mxu1 %v16009_v22  ;;  %13514 = vmatpush3.msra.mxu0 %v15989_v23  ;;  %v7360_v23 = vsub.f32 %v16079_v54, %v16093_v20 }
 0x648   :  { %13556 = vmatpush3.msra.mxu1 %v15979_v21  ;;  %13535 = vmatprep.subr.mxu0 %v15962_v3  ;;  %v7354_v21 = vand.u32 4294901760, %v7353_v27  ;;  %v8433_v27 = vld [vmem:[#allocation7 + $0x30] sm:$0xff] }
 0x649   :  { %13577 = vmatprep.subr.mxu1 %v7340_v51  ;;  %13516 = vmatmul.mubr.f32.vlgmr.msra.gmra.mxu0 %v16007_v43  ;;  %v16113_v43 = vand.u32 4294901760, %v7191_v18  ;;  %v7361_v13 = vand.u32 4294901760, %v7360_v23  ;;  %v8432_v23 = vld [vmem:[#allocation7 + $0x28] sm:$0xff] }
 0x64a   :  { %13536 = vmatpush3.msra.mxu0 %v15962_v3  ;;  %13558 = vmatmul.mubr.f32.vlgmr.msra.gmra.mxu1 %v16003_v16  ;;  %v7197_v3 = vsel %vm260_vm1, %v15826_v59, 0  ;;  %v7200_v59 = vsel %vm260_vm1, %v15814_v52, 0 }
 0x64b   :  { %13578 = vmatpush3.msra.mxu1 %v7340_v51  ;;  %13518 = vmatprep.mubr.f32.mxu0 %v16033_v1  ;;  %v16119_v1 = vand.u32 4294901760, %v7194_v32  ;;  %v16125_v35 = vsub.f32 %v7191_v18, %v16113_v43  ;;  %v17139_v51 = vld [vmem:[#allocation42_spill] sm:$0xff]  ;;  %v16296_v18 = vand.u32 4294901760, %v8433_v27 }
 0x64c   :  { %13537 = vmatprep.subr.mxu0 %v15974_v58  ;;  %13560 = vmatprep.mubr.f32.mxu1 %v16026_v10 }
 0x64d   :  { %13579 = vmatprep.subr.mxu1 %v7347_v11  ;;  %13538 = vmatpush3.msra.mxu0 %v15974_v58  ;;  %v16128_v58 = vand.u32 4294901760, %v7197_v3 }
 0x64e   :  { %13580 = vmatpush3.msra.mxu1 %v7347_v11  ;;  %13539 = vmatprep.subr.mxu0 %v15986_v44 }
 0x64f   :  { %13581 = vmatprep.subr.mxu1 %v7354_v21  ;;  %13519 = vmatmul.mubr.f32.gmra.mxu0 %v16024_v60  ;;  %v16134_v60 = vsub.f32 %v7194_v32, %v16119_v1  ;;  %v16145_v52 = vsub.f32 %v7197_v3, %v16128_v58  ;;  %v16304_v32 = vsub.f32 %v8433_v27, %v16296_v18 }
 0x650   :  { %13540 = vmatpush3.msra.mxu0 %v15986_v44  ;;  %13561 = vmatmul.mubr.f32.gmra.mxu1 %v16016_v55  ;;  %v7273_v44 = vand.u32 4294901760, %v16125_v35 }
 0x651   :  { %13582 = vmatpush3.msra.mxu1 %v7354_v21  ;;  %13541 = vmatprep.subr.mxu0 %v15996_v47  ;;  %v7293_v8 = vand.u32 4294901760, %v16145_v52 }
 0x652   :  { %13543 = vmatprep.mubr.f32.mxu0 %v16009_v22  ;;  %13583 = vmatprep.subr.mxu1 %v7361_v13  ;;  %v16142_v22 = vand.u32 4294901760, %v7200_v59 }
 0x653   :  { %13585 = vmatprep.mubr.f32.mxu1 %v16113_v43  ;;  %13542 = vmatpush3.msra.mxu0 %v15996_v47  ;;  %v7283_v47 = vand.u32 4294901760, %v16134_v60  ;;  %v7294_v40 = vsub.f32 %v16145_v52, %v7293_v8 }
 0x654   :  { %13584 = vmatpush3.msra.mxu1 %v7361_v13  ;;  %13563 = vmatprep.subr.mxu0 %v16021_v46  ;;  %v7302_v36 = vsub.f32 %v7200_v59, %v16142_v22  ;;  %v8431_v13 = vld [vmem:[#allocation7 + $0x20] sm:$0xff] }
 0x655   :  { %13605 = vmatprep.subr.mxu1 %v16021_v46  ;;  %13544 = vmatmul.mubr.f32.vlgmr.msra.gmra.mxu0 %v16003_v16  ;;  %v7274_v16 = vsub.f32 %v16125_v35, %v7273_v44 }
 0x656   :  { %13564 = vmatpush3.msra.mxu0 %v16021_v46  ;;  %13586 = vmatmul.mubr.f32.vlgmr.msra.gmra.mxu1 %v16119_v1  ;;  %v7303_v41 = vand.u32 4294901760, %v7302_v36 }
 0x657   :  { %13606 = vmatpush3.msra.mxu1 %v16021_v46  ;;  %13546 = vmatprep.mubr.f32.mxu0 %v16026_v10  ;;  %v7284_v10 = vsub.f32 %v16134_v60, %v7283_v47  ;;  %v7275_v45 = vand.u32 4294901760, %v7274_v16 }
 0x658   :  { %13565 = vmatprep.subr.mxu0 %v16044_v30  ;;  %13588 = vmatprep.mubr.f32.mxu1 %v16128_v58  ;;  %v7304_v6 = vsub.f32 %v7302_v36, %v7303_v41 }
 0x659   :  { %13607 = vmatprep.subr.mxu1 %v16044_v30  ;;  %13566 = vmatpush3.msra.mxu0 %v16044_v30  ;;  %v7285_v0 = vand.u32 4294901760, %v7284_v10 }
 0x65a   :  { %13608 = vmatpush3.msra.mxu1 %v16044_v30  ;;  %13567 = vmatprep.subr.mxu0 %v16049_v24  ;;  %v7305_v39 = vand.u32 4294901760, %v7304_v6 }
 0x65b   :  { %13609 = vmatprep.subr.mxu1 %v16049_v24  ;;  %13547 = vmatmul.mubr.f32.gmra.mxu0 %v16016_v55  ;;  %v7295_v55 = vand.u32 4294901760, %v7294_v40 }
 0x65c   :  { %13568 = vmatpush3.msra.mxu0 %v16049_v24  ;;  %13589 = vmatmul.mubr.f32.gmra.mxu1 %v16142_v22 }
 0x65d   :  { %13610 = vmatpush3.msra.mxu1 %v16049_v24  ;;  %13569 = vmatprep.subr.mxu0 %v16062_v33 }
 0x65e   :  { %13571 = vmatprep.mubr.f32.mxu0 %v7275_v45  ;;  %13611 = vmatprep.subr.mxu1 %v16062_v33 }
 0x65f   :  { %13613 = vmatprep.mubr.f32.mxu1 %v7273_v44  ;;  %13570 = vmatpush3.msra.mxu0 %v16062_v33 }
 0x660   :  { %13612 = vmatpush3.msra.mxu1 %v16062_v33  ;;  %13591 = vmatprep.subr.mxu0 %v16042_v37 }
 0x661   :  { %13633 = vmatprep.subr.mxu1 %v16021_v46  ;;  %13572 = vmatmul.mubr.f32.vlgmr.msra.gmra.mxu0 %v7285_v0 }
 0x662   :  { %13592 = vmatpush3.msra.mxu0 %v16042_v37  ;;  %13614 = vmatmul.mubr.f32.vlgmr.msra.gmra.mxu1 %v7283_v47  ;;  %v17125_v37 = vld [vmem:[#allocation34_spill] sm:$0xff] }
 0x663   :  { %13634 = vmatpush3.msra.mxu1 %v16021_v46  ;;  %13574 = vmatprep.mubr.f32.mxu0 %v7295_v55  ;;  %v17124_v46 = vld [vmem:[#allocation33_spill] sm:$0xff] }
 0x664   :  { %13593 = vmatprep.subr.mxu0 %v16059_v9  ;;  %13616 = vmatprep.mubr.f32.mxu1 %v7293_v8 }
 0x665   :  { %13635 = vmatprep.subr.mxu1 %v16044_v30  ;;  %13594 = vmatpush3.msra.mxu0 %v16059_v9  ;;  %v17130_v9 = vld [vmem:[#allocation46_spill] sm:$0xff] }
 0x666   :  { %13636 = vmatpush3.msra.mxu1 %v16044_v30  ;;  %13595 = vmatprep.subr.mxu0 %v16067_v28  ;;  %v17126_v30 = vld [vmem:[#allocation35_spill] sm:$0xff] }
 0x667   :  { %13637 = vmatprep.subr.mxu1 %v16049_v24  ;;  %13575 = vmatmul.mubr.f32.gmra.mxu0 %v7305_v39 }
 0x668   :  { %13596 = vmatpush3.msra.mxu0 %v16067_v28  ;;  %13617 = vmatmul.mubr.f32.gmra.mxu1 %v7303_v41  ;;  %v17133_v28 = vld [vmem:[#allocation48_spill] sm:$0xff] }
 0x669   :  { %13638 = vmatpush3.msra.mxu1 %v16049_v24  ;;  %13597 = vmatprep.subr.mxu0 %v16079_v54  ;;  %v17127_v24 = vld [vmem:[#allocation38_spill] sm:$0xff] }
 0x66a   :  { %13599 = vmatprep.mubr.f32.mxu0 %v16125_v35  ;;  %13639 = vmatprep.subr.mxu1 %v16062_v33 }
 0x66b   :  { %13641 = vmatprep.mubr.f32.mxu1 %v16113_v43  ;;  %13598 = vmatpush3.msra.mxu0 %v16079_v54  ;;  %v17137_v54 = vld [vmem:[#allocation43_spill] sm:$0xff] }
 0x66c   :  { %13640 = vmatpush3.msra.mxu1 %v16062_v33  ;;  %13619 = vmatprep.subr.mxu0 %v16056_v4  ;;  %v17132_v33 = vld [vmem:[#allocation47_spill] sm:$0xff] }
 0x66d   :  { %13661 = vmatprep.subr.mxu1 %v15863_v61  ;;  %13600 = vmatmul.mubr.f32.vlgmr.msra.gmra.mxu0 %v16134_v60 }
 0x66e   :  { %13620 = vmatpush3.msra.mxu0 %v16056_v4  ;;  %13642 = vmatmul.mubr.f32.vlgmr.msra.gmra.mxu1 %v16119_v1  ;;  %v17129_v4 = vld [vmem:[#allocation39_spill] sm:$0xff] }
 0x66f   :  { %13662 = vmatpush3.msra.mxu1 %v15863_v61  ;;  %13602 = vmatprep.mubr.f32.mxu0 %v16145_v52 }
 0x670   :  { %13621 = vmatprep.subr.mxu0 %v16075_v7  ;;  %13644 = vmatprep.mubr.f32.mxu1 %v16128_v58 }
 0x671   :  { %13663 = vmatprep.subr.mxu1 %v15874_v56  ;;  %13622 = vmatpush3.msra.mxu0 %v16075_v7  ;;  %v17136_v7 = vld [vmem:[#allocation41_spill] sm:$0xff] }
 0x672   :  { %13664 = vmatpush3.msra.mxu1 %v15874_v56  ;;  %13623 = vmatprep.subr.mxu0 %v16083_v25 }
 0x673   :  { %13665 = vmatprep.subr.mxu1 %v15882_v53  ;;  %13603 = vmatmul.mubr.f32.gmra.mxu0 %v7302_v36 }
 0x674   :  { %13624 = vmatpush3.msra.mxu0 %v16083_v25  ;;  %13645 = vmatmul.mubr.f32.gmra.mxu1 %v16142_v22  ;;  %v17138_v25 = vld [vmem:[#allocation44_spill] sm:$0xff] }
 0x675   :  { %13666 = vmatpush3.msra.mxu1 %v15882_v53  ;;  %13625 = vmatprep.subr.mxu0 %v16093_v20 }
 0x676   :  { %13627 = vmatprep.mubr.f32.mxu0 %v16113_v43  ;;  %13667 = vmatprep.subr.mxu1 %v15890_v15  ;;  %v16306_v43 = vand.u32 4294901760, %v8432_v23 }
 0x677   :  { %13626 = vmatpush3.msra.mxu0 %v16093_v20  ;;  %13668 = vmatpush3.msra.mxu1 %v15890_v15  ;;  %v16291_v20 = vand.u32 4294901760, %v8434_v62 }
 0x678   :  { %13647 = vmatprep.subr.mxu0 %v15820_v5  ;;  %13669 = vmatprep.mubr.msk.f32.mxu1 %vm260_vm1, %v17124_v46  ;;  %v16316_v35 = vsub.f32 %v8432_v23, %v16306_v43 }
 0x679   :  { %13689 = vmatprep.subr.mxu1 %v15820_v5  ;;  %13628 = vmatmul.mubr.f32.vlgmr.msra.gmra.mxu0 %v16119_v1  ;;  %v16294_v11 = vsub.f32 %v8434_v62, %v16291_v20  ;;  %v16313_v1 = vand.u32 4294901760, %v16304_v32 }
 0x67a   :  { %13648 = vmatpush3.msra.mxu0 %v15820_v5  ;;  %13670 = vmatmul.mubr.msk.f32.vlgmr.msra.gmra.mxu1 %vm260_vm1, %v17125_v37  ;;  %v16325_v44 = vand.u32 4294901760, %v16316_v35 }
 0x67b   :  { %13690 = vmatpush3.msra.mxu1 %v15820_v5  ;;  %13630 = vmatprep.mubr.f32.mxu0 %v16128_v58  ;;  %v16301_v21 = vand.u32 4294901760, %v16294_v11  ;;  %v16318_v58 = vand.u32 4294901760, %v8431_v13  ;;  %v8591_v60 = vsub.f32 %v16304_v32, %v16313_v1 }
 0x67c   :  { %13649 = vmatprep.subr.mxu0 %v15834_v26  ;;  %13691 = vmatprep.subr.mxu1 %v15834_v26  ;;  %v8598_v47 = vsub.f32 %v16316_v35, %v16325_v44 }
 0x67d   :  { %13650 = vmatpush3.msra.mxu0 %v15834_v26  ;;  %13692 = vmatpush3.msra.mxu1 %v15834_v26  ;;  %v8584_v3 = vsub.f32 %v16294_v11, %v16301_v21  ;;  %v8592_v52 = vand.u32 4294901760, %v8591_v60 }
 0x67e   :  { %13651 = vmatprep.subr.mxu0 %v15812_v29  ;;  %13672 = vmatprep.mubr.msk.f32.mxu1 %vm260_vm1, %v17126_v30  ;;  %v8599_v36 = vand.u32 4294901760, %v8598_v47 }
 0x67f   :  { %13693 = vmatprep.subr.mxu1 %v15812_v29  ;;  %13631 = vmatmul.mubr.f32.gmra.mxu0 %v16142_v22  ;;  %v8585_v59 = vand.u32 4294901760, %v8584_v3  ;;  %v16328_v22 = vsub.f32 %v8431_v13, %v16318_v58 }
 0x680   :  { %13652 = vmatpush3.msra.mxu0 %v15812_v29  ;;  %13673 = vmatmul.mubr.msk.f32.gmra.mxu1 %vm260_vm1, %v17127_v24 }
 0x681   :  { %13694 = vmatpush3.msra.mxu1 %v15812_v29  ;;  %13653 = vmatprep.subr.mxu0 %v15817_v63  ;;  %v16335_v16 = vand.u32 4294901760, %v16328_v22 }
 0x682   :  { %13695 = vmatprep.subr.mxu1 %v15817_v63  ;;  %13654 = vmatpush3.msra.mxu0 %v15817_v63 }
 0x683   :  { %13696 = vmatpush3.msra.mxu1 %v15817_v63  ;;  %13655 = vmatprep.mubr.f32.mxu0 %v17128_v17  ;;  %v8605_v8 = vsub.f32 %v16328_v22, %v16335_v16 }
 0x684   :  { %13675 = vmatprep.subr.mxu0 %v15830_v50  ;;  %13697 = vmatprep.mubr.f32.mxu1 %v17129_v4 }
 0x685   :  { %13717 = vmatprep.subr.mxu1 %v15820_v5  ;;  %13656 = vmatmul.mubr.f32.vlgmr.msra.gmra.mxu0 %v17130_v9  ;;  %v8606_v10 = vand.u32 4294901760, %v8605_v8 }
 0x686   :  { %13676 = vmatpush3.msra.mxu0 %v15830_v50  ;;  %13698 = vmatmul.mubr.f32.vlgmr.msra.gmra.mxu1 %v17131_v2 }
 0x687   :  { %13718 = vmatpush3.msra.mxu1 %v15820_v5  ;;  %13677 = vmatprep.subr.mxu0 %v15849_v38 }
 0x688   :  { %13719 = vmatprep.subr.mxu1 %v15834_v26  ;;  %13678 = vmatpush3.msra.mxu0 %v15849_v38 }
 0x689   :  { %13720 = vmatpush3.msra.mxu1 %v15834_v26  ;;  %13658 = vmatprep.mubr.f32.mxu0 %v17132_v33 }
 0x68a   :  { %13679 = vmatprep.subr.mxu0 %v15824_v48  ;;  %13721 = vmatprep.subr.mxu1 %v15812_v29 }
 0x68b   :  { %13659 = vmatmul.mubr.f32.gmra.mxu0 %v17133_v28  ;;  %13722 = vmatpush3.msra.mxu1 %v15812_v29 }
 0x68c   :  { %13680 = vmatpush3.msra.mxu0 %v15824_v48  ;;  %13723 = vmatprep.subr.mxu1 %v15817_v63 }
 0x68d   :  { %13681 = vmatprep.subr.mxu0 %v15839_v42  ;;  %13724 = vmatpush3.msra.mxu1 %v15817_v63 }
 0x68e   :  { %13682 = vmatpush3.msra.mxu0 %v15839_v42  ;;  %13683 = vmatprep.mubr.f32.mxu0 %v17134_v49 }
 0x68f   :  { %13703 = vmatprep.subr.mxu0 %v15842_v12  ;;  %13684 = vmatmul.mubr.f32.vlgmr.msra.gmra.mxu0 %v17135_v19 }
 0x690   :  { %13704 = vmatpush3.msra.mxu0 %v15842_v12  ;;  %13686 = vmatprep.mubr.f32.mxu0 %v17136_v7 }
 0x691   :  { %13705 = vmatprep.subr.mxu0 %v15856_v57  ;;  %13700 = vmatprep.mubr.f32.mxu1 %v17137_v54 }
 0x692   :  { %13706 = vmatpush3.msra.mxu0 %v15856_v57  ;;  %13701 = vmatmul.mubr.f32.gmra.mxu1 %v17138_v25 }
 0x693   :  { %13707 = vmatprep.subr.mxu0 %v15845_v14  ;;  %13687 = vmatmul.mubr.f32.gmra.mxu0 %v17139_v51 }
 0x694   :  { %13708 = vmatpush3.msra.mxu0 %v15845_v14  ;;  %13711 = vmatprep.mubr.msk.f32.mxu0 %vm260_vm1, %v17124_v46 }
 0x695   :  { %13709 = vmatprep.subr.mxu0 %v15860_v31  ;;  %13725 = vmatprep.mubr.msk.f32.mxu1 %vm260_vm1, %v17124_v46 }
 0x696   :  { %13710 = vmatpush3.msra.mxu0 %v15860_v31  ;;  %13726 = vmatmul.mubr.msk.f32.vlgmr.msra.gmra.mxu1 %vm260_vm1, %v17125_v37 }
 0x697   :  { %13712 = vmatmul.mubr.msk.f32.vlgmr.msra.gmra.mxu0 %vm260_vm1, %v17125_v37  ;;  %13728 = vmatprep.mubr.msk.f32.mxu1 %vm260_vm1, %v17126_v30 }
 0x698   :  { %13714 = vmatprep.mubr.msk.f32.mxu0 %vm260_vm1, %v17126_v30  ;;  %13731 = vmatprep.subr.mxu0 %v16291_v20 }
 0x699   :  { %13732 = vmatpush3.msra.mxu0 %v16291_v20  ;;  %13745 = vmatprep.subr.mxu1 %v8585_v59 }
 0x69a   :  { %13729 = vmatmul.mubr.msk.f32.gmra.mxu1 %vm260_vm1, %v17127_v24  ;;  %13733 = vmatprep.subr.mxu0 %v16296_v18 }
 0x69b   :  { %13715 = vmatmul.mubr.msk.f32.gmra.mxu0 %vm260_vm1, %v17127_v24  ;;  %13746 = vmatpush3.msra.mxu1 %v8585_v59 }
 0x69c   :  { %13734 = vmatpush3.msra.mxu0 %v16296_v18  ;;  %13747 = vmatprep.subr.mxu1 %v8592_v52 }
 0x69d   :  { %13735 = vmatprep.subr.mxu0 %v16306_v43  ;;  %13748 = vmatpush3.msra.mxu1 %v8592_v52 }
 0x69e   :  { %13736 = vmatpush3.msra.mxu0 %v16306_v43  ;;  %13749 = vmatprep.subr.mxu1 %v8599_v36 }
 0x69f   :  { %13737 = vmatprep.subr.mxu0 %v16318_v58  ;;  %13750 = vmatpush3.msra.mxu1 %v8599_v36 }
 0x6a0   :  { %13738 = vmatpush3.msra.mxu0 %v16318_v58  ;;  %13751 = vmatprep.subr.mxu1 %v8606_v10 }
 0x6a1   :  { %13759 = vmatprep.subr.mxu0 %v16294_v11  ;;  %13752 = vmatpush3.msra.mxu1 %v8606_v10 }
 0x6a2   :  { %13773 = vmatprep.subr.mxu1 %v16291_v20 }
 0x6f5   :  { %v13503_v45 = vpop.f32.mrf.mxu1 }
 0x6f7   :  { %v6772_v40 = vpop.f32.mrf.mxu1 }
 0x6f9   :  { %v13506_v41 = vpop.f32.mrf.mxu1 }
 0x6fb   :  { %v6784_v0 = vpop.f32.mrf.mxu1 }
 0x6fd   :  { %v13489_v55 = vpop.f32.mrf.mxu0 }
 0x6fe   :  { %v6779_v6 = vadd.f32 %v13503_v45, %v13489_v55  ;;  %v13531_v39 = vpop.f32.mrf.mxu1 }
 0x6ff   :  { %v6651_v46 = vpop.f32.mrf.mxu0 }
 0x700   :  { %v6773_v37 = vadd.f32 %v6772_v40, %v6651_v46  ;;  %v6968_v30 = vpop.f32.mrf.mxu1 }
 0x703   :  { %v13492_v24 = vpop.f32.mrf.mxu0 }
 0x704   :  { %v6791_v17 = vadd.f32 %v13506_v41, %v13492_v24  ;;  %v13534_v4 = vpop.f32.mrf.mxu1 }
 0x705   :  { %v6671_v9 = vpop.f32.mrf.mxu0 }
 0x706   :  { %v6785_v2 = vadd.f32 %v6784_v0, %v6671_v9  ;;  %v6984_v33 = vpop.f32.mrf.mxu1 }
 0x709   :  { %v13517_v28 = vpop.f32.mrf.mxu0 }
 0x70a   :  { %v6878_v49 = vadd.f32 %v13517_v28, %v6779_v6  ;;  %v13559_v19 = vpop.f32.mrf.mxu1 }
 0x70b   :  { %v6870_v7 = vpop.f32.mrf.mxu0 }
 0x70c   :  { %v6871_v54 = vadd.f32 %v6870_v7, %v6773_v37  ;;  %v7168_v25 = vpop.f32.mrf.mxu1  ;;  %v6977_v51 = vadd.f32 %v13531_v39, %v6878_v49 }
 0x70e   :  { %v6969_v62 = vadd.f32 %v6968_v30, %v6871_v54 }
 0x70f   :  { %v13520_v27 = vpop.f32.mrf.mxu0 }
 0x710   :  { %v6892_v23 = vadd.f32 %v13520_v27, %v6791_v17  ;;  %v13562_v13 = vpop.f32.mrf.mxu1 }
 0x711   :  { %v6884_v3 = vpop.f32.mrf.mxu0 }
 0x712   :  { %v6885_v59 = vadd.f32 %v6884_v3, %v6785_v2  ;;  %v7180_v60 = vpop.f32.mrf.mxu1  ;;  %v6993_v52 = vadd.f32 %v13534_v4, %v6892_v23 }
 0x714   :  { %v6985_v47 = vadd.f32 %v6984_v33, %v6885_v59 }
 0x715   :  { %v13545_v36 = vpop.f32.mrf.mxu0 }
 0x716   :  { %v7082_v8 = vadd.f32 %v13545_v36, %v6977_v51  ;;  %v13587_v10 = vpop.f32.mrf.mxu1 }
 0x717   :  { %v7075_v45 = vpop.f32.mrf.mxu0 }
 0x718   :  { %v7076_v40 = vadd.f32 %v7075_v45, %v6969_v62  ;;  %v7398_v41 = vpop.f32.mrf.mxu1  ;;  %v7175_v0 = vadd.f32 %v13559_v19, %v7082_v8 }
 0x71a   :  { %v7169_v55 = vadd.f32 %v7168_v25, %v7076_v40 }
 0x71b   :  { %v13548_v6 = vpop.f32.mrf.mxu0 }
 0x71c   :  { %v7094_v46 = vadd.f32 %v13548_v6, %v6993_v52  ;;  %v13590_v39 = vpop.f32.mrf.mxu1 }
 0x71d   :  { %v7087_v37 = vpop.f32.mrf.mxu0 }
 0x71e   :  { %v7088_v30 = vadd.f32 %v7087_v37, %v6985_v47  ;;  %v7410_v24 = vpop.f32.mrf.mxu1  ;;  %v7187_v17 = vadd.f32 %v13562_v13, %v7094_v46 }
 0x720   :  { %v7181_v9 = vadd.f32 %v7180_v60, %v7088_v30 }
 0x721   :  { %v13573_v2 = vpop.f32.mrf.mxu0 }
 0x722   :  { %v7288_v28 = vadd.f32 %v13573_v2, %v7175_v0  ;;  %v13615_v4 = vpop.f32.mrf.mxu1 }
 0x723   :  { %v7277_v33 = vpop.f32.mrf.mxu0 }
 0x724   :  { %v7278_v49 = vadd.f32 %v7277_v33, %v7169_v55  ;;  %v7594_v7 = vpop.f32.mrf.mxu1  ;;  %v7405_v54 = vadd.f32 %v13587_v10, %v7288_v28 }
 0x726   :  { %v7399_v51 = vadd.f32 %v7398_v41, %v7278_v49 }
 0x727   :  { %v13576_v62 = vpop.f32.mrf.mxu0 }
 0x728   :  { %v7308_v27 = vadd.f32 %v13576_v62, %v7187_v17  ;;  %v13618_v19 = vpop.f32.mrf.mxu1 }
 0x729   :  { %v7297_v25 = vpop.f32.mrf.mxu0 }
 0x72a   :  { %v7298_v23 = vadd.f32 %v7297_v25, %v7181_v9  ;;  %v7610_v3 = vpop.f32.mrf.mxu1  ;;  %v7417_v59 = vadd.f32 %v13590_v39, %v7308_v27 }
 0x72c   :  { %v7411_v52 = vadd.f32 %v7410_v24, %v7298_v23 }
 0x72d   :  { %v13601_v47 = vpop.f32.mrf.mxu0 }
 0x72e   :  { %v7504_v36 = vadd.f32 %v13601_v47, %v7405_v54  ;;  %v13643_v13 = vpop.f32.mrf.mxu1 }
 0x72f   :  { %v7496_v60 = vpop.f32.mrf.mxu0 }
 0x730   :  { %v7497_v8 = vadd.f32 %v7496_v60, %v7399_v51  ;;  %v7794_v45 = vpop.f32.mrf.mxu1  ;;  %v7603_v40 = vadd.f32 %v13615_v4, %v7504_v36 }
 0x732   :  { %v7595_v0 = vadd.f32 %v7594_v7, %v7497_v8 }
 0x733   :  { %v13604_v55 = vpop.f32.mrf.mxu0 }
 0x734   :  { %v7518_v6 = vadd.f32 %v13604_v55, %v7417_v59  ;;  %v13646_v10 = vpop.f32.mrf.mxu1 }
 0x735   :  { %v7510_v41 = vpop.f32.mrf.mxu0 }
 0x736   :  { %v7511_v46 = vadd.f32 %v7510_v41, %v7411_v52  ;;  %v7619_v37 = vadd.f32 %v13618_v19, %v7518_v6  ;;  %v7806_v30 = vpop.f32.mrf.mxu1 }
 0x738   :  { %v7611_v17 = vadd.f32 %v7610_v3, %v7511_v46 }
 0x739   :  { %v13629_v9 = vpop.f32.mrf.mxu0 }
 0x73a   :  { %v7708_v2 = vadd.f32 %v13629_v9, %v7603_v40  ;;  %v13671_v39 = vpop.f32.mrf.mxu1 }
 0x73b   :  { %v7701_v24 = vpop.f32.mrf.mxu0 }
 0x73c   :  { %v16341_v28 = vadd.f32 %v13643_v13, %v7708_v2  ;;  %v7702_v33 = vadd.f32 %v7701_v24, %v7595_v0  ;;  %v8012_v54 = vpop.f32.mrf.mxu1 }
 0x73e   :  { %v16343_v49 = vadd.f32 %v7794_v45, %v7702_v33 }
 0x73f   :  { %v13632_v4 = vpop.f32.mrf.mxu0 }
 0x740   :  { %v7720_v7 = vadd.f32 %v13632_v4, %v7619_v37  ;;  %v13674_v25 = vpop.f32.mrf.mxu1 }
 0x741   :  { %v7713_v51 = vpop.f32.mrf.mxu0 }
 0x742   :  { %v16345_v62 = vadd.f32 %v13646_v10, %v7720_v7  ;;  %v7714_v27 = vadd.f32 %v7713_v51, %v7611_v17  ;;  %v8024_v3 = vpop.f32.mrf.mxu1 }
 0x744   :  { %v16347_v19 = vadd.f32 %v7806_v30, %v7714_v27 }
 0x745   :  { %v13657_v23 = vpop.f32.mrf.mxu0 }
 0x746   :  { %v13699_v52 = vpop.f32.mrf.mxu1  ;;  %v8019_v8 = vadd.f32 %v13671_v39, %v13657_v23 }
 0x747   :  { %v7891_v59 = vpop.f32.mrf.mxu0 }
 0x748   :  { %v8208_v13 = vpop.f32.mrf.mxu1  ;;  %v8013_v40 = vadd.f32 %v8012_v54, %v7891_v59 }
 0x74b   :  { %v13660_v47 = vpop.f32.mrf.mxu0 }
 0x74c   :  { %v8031_v10 = vadd.f32 %v13674_v25, %v13660_v47 }
 0x74d   :  { %v7911_v36 = vpop.f32.mrf.mxu0 }
 0x74e   :  { %v8025_v30 = vadd.f32 %v8024_v3, %v7911_v36 }
 0x74f   :  { %v13685_v60 = vpop.f32.mrf.mxu0 }
 0x750   :  { %v8118_v0 = vadd.f32 %v13685_v60, %v8019_v8 }
 0x751   :  { %v8110_v45 = vpop.f32.mrf.mxu0 }
 0x752   :  { %v13702_v55 = vpop.f32.mrf.mxu1  ;;  %v8111_v41 = vadd.f32 %v8110_v45, %v8013_v40  ;;  %v8217_v17 = vadd.f32 %v13699_v52, %v8118_v0 }
 0x753   :  { %v13688_v6 = vpop.f32.mrf.mxu0 }
 0x754   :  { %v8224_v46 = vpop.f32.mrf.mxu1  ;;  %v8132_v9 = vadd.f32 %v13688_v6, %v8031_v10  ;;  %v8209_v33 = vadd.f32 %v8208_v13, %v8111_v41 }
 0x755   :  { %v8124_v37 = vpop.f32.mrf.mxu0 }
 0x756   :  { %v13727_v2 = vpop.f32.mrf.mxu1  ;;  %v8125_v4 = vadd.f32 %v8124_v37, %v8025_v30  ;;  %v8233_v39 = vadd.f32 %v13702_v55, %v8132_v9 }
 0x757   :  { %v13713_v24 = vpop.f32.mrf.mxu0 }
 0x758   :  { %v8322_v7 = vadd.f32 %v13713_v24, %v8217_v17  ;;  %v8408_v51 = vpop.f32.mrf.mxu1  ;;  %v8225_v8 = vadd.f32 %v8224_v46, %v8125_v4 }
 0x759   :  { %v8315_v27 = vpop.f32.mrf.mxu0 }
 0x75a   :  { %v8415_v23 = vadd.f32 %v13727_v2, %v8322_v7  ;;  %v8316_v54 = vadd.f32 %v8315_v27, %v8209_v33  ;;  %v13730_v60 = vpop.f32.mrf.mxu1 }
 0x75b   :  { %v13716_v59 = vpop.f32.mrf.mxu0 }
 0x75c   :  { %v8439_v25 = vsel %vm260_vm1, %v8415_v23, 0  ;;  %v8409_v47 = vadd.f32 %v8408_v51, %v8316_v54  ;;  %v8334_v45 = vadd.f32 %v13716_v59, %v8233_v39  ;;  %v8420_v55 = vpop.f32.mrf.mxu1 }
 0x75d   :  { %v16350_v3 = vand.u32 4294901760, %v8439_v25  ;;  %v8327_v52 = vpop.f32.mrf.mxu0 }
 0x75e   :  { %v8436_v36 = vsel %vm260_vm1, %v8409_v47, 0  ;;  %v8427_v13 = vadd.f32 %v13730_v60, %v8334_v45  ;;  %v8328_v40 = vadd.f32 %v8327_v52, %v8225_v8  ;;  %v17153_v47 = vld [vmem:[#allocation82_spill] sm:$0xff]  ;;  %v17154_v45 = vld [vmem:[#allocation83_spill] sm:$0xff] }
 0x75f   :  { %v8527_v0 = vsub.f32 %v8439_v25, %v16350_v3  ;;  %v16354_v6 = vand.u32 4294901760, %v8436_v36  ;;  %v17152_v25 = vld [vmem:[#allocation80_spill] sm:$0xff]  ;;  %v9683_v52 = vld [vmem:[#allocation7 + $0x78] sm:$0xff] }
 0x760   :  { %v8445_v10 = vsel %vm260_vm1, %v8427_v13, 0  ;;  %v8421_v41 = vadd.f32 %v8420_v55, %v8328_v40  ;;  %v9682_v13 = vld [vmem:[#allocation7 + $0x70] sm:$0xff] }
 0x761   :  { %v8528_v46 = vand.u32 4294901760, %v8527_v0  ;;  %v8517_v37 = vsub.f32 %v8436_v36, %v16354_v6  ;;  %v16358_v30 = vand.u32 4294901760, %v8445_v10  ;;  %13753 = vmatprep.mubr.f32.mxu1 %v16354_v6  ;;  %v16491_v36 = vand.u32 4294901760, %v9683_v52 }
 0x762   :  { %v8442_v17 = vsel %vm260_vm1, %v8421_v41, 0  ;;  %13754 = vmatmul.mubr.f32.vlgmr.msra.gmra.mxu1 %v16350_v3 }
 0x763   :  { %v8547_v9 = vsub.f32 %v8445_v10, %v16358_v30  ;;  %v16364_v2 = vand.u32 4294901760, %v8442_v17  ;;  %13774 = vmatpush3.msra.mxu1 %v16291_v20  ;;  %v8518_v24 = vand.u32 4294901760, %v8517_v37  ;;  %v8529_v33 = vsub.f32 %v8527_v0, %v8528_v46 }
 0x764   :  { %13775 = vmatprep.subr.mxu1 %v16296_v18  ;;  %v16494_v40 = vsub.f32 %v9683_v52, %v16491_v36 }
 0x765   :  { %v8537_v4 = vsub.f32 %v8442_v17, %v16364_v2  ;;  %13776 = vmatpush3.msra.mxu1 %v16296_v18  ;;  %13756 = vmatprep.mubr.f32.mxu1 %v16364_v2  ;;  %v8519_v7 = vsub.f32 %v8517_v37, %v8518_v24  ;;  %v8548_v51 = vand.u32 4294901760, %v8547_v9  ;;  %v8530_v23 = vand.u32 4294901760, %v8529_v33 }
 0x766   :  { %13777 = vmatprep.subr.mxu1 %v16306_v43  ;;  %13757 = vmatmul.mubr.f32.gmra.mxu1 %v16358_v30  ;;  %v16501_v55 = vand.u32 4294901760, %v16494_v40 }
 0x767   :  { %13778 = vmatpush3.msra.mxu1 %v16306_v43  ;;  %13781 = vmatprep.mubr.f32.mxu1 %v8518_v24  ;;  %v8520_v27 = vand.u32 4294901760, %v8519_v7  ;;  %v8538_v39 = vand.u32 4294901760, %v8537_v4  ;;  %v8549_v59 = vsub.f32 %v8547_v9, %v8548_v51 }
 0x768   :  { %13779 = vmatprep.subr.mxu1 %v16318_v58 }
 0x769   :  { %13780 = vmatpush3.msra.mxu1 %v16318_v58  ;;  %13739 = vmatprep.mubr.f32.mxu0 %v8520_v27  ;;  %v8539_v54 = vsub.f32 %v8537_v4, %v8538_v39  ;;  %v8550_v8 = vand.u32 4294901760, %v8549_v59 }
 0x76a   :  { %13801 = vmatprep.subr.mxu1 %v16291_v20  ;;  %13740 = vmatmul.mubr.f32.vlgmr.msra.gmra.mxu0 %v8530_v23 }
 0x76b   :  { %13760 = vmatpush3.msra.mxu0 %v16294_v11  ;;  %13782 = vmatmul.mubr.f32.vlgmr.msra.gmra.mxu1 %v8528_v46  ;;  %v8540_v60 = vand.u32 4294901760, %v8539_v54  ;;  %v17141_v11 = vld [vmem:[#allocation73_spill] sm:$0xff]  ;;  %v9680_v46 = vld [vmem:[#allocation7 + $0x60] sm:$0xff] }
 0x76c   :  { %13802 = vmatpush3.msra.mxu1 %v16291_v20  ;;  %13761 = vmatprep.subr.mxu0 %v16304_v32  ;;  %v17140_v20 = vld [vmem:[#allocation72_spill] sm:$0xff] }
 0x76d   :  { %13784 = vmatprep.mubr.f32.mxu1 %v8538_v39  ;;  %13803 = vmatprep.subr.mxu1 %v16296_v18 }
 0x76e   :  { %13762 = vmatpush3.msra.mxu0 %v16304_v32  ;;  %13804 = vmatpush3.msra.mxu1 %v16296_v18  ;;  %v17142_v18 = vld [vmem:[#allocation74_spill] sm:$0xff]  ;;  %v17144_v32 = vld [vmem:[#allocation84_spill] sm:$0xff] }
 0x76f   :  { %13742 = vmatprep.mubr.f32.mxu0 %v8540_v60  ;;  %13763 = vmatprep.subr.mxu0 %v16316_v35 }
 0x770   :  { %13805 = vmatprep.subr.mxu1 %v16306_v43  ;;  %13743 = vmatmul.mubr.f32.gmra.mxu0 %v8550_v8 }
 0x771   :  { %13764 = vmatpush3.msra.mxu0 %v16316_v35  ;;  %13785 = vmatmul.mubr.f32.gmra.mxu1 %v8548_v51  ;;  %v17147_v35 = vld [vmem:[#allocation79_spill] sm:$0xff] }
 0x772   :  { %13806 = vmatpush3.msra.mxu1 %v16306_v43  ;;  %13765 = vmatprep.subr.mxu0 %v16328_v22  ;;  %v17145_v43 = vld [vmem:[#allocation78_spill] sm:$0xff] }
 0x773   :  { %13767 = vmatprep.mubr.f32.mxu0 %v8517_v37  ;;  %13807 = vmatprep.subr.mxu1 %v16318_v58  ;;  %v9833_v37 = vsub.f32 %v16494_v40, %v16501_v55 }
 0x774   :  { %13809 = vmatprep.mubr.f32.mxu1 %v16354_v6  ;;  %13766 = vmatpush3.msra.mxu0 %v16328_v22  ;;  %v17150_v22 = vld [vmem:[#allocation75_spill] sm:$0xff] }
 0x775   :  { %13808 = vmatpush3.msra.mxu1 %v16318_v58  ;;  %13787 = vmatprep.subr.mxu0 %v16301_v21  ;;  %v17148_v58 = vld [vmem:[#allocation86_spill] sm:$0xff] }
 0x776   :  { %13829 = vmatprep.subr.mxu1 %v15863_v61  ;;  %13768 = vmatmul.mubr.f32.vlgmr.msra.gmra.mxu0 %v8527_v0  ;;  %v16496_v0 = vand.u32 4294901760, %v9682_v13 }
 0x777   :  { %13788 = vmatpush3.msra.mxu0 %v16301_v21  ;;  %13810 = vmatmul.mubr.f32.vlgmr.msra.gmra.mxu1 %v16350_v3  ;;  %v17143_v21 = vld [vmem:[#allocation77_spill] sm:$0xff] }
 0x778   :  { %13830 = vmatpush3.msra.mxu1 %v15863_v61  ;;  %13770 = vmatprep.mubr.f32.mxu0 %v8537_v4  ;;  %v16504_v10 = vsub.f32 %v9682_v13, %v16496_v0 }
 0x779   :  { %13789 = vmatprep.subr.mxu0 %v16313_v1  ;;  %13812 = vmatprep.mubr.f32.mxu1 %v16364_v2 }
 0x77a   :  { %13831 = vmatprep.subr.mxu1 %v15874_v56  ;;  %13790 = vmatpush3.msra.mxu0 %v16313_v1  ;;  %v17146_v1 = vld [vmem:[#allocation85_spill] sm:$0xff] }
 0x77b   :  { %13832 = vmatpush3.msra.mxu1 %v15874_v56  ;;  %13791 = vmatprep.subr.mxu0 %v16325_v44 }
 0x77c   :  { %13833 = vmatprep.subr.mxu1 %v15882_v53  ;;  %13771 = vmatmul.mubr.f32.gmra.mxu0 %v8547_v9  ;;  %v16518_v9 = vand.u32 4294901760, %v9680_v46 }
 0x77d   :  { %13792 = vmatpush3.msra.mxu0 %v16325_v44  ;;  %13813 = vmatmul.mubr.f32.gmra.mxu1 %v16358_v30  ;;  %v17149_v44 = vld [vmem:[#allocation87_spill] sm:$0xff] }
 0x77e   :  { %13834 = vmatpush3.msra.mxu1 %v15882_v53  ;;  %13793 = vmatprep.subr.mxu0 %v16335_v16  ;;  %v16528_v4 = vsub.f32 %v9680_v46, %v16518_v9 }
 0x77f   :  { %13795 = vmatprep.mubr.f32.mxu0 %v16354_v6  ;;  %13835 = vmatprep.subr.mxu1 %v15890_v15  ;;  %v9681_v6 = vld [vmem:[#allocation7 + $0x68] sm:$0xff] }
 0x780   :  { %13794 = vmatpush3.msra.mxu0 %v16335_v16  ;;  %13836 = vmatpush3.msra.mxu1 %v15890_v15  ;;  %v17151_v16 = vld [vmem:[#allocation76_spill] sm:$0xff]  ;;  %v16506_v41 = vand.u32 4294901760, %v9681_v6  ;;  %v16535_v27 = vand.u32 4294901760, %v16528_v4 }
 0x781   :  { %13815 = vmatprep.subr.mxu0 %v15820_v5  ;;  %13837 = vmatprep.mubr.msk.f32.mxu1 %vm260_vm1, %v17140_v20 }
 0x782   :  { %13857 = vmatprep.subr.mxu1 %v15820_v5  ;;  %13796 = vmatmul.mubr.f32.vlgmr.msra.gmra.mxu0 %v16350_v3  ;;  %v17155_v3 = vld [vmem:[#allocation81_spill] sm:$0xff]  ;;  %v16516_v17 = vsub.f32 %v9681_v6, %v16506_v41  ;;  %v9854_v23 = vsub.f32 %v16528_v4, %v16535_v27 }
 0x783   :  { %13816 = vmatpush3.msra.mxu0 %v15820_v5  ;;  %13838 = vmatmul.mubr.msk.f32.vlgmr.msra.gmra.mxu1 %vm260_vm1, %v17141_v11 }
 0x784   :  { %13858 = vmatpush3.msra.mxu1 %v15820_v5  ;;  %13798 = vmatprep.mubr.f32.mxu0 %v16364_v2  ;;  %v9834_v2 = vand.u32 4294901760, %v9833_v37  ;;  %v16525_v33 = vand.u32 4294901760, %v16516_v17  ;;  %v9855_v54 = vand.u32 4294901760, %v9854_v23 }
 0x785   :  { %13817 = vmatprep.subr.mxu0 %v15834_v26  ;;  %13859 = vmatprep.subr.mxu1 %v15834_v26 }
 0x786   :  { %13818 = vmatpush3.msra.mxu0 %v15834_v26  ;;  %13860 = vmatpush3.msra.mxu1 %v15834_v26  ;;  %v9847_v51 = vsub.f32 %v16516_v17, %v16525_v33 }
 0x787   :  { %13819 = vmatprep.subr.mxu0 %v15812_v29  ;;  %13840 = vmatprep.mubr.msk.f32.mxu1 %vm260_vm1, %v17142_v18 }
 0x788   :  { %13861 = vmatprep.subr.mxu1 %v15812_v29  ;;  %13799 = vmatmul.mubr.f32.gmra.mxu0 %v16358_v30  ;;  %v16513_v30 = vand.u32 4294901760, %v16504_v10  ;;  %v9848_v39 = vand.u32 4294901760, %v9847_v51 }
 0x789   :  { %13820 = vmatpush3.msra.mxu0 %v15812_v29  ;;  %13841 = vmatmul.mubr.msk.f32.gmra.mxu1 %vm260_vm1, %v17143_v21 }
 0x78a   :  { %13862 = vmatpush3.msra.mxu1 %v15812_v29  ;;  %13821 = vmatprep.subr.mxu0 %v15817_v63  ;;  %v9840_v24 = vsub.f32 %v16504_v10, %v16513_v30 }
 0x78b   :  { %13863 = vmatprep.subr.mxu1 %v15817_v63  ;;  %13822 = vmatpush3.msra.mxu0 %v15817_v63 }
 0x78c   :  { %13864 = vmatpush3.msra.mxu1 %v15817_v63  ;;  %13823 = vmatprep.mubr.f32.mxu0 %v17144_v32  ;;  %v9841_v7 = vand.u32 4294901760, %v9840_v24 }
 0x78d   :  { %13843 = vmatprep.subr.mxu0 %v15830_v50  ;;  %13865 = vmatprep.mubr.f32.mxu1 %v17145_v43 }
 0x78e   :  { %13885 = vmatprep.subr.mxu1 %v15820_v5  ;;  %13824 = vmatmul.mubr.f32.vlgmr.msra.gmra.mxu0 %v17146_v1 }
 0x78f   :  { %13844 = vmatpush3.msra.mxu0 %v15830_v50  ;;  %13866 = vmatmul.mubr.f32.vlgmr.msra.gmra.mxu1 %v17147_v35 }
 0x790   :  { %13886 = vmatpush3.msra.mxu1 %v15820_v5  ;;  %13845 = vmatprep.subr.mxu0 %v15849_v38 }
 0x791   :  { %13887 = vmatprep.subr.mxu1 %v15834_v26  ;;  %13846 = vmatpush3.msra.mxu0 %v15849_v38 }
 0x792   :  { %13888 = vmatpush3.msra.mxu1 %v15834_v26  ;;  %13826 = vmatprep.mubr.f32.mxu0 %v17148_v58 }
 0x793   :  { %13847 = vmatprep.subr.mxu0 %v15824_v48  ;;  %13889 = vmatprep.subr.mxu1 %v15812_v29 }
 0x794   :  { %13827 = vmatmul.mubr.f32.gmra.mxu0 %v17149_v44  ;;  %13890 = vmatpush3.msra.mxu1 %v15812_v29 }
 0x795   :  { %13848 = vmatpush3.msra.mxu0 %v15824_v48  ;;  %13891 = vmatprep.subr.mxu1 %v15817_v63 }
 0x796   :  { %13849 = vmatprep.subr.mxu0 %v15839_v42  ;;  %13892 = vmatpush3.msra.mxu1 %v15817_v63 }
 0x797   :  { %13850 = vmatpush3.msra.mxu0 %v15839_v42  ;;  %13851 = vmatprep.mubr.f32.mxu0 %v17150_v22 }
 0x798   :  { %13871 = vmatprep.subr.mxu0 %v15842_v12  ;;  %13852 = vmatmul.mubr.f32.vlgmr.msra.gmra.mxu0 %v17151_v16 }
 0x799   :  { %13872 = vmatpush3.msra.mxu0 %v15842_v12  ;;  %13854 = vmatprep.mubr.f32.mxu0 %v17152_v25 }
 0x79a   :  { %13873 = vmatprep.subr.mxu0 %v15856_v57  ;;  %13868 = vmatprep.mubr.f32.mxu1 %v17153_v47 }
 0x79b   :  { %13874 = vmatpush3.msra.mxu0 %v15856_v57  ;;  %13869 = vmatmul.mubr.f32.gmra.mxu1 %v17154_v45 }
 0x79c   :  { %13875 = vmatprep.subr.mxu0 %v15845_v14  ;;  %13855 = vmatmul.mubr.f32.gmra.mxu0 %v17155_v3 }
 0x79d   :  { %13876 = vmatpush3.msra.mxu0 %v15845_v14  ;;  %13879 = vmatprep.mubr.msk.f32.mxu0 %vm260_vm1, %v17140_v20 }
 0x79e   :  { %13877 = vmatprep.subr.mxu0 %v15860_v31  ;;  %13893 = vmatprep.mubr.msk.f32.mxu1 %vm260_vm1, %v17140_v20 }
 0x79f   :  { %13878 = vmatpush3.msra.mxu0 %v15860_v31  ;;  %13894 = vmatmul.mubr.msk.f32.vlgmr.msra.gmra.mxu1 %vm260_vm1, %v17141_v11 }
 0x7a0   :  { %13880 = vmatmul.mubr.msk.f32.vlgmr.msra.gmra.mxu0 %vm260_vm1, %v17141_v11  ;;  %13896 = vmatprep.mubr.msk.f32.mxu1 %vm260_vm1, %v17142_v18 }
 0x7a1   :  { %13882 = vmatprep.mubr.msk.f32.mxu0 %vm260_vm1, %v17142_v18  ;;  %13899 = vmatprep.subr.mxu0 %v16491_v36 }
 0x7a2   :  { %13900 = vmatpush3.msra.mxu0 %v16491_v36  ;;  %13913 = vmatprep.subr.mxu1 %v9834_v2 }
 0x7a3   :  { %13897 = vmatmul.mubr.msk.f32.gmra.mxu1 %vm260_vm1, %v17143_v21  ;;  %13901 = vmatprep.subr.mxu0 %v16496_v0 }
 0x7a4   :  { %13883 = vmatmul.mubr.msk.f32.gmra.mxu0 %vm260_vm1, %v17143_v21  ;;  %13914 = vmatpush3.msra.mxu1 %v9834_v2 }
 0x7a5   :  { %13902 = vmatpush3.msra.mxu0 %v16496_v0  ;;  %13915 = vmatprep.subr.mxu1 %v9841_v7 }
 0x7a6   :  { %13903 = vmatprep.subr.mxu0 %v16506_v41  ;;  %13916 = vmatpush3.msra.mxu1 %v9841_v7 }
 0x7a7   :  { %13904 = vmatpush3.msra.mxu0 %v16506_v41  ;;  %13917 = vmatprep.subr.mxu1 %v9848_v39 }
 0x7a8   :  { %13905 = vmatprep.subr.mxu0 %v16518_v9  ;;  %13918 = vmatpush3.msra.mxu1 %v9848_v39 }
 0x7a9   :  { %13906 = vmatpush3.msra.mxu0 %v16518_v9  ;;  %13919 = vmatprep.subr.mxu1 %v9855_v54 }
 0x7aa   :  { %13927 = vmatprep.subr.mxu0 %v16494_v40  ;;  %13920 = vmatpush3.msra.mxu1 %v9855_v54 }
 0x7ab   :  { %13941 = vmatprep.subr.mxu1 %v16491_v36 }
 0x822   :  { %v13755_v59 = vpop.f32.mrf.mxu1 }
 0x824   :  { %v8643_v60 = vpop.f32.mrf.mxu1 }
 0x826   :  { %v13758_v8 = vpop.f32.mrf.mxu1 }
 0x828   :  { %v8655_v20 = vpop.f32.mrf.mxu1 }
 0x82a   :  { %v13741_v11 = vpop.f32.mrf.mxu0 }
 0x82b   :  { %v8650_v18 = vadd.f32 %v13755_v59, %v13741_v11  ;;  %v13783_v21 = vpop.f32.mrf.mxu1 }
 0x82c   :  { %v8522_v32 = vpop.f32.mrf.mxu0 }
 0x82d   :  { %v8644_v43 = vadd.f32 %v8643_v60, %v8522_v32  ;;  %v8839_v1 = vpop.f32.mrf.mxu1 }
 0x830   :  { %v13744_v35 = vpop.f32.mrf.mxu0 }
 0x831   :  { %v8662_v58 = vadd.f32 %v13758_v8, %v13744_v35  ;;  %v13786_v44 = vpop.f32.mrf.mxu1 }
 0x832   :  { %v8542_v22 = vpop.f32.mrf.mxu0 }
 0x833   :  { %v8656_v16 = vadd.f32 %v8655_v20, %v8542_v22  ;;  %v8855_v25 = vpop.f32.mrf.mxu1 }
 0x836   :  { %v13769_v47 = vpop.f32.mrf.mxu0 }
 0x837   :  { %v8749_v45 = vadd.f32 %v13769_v47, %v8650_v18  ;;  %v13811_v3 = vpop.f32.mrf.mxu1 }
 0x838   :  { %v8741_v52 = vpop.f32.mrf.mxu0 }
 0x839   :  { %v8742_v13 = vadd.f32 %v8741_v52, %v8644_v43  ;;  %v9039_v6 = vpop.f32.mrf.mxu1  ;;  %v8848_v46 = vadd.f32 %v13783_v21, %v8749_v45 }
 0x83b   :  { %v8840_v37 = vadd.f32 %v8839_v1, %v8742_v13 }
 0x83c   :  { %v13772_v2 = vpop.f32.mrf.mxu0 }
 0x83d   :  { %v8763_v24 = vadd.f32 %v13772_v2, %v8662_v58  ;;  %v13814_v7 = vpop.f32.mrf.mxu1 }
 0x83e   :  { %v8755_v51 = vpop.f32.mrf.mxu0 }
 0x83f   :  { %v8756_v39 = vadd.f32 %v8755_v51, %v8656_v16  ;;  %v8864_v23 = vadd.f32 %v13786_v44, %v8763_v24  ;;  %v9051_v54 = vpop.f32.mrf.mxu1 }
 0x841   :  { %v8856_v59 = vadd.f32 %v8855_v25, %v8756_v39 }
 0x842   :  { %v13797_v60 = vpop.f32.mrf.mxu0 }
 0x843   :  { %v8953_v8 = vadd.f32 %v13797_v60, %v8848_v46  ;;  %v13839_v20 = vpop.f32.mrf.mxu1 }
 0x844   :  { %v8946_v11 = vpop.f32.mrf.mxu0 }
 0x845   :  { %v9046_v32 = vadd.f32 %v13811_v3, %v8953_v8  ;;  %v8947_v18 = vadd.f32 %v8946_v11, %v8840_v37  ;;  %v9261_v21 = vpop.f32.mrf.mxu1 }
 0x847   :  { %v16542_v35 = vadd.f32 %v9046_v32, %v16341_v28  ;;  %v9040_v43 = vadd.f32 %v9039_v6, %v8947_v18 }
 0x848   :  { %v13800_v1 = vpop.f32.mrf.mxu0 }
 0x849   :  { %v16545_v58 = vadd.f32 %v9040_v43, %v16343_v49  ;;  %v8965_v22 = vadd.f32 %v13800_v1, %v8864_v23  ;;  %v13842_v25 = vpop.f32.mrf.mxu1 }
 0x84a   :  { %v8958_v16 = vpop.f32.mrf.mxu0 }
 0x84b   :  { %v9058_v44 = vadd.f32 %v13814_v7, %v8965_v22  ;;  %v8959_v47 = vadd.f32 %v8958_v16, %v8856_v59  ;;  %v9273_v28 = vpop.f32.mrf.mxu1 }
 0x84d   :  { %v16548_v45 = vadd.f32 %v9058_v44, %v16345_v62  ;;  %v9052_v52 = vadd.f32 %v9051_v54, %v8959_v47 }
 0x84e   :  { %v13825_v3 = vpop.f32.mrf.mxu0 }
 0x84f   :  { %v16551_v13 = vadd.f32 %v9052_v52, %v16347_v19  ;;  %v13867_v46 = vpop.f32.mrf.mxu1  ;;  %v9268_v51 = vadd.f32 %v13839_v20, %v13825_v3 }
 0x850   :  { %v9140_v6 = vpop.f32.mrf.mxu0 }
 0x851   :  { %v9457_v49 = vpop.f32.mrf.mxu1  ;;  %v9262_v7 = vadd.f32 %v9261_v21, %v9140_v6 }
 0x854   :  { %v13828_v37 = vpop.f32.mrf.mxu0 }
 0x855   :  { %v9280_v62 = vadd.f32 %v13842_v25, %v13828_v37 }
 0x856   :  { %v9160_v2 = vpop.f32.mrf.mxu0 }
 0x857   :  { %v9274_v32 = vadd.f32 %v9273_v28, %v9160_v2 }
 0x858   :  { %v13853_v24 = vpop.f32.mrf.mxu0 }
 0x859   :  { %v9367_v23 = vadd.f32 %v13853_v24, %v9268_v51 }
 0x85a   :  { %v9359_v39 = vpop.f32.mrf.mxu0 }
 0x85b   :  { %v13870_v59 = vpop.f32.mrf.mxu1  ;;  %v9360_v8 = vadd.f32 %v9359_v39, %v9262_v7  ;;  %v9466_v19 = vadd.f32 %v13867_v46, %v9367_v23 }
 0x85c   :  { %v13856_v60 = vpop.f32.mrf.mxu0 }
 0x85d   :  { %v9473_v54 = vpop.f32.mrf.mxu1  ;;  %v9381_v18 = vadd.f32 %v13856_v60, %v9280_v62  ;;  %v9458_v22 = vadd.f32 %v9457_v49, %v9360_v8 }
 0x85e   :  { %v9373_v11 = vpop.f32.mrf.mxu0 }
 0x85f   :  { %v13895_v43 = vpop.f32.mrf.mxu1  ;;  %v9374_v16 = vadd.f32 %v9373_v11, %v9274_v32  ;;  %v9482_v20 = vadd.f32 %v13870_v59, %v9381_v18 }
 0x860   :  { %v13881_v1 = vpop.f32.mrf.mxu0 }
 0x861   :  { %v9571_v44 = vadd.f32 %v13881_v1, %v9466_v19  ;;  %v9657_v47 = vpop.f32.mrf.mxu1  ;;  %v9474_v51 = vadd.f32 %v9473_v54, %v9374_v16 }
 0x862   :  { %v9564_v52 = vpop.f32.mrf.mxu0 }
 0x863   :  { %v9664_v3 = vadd.f32 %v13895_v43, %v9571_v44  ;;  %v9565_v21 = vadd.f32 %v9564_v52, %v9458_v22  ;;  %v13898_v24 = vpop.f32.mrf.mxu1 }
 0x864   :  { %v13884_v6 = vpop.f32.mrf.mxu0 }
 0x865   :  { %v9688_v25 = vsel %vm260_vm1, %v9664_v3, 0  ;;  %v9658_v37 = vadd.f32 %v9657_v47, %v9565_v21  ;;  %v9583_v39 = vadd.f32 %v13884_v6, %v9482_v20  ;;  %v9669_v59 = vpop.f32.mrf.mxu1 }
 0x866   :  { %v16554_v28 = vand.u32 4294901760, %v9688_v25  ;;  %v9576_v46 = vpop.f32.mrf.mxu0 }
 0x867   :  { %v9685_v2 = vsel %vm260_vm1, %v9658_v37, 0  ;;  %v9676_v49 = vadd.f32 %v13898_v24, %v9583_v39  ;;  %v9577_v7 = vadd.f32 %v9576_v46, %v9474_v51 }
 0x868   :  { %v9776_v23 = vsub.f32 %v9688_v25, %v16554_v28  ;;  %v16558_v60 = vand.u32 4294901760, %v9685_v2 }
 0x869   :  { %v9694_v62 = vsel %vm260_vm1, %v9676_v49, 0  ;;  %v9670_v8 = vadd.f32 %v9669_v59, %v9577_v7 }
 0x86a   :  { %v9777_v54 = vand.u32 4294901760, %v9776_v23  ;;  %v9766_v11 = vsub.f32 %v9685_v2, %v16558_v60  ;;  %v16562_v32 = vand.u32 4294901760, %v9694_v62  ;;  %13921 = vmatprep.mubr.f32.mxu1 %v16558_v60 }
 0x86b   :  { %v9691_v19 = vsel %vm260_vm1, %v9670_v8, 0  ;;  %13922 = vmatmul.mubr.f32.vlgmr.msra.gmra.mxu1 %v16554_v28 }
 0x86c   :  { %v9796_v18 = vsub.f32 %v9694_v62, %v16562_v32  ;;  %v16568_v43 = vand.u32 4294901760, %v9691_v19  ;;  %13942 = vmatpush3.msra.mxu1 %v16491_v36  ;;  %v9767_v1 = vand.u32 4294901760, %v9766_v11  ;;  %v9778_v22 = vsub.f32 %v9776_v23, %v9777_v54 }
 0x86d   :  { %13943 = vmatprep.subr.mxu1 %v16496_v0 }
 0x86e   :  { %v9786_v16 = vsub.f32 %v9691_v19, %v16568_v43  ;;  %13944 = vmatpush3.msra.mxu1 %v16496_v0  ;;  %13924 = vmatprep.mubr.f32.mxu1 %v16568_v43  ;;  %v9768_v44 = vsub.f32 %v9766_v11, %v9767_v1  ;;  %v9797_v47 = vand.u32 4294901760, %v9796_v18  ;;  %v9779_v3 = vand.u32 4294901760, %v9778_v22 }
 0x86f   :  { %13945 = vmatprep.subr.mxu1 %v16506_v41  ;;  %13925 = vmatmul.mubr.f32.gmra.mxu1 %v16562_v32 }
 0x870   :  { %13946 = vmatpush3.msra.mxu1 %v16506_v41  ;;  %13949 = vmatprep.mubr.f32.mxu1 %v9767_v1  ;;  %v9769_v52 = vand.u32 4294901760, %v9768_v44  ;;  %v9787_v20 = vand.u32 4294901760, %v9786_v16  ;;  %v9798_v6 = vsub.f32 %v9796_v18, %v9797_v47 }
 0x871   :  { %13947 = vmatprep.subr.mxu1 %v16518_v9 }
 0x872   :  { %13948 = vmatpush3.msra.mxu1 %v16518_v9  ;;  %13907 = vmatprep.mubr.f32.mxu0 %v9769_v52  ;;  %v9788_v21 = vsub.f32 %v9786_v16, %v9787_v20  ;;  %v9799_v51 = vand.u32 4294901760, %v9798_v6 }
 0x873   :  { %13969 = vmatprep.subr.mxu1 %v16491_v36  ;;  %13908 = vmatmul.mubr.f32.vlgmr.msra.gmra.mxu0 %v9779_v3 }
 0x874   :  { %13928 = vmatpush3.msra.mxu0 %v16494_v40  ;;  %13950 = vmatmul.mubr.f32.vlgmr.msra.gmra.mxu1 %v9777_v54  ;;  %v9789_v24 = vand.u32 4294901760, %v9788_v21  ;;  %v17161_v40 = vld [vmem:[#allocation112_spill] sm:$0xff] }
 0x875   :  { %13970 = vmatpush3.msra.mxu1 %v16491_v36  ;;  %13929 = vmatprep.subr.mxu0 %v16504_v10  ;;  %v17160_v36 = vld [vmem:[#allocation105_spill] sm:$0xff] }
 0x876   :  { %13952 = vmatprep.mubr.f32.mxu1 %v9787_v20  ;;  %13971 = vmatprep.subr.mxu1 %v16496_v0 }
 0x877   :  { %13930 = vmatpush3.msra.mxu0 %v16504_v10  ;;  %13972 = vmatpush3.msra.mxu1 %v16496_v0  ;;  %v17162_v0 = vld [vmem:[#allocation106_spill] sm:$0xff] }
 0x878   :  { %13910 = vmatprep.mubr.f32.mxu0 %v9789_v24  ;;  %13931 = vmatprep.subr.mxu0 %v16516_v17  ;;  %v17164_v10 = vld [vmem:[#allocation114_spill] sm:$0xff] }
 0x879   :  { %13973 = vmatprep.subr.mxu1 %v16506_v41  ;;  %13911 = vmatmul.mubr.f32.gmra.mxu0 %v9799_v51 }
 0x87a   :  { %13932 = vmatpush3.msra.mxu0 %v16516_v17  ;;  %13953 = vmatmul.mubr.f32.gmra.mxu1 %v9797_v47  ;;  %v10929_v17 = vld [vmem:[#allocation7 + $0x80] sm:$0xff] }
 0x87b   :  { %13974 = vmatpush3.msra.mxu1 %v16506_v41  ;;  %13933 = vmatprep.subr.mxu0 %v16528_v4 }
 0x87c   :  { %13935 = vmatprep.mubr.f32.mxu0 %v9766_v11  ;;  %13975 = vmatprep.subr.mxu1 %v16518_v9 }
 0x87d   :  { %13977 = vmatprep.mubr.f32.mxu1 %v16558_v60  ;;  %13934 = vmatpush3.msra.mxu0 %v16528_v4 }
 0x87e   :  { %13976 = vmatpush3.msra.mxu1 %v16518_v9  ;;  %13955 = vmatprep.subr.mxu0 %v16501_v55 }
 0x87f   :  { %13997 = vmatprep.subr.mxu1 %v15863_v61  ;;  %13936 = vmatmul.mubr.f32.vlgmr.msra.gmra.mxu0 %v9776_v23 }
 0x880   :  { %13956 = vmatpush3.msra.mxu0 %v16501_v55  ;;  %13978 = vmatmul.mubr.f32.vlgmr.msra.gmra.mxu1 %v16554_v28  ;;  %v17163_v55 = vld [vmem:[#allocation113_spill] sm:$0xff] }
 0x881   :  { %13998 = vmatpush3.msra.mxu1 %v15863_v61  ;;  %13938 = vmatprep.mubr.f32.mxu0 %v9786_v16  ;;  %v17156_v61 = vld [vmem:[#allocation100_spill] sm:$0xff] }
 0x882   :  { %13957 = vmatprep.subr.mxu0 %v16513_v30  ;;  %13980 = vmatprep.mubr.f32.mxu1 %v16568_v43 }
 0x883   :  { %13999 = vmatprep.subr.mxu1 %v15874_v56  ;;  %13958 = vmatpush3.msra.mxu0 %v16513_v30 }
 0x884   :  { %14000 = vmatpush3.msra.mxu1 %v15874_v56  ;;  %13959 = vmatprep.subr.mxu0 %v16525_v33  ;;  %v17157_v56 = vld [vmem:[#allocation101_spill] sm:$0xff] }
 0x885   :  { %14001 = vmatprep.subr.mxu1 %v15882_v53  ;;  %13939 = vmatmul.mubr.f32.gmra.mxu0 %v9796_v18 }
 0x886   :  { %13960 = vmatpush3.msra.mxu0 %v16525_v33  ;;  %13981 = vmatmul.mubr.f32.gmra.mxu1 %v16562_v32 }
 0x887   :  { %14002 = vmatpush3.msra.mxu1 %v15882_v53  ;;  %13961 = vmatprep.subr.mxu0 %v16535_v27  ;;  %v17158_v53 = vld [vmem:[#allocation104_spill] sm:$0xff] }
 0x888   :  { %13963 = vmatprep.mubr.f32.mxu0 %v16558_v60  ;;  %14003 = vmatprep.subr.mxu1 %v15890_v15 }
 0x889   :  { %13962 = vmatpush3.msra.mxu0 %v16535_v27  ;;  %14004 = vmatpush3.msra.mxu1 %v15890_v15  ;;  %v17159_v15 = vld [vmem:[#allocation111_spill] sm:$0xff]  ;;  %v16722_v27 = vand.u32 4294901760, %v10929_v17 }
 0x88a   :  { %13983 = vmatprep.subr.mxu0 %v15820_v5  ;;  %14005 = vmatprep.mubr.msk.f32.mxu1 %vm260_vm1, %v15446_v34 }
 0x88b   :  { %14025 = vmatprep.subr.mxu1 %v15820_v5  ;;  %13964 = vmatmul.mubr.f32.vlgmr.msra.gmra.mxu0 %v16554_v28  ;;  %v16732_v28 = vsub.f32 %v10929_v17, %v16722_v27 }
 0x88c   :  { %13984 = vmatpush3.msra.mxu0 %v15820_v5  ;;  %14006 = vmatmul.mubr.msk.f32.vlgmr.msra.gmra.mxu1 %vm260_vm1, %v17156_v61 }
 0x88d   :  { %14026 = vmatpush3.msra.mxu1 %v15820_v5  ;;  %13966 = vmatprep.mubr.f32.mxu0 %v16568_v43  ;;  %v16739_v49 = vand.u32 4294901760, %v16732_v28 }
 0x88e   :  { %13985 = vmatprep.subr.mxu0 %v15834_v26  ;;  %14027 = vmatprep.subr.mxu1 %v15834_v26 }
 0x88f   :  { %13986 = vmatpush3.msra.mxu0 %v15834_v26  ;;  %14028 = vmatpush3.msra.mxu1 %v15834_v26  ;;  %v11103_v23 = vsub.f32 %v16732_v28, %v16739_v49 }
 0x890   :  { %13987 = vmatprep.subr.mxu0 %v15812_v29  ;;  %14008 = vmatprep.mubr.msk.f32.mxu1 %vm260_vm1, %v17157_v56 }
 0x891   :  { %14029 = vmatprep.subr.mxu1 %v15812_v29  ;;  %13967 = vmatmul.mubr.f32.gmra.mxu0 %v16562_v32  ;;  %v11104_v60 = vand.u32 4294901760, %v11103_v23 }
 0x892   :  { %13988 = vmatpush3.msra.mxu0 %v15812_v29  ;;  %14009 = vmatmul.mubr.msk.f32.gmra.mxu1 %vm260_vm1, %v17158_v53 }
 0x893   :  { %14030 = vmatpush3.msra.mxu1 %v15812_v29  ;;  %13989 = vmatprep.subr.mxu0 %v15817_v63 }
 0x894   :  { %14031 = vmatprep.subr.mxu1 %v15817_v63  ;;  %13990 = vmatpush3.msra.mxu0 %v15817_v63 }
 0x895   :  { %14032 = vmatpush3.msra.mxu1 %v15817_v63  ;;  %13991 = vmatprep.mubr.f32.mxu0 %v17159_v15 }
 0x896   :  { %14011 = vmatprep.subr.mxu0 %v15830_v50  ;;  %14033 = vmatprep.mubr.f32.mxu1 %v17160_v36 }
 0x897   :  { %14053 = vmatprep.subr.mxu1 %v15820_v5  ;;  %13992 = vmatmul.mubr.f32.vlgmr.msra.gmra.mxu0 %v17161_v40 }
 0x898   :  { %14012 = vmatpush3.msra.mxu0 %v15830_v50  ;;  %14034 = vmatmul.mubr.f32.vlgmr.msra.gmra.mxu1 %v17162_v0  ;;  %v17166_v50 = vld [vmem:[#allocation103_spill] sm:$0xff] }
 0x899   :  { %14054 = vmatpush3.msra.mxu1 %v15820_v5  ;;  %14013 = vmatprep.subr.mxu0 %v15849_v38  ;;  %v17165_v5 = vld [vmem:[#allocation102_spill] sm:$0xff] }
 0x89a   :  { %14055 = vmatprep.subr.mxu1 %v15834_v26  ;;  %14014 = vmatpush3.msra.mxu0 %v15849_v38 }
 0x89b   :  { %14056 = vmatpush3.msra.mxu1 %v15834_v26  ;;  %13994 = vmatprep.mubr.f32.mxu0 %v17163_v55  ;;  %v17167_v26 = vld [vmem:[#allocation107_spill] sm:$0xff] }
 0x89c   :  { %14015 = vmatprep.subr.mxu0 %v15824_v48  ;;  %14057 = vmatprep.subr.mxu1 %v15812_v29 }
 0x89d   :  { %13995 = vmatmul.mubr.f32.gmra.mxu0 %v17164_v10  ;;  %14058 = vmatpush3.msra.mxu1 %v15812_v29  ;;  %v17168_v29 = vld [vmem:[#allocation109_spill] sm:$0xff] }
 0x89e   :  { %14016 = vmatpush3.msra.mxu0 %v15824_v48  ;;  %14059 = vmatprep.subr.mxu1 %v15817_v63  ;;  %v17169_v48 = vld [vmem:[#allocation110_spill] sm:$0xff] }
 0x89f   :  { %14017 = vmatprep.subr.mxu0 %v15839_v42  ;;  %14060 = vmatpush3.msra.mxu1 %v15817_v63  ;;  %v17170_v63 = vld [vmem:[#allocation108_spill] sm:$0xff] }
 0x8a0   :  { %14018 = vmatpush3.msra.mxu0 %v15839_v42  ;;  %14019 = vmatprep.mubr.f32.mxu0 %v17165_v5 }
 0x8a1   :  { %14039 = vmatprep.subr.mxu0 %v15842_v12  ;;  %14020 = vmatmul.mubr.f32.vlgmr.msra.gmra.mxu0 %v17166_v50 }
 0x8a2   :  { %14040 = vmatpush3.msra.mxu0 %v15842_v12  ;;  %14022 = vmatprep.mubr.f32.mxu0 %v17167_v26  ;;  %v10931_v12 = vld [vmem:[#allocation7 + $0x90] sm:$0xff] }
 0x8a3   :  { %14041 = vmatprep.subr.mxu0 %v15856_v57  ;;  %14036 = vmatprep.mubr.f32.mxu1 %v17168_v29  ;;  %v16700_v38 = vand.u32 4294901760, %v10931_v12 }
 0x8a4   :  { %14042 = vmatpush3.msra.mxu0 %v15856_v57  ;;  %14037 = vmatmul.mubr.f32.gmra.mxu1 %v17169_v48  ;;  %v10930_v57 = vld [vmem:[#allocation7 + $0x88] sm:$0xff] }
 0x8a5   :  { %14043 = vmatprep.subr.mxu0 %v15845_v14  ;;  %14023 = vmatmul.mubr.f32.gmra.mxu0 %v17170_v63  ;;  %v16708_v41 = vsub.f32 %v10931_v12, %v16700_v38  ;;  %v16710_v30 = vand.u32 4294901760, %v10930_v57 }
 0x8a6   :  { %14044 = vmatpush3.msra.mxu0 %v15845_v14  ;;  %14047 = vmatprep.mubr.msk.f32.mxu0 %vm260_vm1, %v15446_v34 }
 0x8a7   :  { %14045 = vmatprep.subr.mxu0 %v15860_v31  ;;  %14061 = vmatprep.mubr.msk.f32.mxu1 %vm260_vm1, %v15446_v34  ;;  %v10932_v34 = vld [vmem:[#allocation7 + $0x98] sm:$0xff]  ;;  %v16717_v33 = vand.u32 4294901760, %v16708_v41  ;;  %v16720_v4 = vsub.f32 %v10930_v57, %v16710_v30 }
 0x8a8   :  { %14046 = vmatpush3.msra.mxu0 %v15860_v31  ;;  %14062 = vmatmul.mubr.msk.f32.vlgmr.msra.gmra.mxu1 %vm260_vm1, %v17156_v61  ;;  %v16695_v42 = vand.u32 4294901760, %v10932_v34 }
 0x8a9   :  { %14048 = vmatmul.mubr.msk.f32.vlgmr.msra.gmra.mxu0 %vm260_vm1, %v17156_v61  ;;  %14064 = vmatprep.mubr.msk.f32.mxu1 %vm260_vm1, %v17157_v56  ;;  %v11089_v37 = vsub.f32 %v16708_v41, %v16717_v33  ;;  %v16729_v39 = vand.u32 4294901760, %v16720_v4 }
 0x8aa   :  { %14050 = vmatprep.mubr.msk.f32.mxu0 %vm260_vm1, %v17157_v56  ;;  %v16698_v14 = vsub.f32 %v10932_v34, %v16695_v42  ;;  %14067 = vmatprep.subr.mxu0 %v16695_v42 }
 0x8ab   :  { %14068 = vmatpush3.msra.mxu0 %v16695_v42  ;;  %v11090_v46 = vand.u32 4294901760, %v11089_v37  ;;  %v11096_v2 = vsub.f32 %v16720_v4, %v16729_v39 }
 0x8ac   :  { %14065 = vmatmul.mubr.msk.f32.gmra.mxu1 %vm260_vm1, %v17158_v53  ;;  %v16705_v31 = vand.u32 4294901760, %v16698_v14  ;;  %14069 = vmatprep.subr.mxu0 %v16700_v38 }
 0x8ad   :  { %14051 = vmatmul.mubr.msk.f32.gmra.mxu0 %vm260_vm1, %v17158_v53  ;;  %v11097_v7 = vand.u32 4294901760, %v11096_v2 }
 0x8ae   :  { %14070 = vmatpush3.msra.mxu0 %v16700_v38  ;;  %v11082_v9 = vsub.f32 %v16698_v14, %v16705_v31 }
 0x8af   :  { %14071 = vmatprep.subr.mxu0 %v16710_v30 }
 0x8b0   :  { %14072 = vmatpush3.msra.mxu0 %v16710_v30  ;;  %v11083_v25 = vand.u32 4294901760, %v11082_v9 }
 0x8b1   :  { %14073 = vmatprep.subr.mxu0 %v16722_v27 }
 0x8b2   :  { %14074 = vmatpush3.msra.mxu0 %v16722_v27  ;;  %14081 = vmatprep.subr.mxu1 %v11083_v25 }
 0x8b3   :  { %14095 = vmatprep.subr.mxu0 %v16698_v14  ;;  %14082 = vmatpush3.msra.mxu1 %v11083_v25 }
 0x8b4   :  { %14083 = vmatprep.subr.mxu1 %v11090_v46 }
 0x8b5   :  { %14084 = vmatpush3.msra.mxu1 %v11090_v46 }
 0x8b6   :  { %14085 = vmatprep.subr.mxu1 %v11097_v7 }
 0x8b7   :  { %14086 = vmatpush3.msra.mxu1 %v11097_v7 }
 0x8b8   :  { %14087 = vmatprep.subr.mxu1 %v11104_v60 }
 0x8b9   :  { %14088 = vmatpush3.msra.mxu1 %v11104_v60 }
 0x8ba   :  { %14109 = vmatprep.subr.mxu1 %v16695_v42 }
 0x92b   :  { %v13923_v59 = vpop.f32.mrf.mxu1 }
 0x92d   :  { %v9892_v62 = vpop.f32.mrf.mxu1 }
 0x92f   :  { %v13926_v8 = vpop.f32.mrf.mxu1 }
 0x931   :  { %v9904_v54 = vpop.f32.mrf.mxu1 }
 0x933   :  { %v13909_v11 = vpop.f32.mrf.mxu0 }
 0x934   :  { %v9899_v32 = vadd.f32 %v13923_v59, %v13909_v11  ;;  %v13951_v19 = vpop.f32.mrf.mxu1 }
 0x935   :  { %v9771_v18 = vpop.f32.mrf.mxu0 }
 0x936   :  { %v9893_v43 = vadd.f32 %v9892_v62, %v9771_v18  ;;  %v10088_v1 = vpop.f32.mrf.mxu1 }
 0x939   :  { %v13912_v22 = vpop.f32.mrf.mxu0 }
 0x93a   :  { %v9911_v16 = vadd.f32 %v13926_v8, %v13912_v22  ;;  %v13954_v44 = vpop.f32.mrf.mxu1 }
 0x93b   :  { %v9791_v47 = vpop.f32.mrf.mxu0 }
 0x93c   :  { %v9905_v52 = vadd.f32 %v9904_v54, %v9791_v47  ;;  %v10104_v20 = vpop.f32.mrf.mxu1 }
 0x93f   :  { %v13937_v3 = vpop.f32.mrf.mxu0 }
 0x940   :  { %v9998_v21 = vadd.f32 %v13937_v3, %v9899_v32  ;;  %v13979_v6 = vpop.f32.mrf.mxu1 }
 0x941   :  { %v9990_v24 = vpop.f32.mrf.mxu0 }
 0x942   :  { %v9991_v51 = vadd.f32 %v9990_v24, %v9893_v43  ;;  %v10288_v61 = vpop.f32.mrf.mxu1  ;;  %v10097_v56 = vadd.f32 %v13951_v19, %v9998_v21 }
 0x944   :  { %v10089_v53 = vadd.f32 %v10088_v1, %v9991_v51 }
 0x945   :  { %v13940_v15 = vpop.f32.mrf.mxu0 }
 0x946   :  { %v10012_v36 = vadd.f32 %v13940_v15, %v9911_v16  ;;  %v13982_v40 = vpop.f32.mrf.mxu1 }
 0x947   :  { %v10004_v0 = vpop.f32.mrf.mxu0 }
 0x948   :  { %v10005_v55 = vadd.f32 %v10004_v0, %v9905_v52  ;;  %v10113_v10 = vadd.f32 %v13954_v44, %v10012_v36  ;;  %v10300_v5 = vpop.f32.mrf.mxu1 }
 0x94a   :  { %v10105_v50 = vadd.f32 %v10104_v20, %v10005_v55 }
 0x94b   :  { %v13965_v26 = vpop.f32.mrf.mxu0 }
 0x94c   :  { %v10202_v29 = vadd.f32 %v13965_v26, %v10097_v56  ;;  %v14007_v48 = vpop.f32.mrf.mxu1 }
 0x94d   :  { %v10195_v63 = vpop.f32.mrf.mxu0 }
 0x94e   :  { %v10295_v34 = vadd.f32 %v13979_v6, %v10202_v29  ;;  %v10196_v12 = vadd.f32 %v10195_v63, %v10089_v53  ;;  %v10510_v9 = vpop.f32.mrf.mxu1 }
 0x950   :  { %v16746_v57 = vadd.f32 %v10295_v34, %v16542_v35  ;;  %v10289_v17 = vadd.f32 %v10288_v61, %v10196_v12 }
 0x951   :  { %v13968_v25 = vpop.f32.mrf.mxu0 }
 0x952   :  { %v16749_v37 = vadd.f32 %v10289_v17, %v16545_v58  ;;  %v10214_v46 = vadd.f32 %v13968_v25, %v10113_v10  ;;  %v14010_v60 = vpop.f32.mrf.mxu1 }
 0x953   :  { %v10207_v2 = vpop.f32.mrf.mxu0 }
 0x954   :  { %v10307_v7 = vadd.f32 %v13982_v40, %v10214_v46  ;;  %v10208_v23 = vadd.f32 %v10207_v2, %v10105_v50  ;;  %v10522_v35 = vpop.f32.mrf.mxu1 }
 0x956   :  { %v16752_v59 = vadd.f32 %v10307_v7, %v16548_v45  ;;  %v10301_v62 = vadd.f32 %v10300_v5, %v10208_v23 }
 0x957   :  { %v13993_v8 = vpop.f32.mrf.mxu0 }
 0x958   :  { %v16755_v54 = vadd.f32 %v10301_v62, %v16551_v13  ;;  %v14035_v32 = vpop.f32.mrf.mxu1  ;;  %v10517_v1 = vadd.f32 %v14007_v48, %v13993_v8 }
 0x959   :  { %v10389_v11 = vpop.f32.mrf.mxu0 }
 0x95a   :  { %v10706_v58 = vpop.f32.mrf.mxu1  ;;  %v10511_v16 = vadd.f32 %v10510_v9, %v10389_v11 }
 0x95d   :  { %v13996_v19 = vpop.f32.mrf.mxu0 }
 0x95e   :  { %v10529_v45 = vadd.f32 %v14010_v60, %v13996_v19 }
 0x95f   :  { %v10409_v18 = vpop.f32.mrf.mxu0 }
 0x960   :  { %v10523_v6 = vadd.f32 %v10522_v35, %v10409_v18 }
 0x961   :  { %v14021_v43 = vpop.f32.mrf.mxu0 }
 0x962   :  { %v10616_v44 = vadd.f32 %v14021_v43, %v10517_v1 }
 0x963   :  { %v10608_v22 = vpop.f32.mrf.mxu0 }
 0x964   :  { %v14038_v47 = vpop.f32.mrf.mxu1  ;;  %v10609_v20 = vadd.f32 %v10608_v22, %v10511_v16  ;;  %v10715_v13 = vadd.f32 %v14035_v32, %v10616_v44 }
 0x965   :  { %v14024_v52 = vpop.f32.mrf.mxu0 }
 0x966   :  { %v10722_v3 = vpop.f32.mrf.mxu1  ;;  %v10630_v24 = vadd.f32 %v14024_v52, %v10529_v45  ;;  %v10707_v56 = vadd.f32 %v10706_v58, %v10609_v20 }
 0x967   :  { %v10622_v21 = vpop.f32.mrf.mxu0 }
 0x968   :  { %v14063_v51 = vpop.f32.mrf.mxu1  ;;  %v10623_v53 = vadd.f32 %v10622_v21, %v10523_v6  ;;  %v10731_v0 = vadd.f32 %v14038_v47, %v10630_v24 }
 0x969   :  { %v14049_v61 = vpop.f32.mrf.mxu0 }
 0x96a   :  { %v10820_v15 = vadd.f32 %v14049_v61, %v10715_v13  ;;  %v10906_v36 = vpop.f32.mrf.mxu1  ;;  %v10723_v26 = vadd.f32 %v10722_v3, %v10623_v53 }
 0x96b   :  { %v10813_v40 = vpop.f32.mrf.mxu0 }
 0x96c   :  { %v10913_v55 = vadd.f32 %v14063_v51, %v10820_v15  ;;  %v10814_v10 = vadd.f32 %v10813_v40, %v10707_v56  ;;  %v14066_v50 = vpop.f32.mrf.mxu1 }
 0x96d   :  { %v14052_v5 = vpop.f32.mrf.mxu0 }
 0x96e   :  { %v10937_v29 = vsel %vm260_vm1, %v10913_v55, 0  ;;  %v10907_v48 = vadd.f32 %v10906_v36, %v10814_v10  ;;  %v10832_v63 = vadd.f32 %v14052_v5, %v10731_v0  ;;  %v10918_v7 = vpop.f32.mrf.mxu1 }
 0x96f   :  { %v16758_v34 = vand.u32 4294901760, %v10937_v29  ;;  %v10825_v12 = vpop.f32.mrf.mxu0 }
 0x970   :  { %v10934_v17 = vsel %vm260_vm1, %v10907_v48, 0  ;;  %v10925_v9 = vadd.f32 %v14066_v50, %v10832_v63  ;;  %v10826_v25 = vadd.f32 %v10825_v12, %v10723_v26 }
 0x971   :  { %v11025_v46 = vsub.f32 %v10937_v29, %v16758_v34  ;;  %v16762_v2 = vand.u32 4294901760, %v10934_v17 }
 0x972   :  { %v10943_v23 = vsel %vm260_vm1, %v10925_v9, 0  ;;  %v10919_v60 = vadd.f32 %v10918_v7, %v10826_v25 }
 0x973   :  { %v11026_v62 = vand.u32 4294901760, %v11025_v46  ;;  %v11015_v8 = vsub.f32 %v10934_v17, %v16762_v2  ;;  %v16766_v35 = vand.u32 4294901760, %v10943_v23  ;;  %14089 = vmatprep.mubr.f32.mxu1 %v16762_v2 }
 0x974   :  { %v10940_v11 = vsel %vm260_vm1, %v10919_v60, 0  ;;  %14090 = vmatmul.mubr.f32.vlgmr.msra.gmra.mxu1 %v16758_v34  ;;  %v11772_v60 = vld [vmem:[%s16844_s4] ss:$0 sm:$0xff] }
 0x975   :  { %v11045_v32 = vsub.f32 %v10943_v23, %v16766_v35  ;;  %v11034_v19 = vand.u32 4294901760, %v10940_v11  ;;  %14110 = vmatpush3.msra.mxu1 %v16695_v42  ;;  %v11016_v18 = vand.u32 4294901760, %v11015_v8  ;;  %v11027_v58 = vsub.f32 %v11025_v46, %v11026_v62 }
 0x976   :  { %14111 = vmatprep.subr.mxu1 %v16700_v38 }
 0x977   :  { %v11046_v43 = vand.u32 4294901760, %v11045_v32  ;;  %v11035_v1 = vsub.f32 %v10940_v11, %v11034_v19  ;;  %14092 = vmatprep.mubr.f32.mxu1 %v11034_v19  ;;  %14112 = vmatpush3.msra.mxu1 %v16700_v38  ;;  %v11017_v22 = vsub.f32 %v11015_v8, %v11016_v18  ;;  %v11028_v47 = vand.u32 4294901760, %v11027_v58 }
 0x978   :  { %14093 = vmatmul.mubr.f32.gmra.mxu1 %v16766_v35  ;;  %14113 = vmatprep.subr.mxu1 %v16710_v30 }
 0x979   :  { %14114 = vmatpush3.msra.mxu1 %v16710_v30  ;;  %14117 = vmatprep.mubr.f32.mxu1 %v11016_v18  ;;  %v11018_v16 = vand.u32 4294901760, %v11017_v22  ;;  %v11036_v44 = vand.u32 4294901760, %v11035_v1  ;;  %v11047_v45 = vsub.f32 %v11045_v32, %v11046_v43 }
 0x97a   :  { %14115 = vmatprep.subr.mxu1 %v16722_v27 }
 0x97b   :  { %14075 = vmatprep.mubr.f32.mxu0 %v11018_v16  ;;  %14116 = vmatpush3.msra.mxu1 %v16722_v27  ;;  %v11037_v52 = vsub.f32 %v11035_v1, %v11036_v44  ;;  %v11048_v3 = vand.u32 4294901760, %v11047_v45  ;;  %v14167_v16 = vld [vmem:[#allocation2 + $0x8] sm:$0xff] }
 0x97c   :  { %14076 = vmatmul.mubr.f32.vlgmr.msra.gmra.mxu0 %v11028_v47  ;;  %14118 = vmatmul.mubr.f32.vlgmr.msra.gmra.mxu1 %v11026_v62 }
 0x97d   :  { %14137 = vmatprep.subr.mxu1 %v16695_v42  ;;  %14096 = vmatpush3.msra.mxu0 %v16698_v14  ;;  %v11038_v20 = vand.u32 4294901760, %v11037_v52 }
 0x97e   :  { %14120 = vmatprep.mubr.f32.mxu1 %v11036_v44  ;;  %14138 = vmatpush3.msra.mxu1 %v16695_v42 }
 0x97f   :  { %14097 = vmatprep.subr.mxu0 %v16708_v41  ;;  %14139 = vmatprep.subr.mxu1 %v16700_v38 }
 0x980   :  { %14078 = vmatprep.mubr.f32.mxu0 %v11038_v20  ;;  %14098 = vmatpush3.msra.mxu0 %v16708_v41 }
 0x981   :  { %14140 = vmatpush3.msra.mxu1 %v16700_v38  ;;  %14079 = vmatmul.mubr.f32.gmra.mxu0 %v11048_v3  ;;  %v14169_v3 = vld [vmem:[#allocation2 + $0x18] sm:$0xff] }
 0x982   :  { %14099 = vmatprep.subr.mxu0 %v16720_v4  ;;  %14121 = vmatmul.mubr.f32.gmra.mxu1 %v11046_v43  ;;  %v14166_v43 = vld [vmem:[#allocation2] sm:$0xff] }
 0x983   :  { %14141 = vmatprep.subr.mxu1 %v16710_v30  ;;  %14100 = vmatpush3.msra.mxu0 %v16720_v4 }
 0x984   :  { %14103 = vmatprep.mubr.f32.mxu0 %v11015_v8  ;;  %14142 = vmatpush3.msra.mxu1 %v16710_v30 }
 0x985   :  { %14145 = vmatprep.mubr.f32.mxu1 %v16762_v2  ;;  %14101 = vmatprep.subr.mxu0 %v16732_v28 }
 0x986   :  { %14143 = vmatprep.subr.mxu1 %v16722_v27  ;;  %14102 = vmatpush3.msra.mxu0 %v16732_v28 }
 0x987   :  { %14144 = vmatpush3.msra.mxu1 %v16722_v27  ;;  %14104 = vmatmul.mubr.f32.vlgmr.msra.gmra.mxu0 %v11025_v46 }
 0x988   :  { %14123 = vmatprep.subr.mxu0 %v16705_v31  ;;  %14146 = vmatmul.mubr.f32.vlgmr.msra.gmra.mxu1 %v16758_v34 }
 0x989   :  { %14106 = vmatprep.mubr.f32.mxu0 %v11035_v1  ;;  %14124 = vmatpush3.msra.mxu0 %v16705_v31 }
 0x98a   :  { %14148 = vmatprep.mubr.f32.mxu1 %v11034_v19  ;;  %14125 = vmatprep.subr.mxu0 %v16717_v33 }
 0x98b   :  { %14126 = vmatpush3.msra.mxu0 %v16717_v33 }
 0x98c   :  { %14107 = vmatmul.mubr.f32.gmra.mxu0 %v11045_v32  ;;  %14127 = vmatprep.subr.mxu0 %v16729_v39 }
 0x98d   :  { %14149 = vmatmul.mubr.f32.gmra.mxu1 %v16766_v35  ;;  %14128 = vmatpush3.msra.mxu0 %v16729_v39 }
 0x98e   :  { %14131 = vmatprep.mubr.f32.mxu0 %v16762_v2  ;;  %14129 = vmatprep.subr.mxu0 %v16739_v49 }
 0x98f   :  { %14130 = vmatpush3.msra.mxu0 %v16739_v49 }
 0x990   :  { %14132 = vmatmul.mubr.f32.vlgmr.msra.gmra.mxu0 %v16758_v34 }
 0x991   :  { %14134 = vmatprep.mubr.f32.mxu0 %v11034_v19 }
 0x994   :  { %14135 = vmatmul.mubr.f32.gmra.mxu0 %v16766_v35 }
 0xa34   :  { %v14091_v42 = vpop.f32.mrf.mxu1 }
 0xa36   :  { %v11141_v14 = vpop.f32.mrf.mxu1 }
 0xa38   :  { %v14094_v38 = vpop.f32.mrf.mxu1 }
 0xa3a   :  { %v11153_v31 = vpop.f32.mrf.mxu1 }
 0xa3c   :  { %v14077_v41 = vpop.f32.mrf.mxu0  ;;  %v14119_v30 = vpop.f32.mrf.mxu1 }
 0xa3d   :  { %v11148_v13 = vadd.f32 %v14091_v42, %v14077_v41 }
 0xa3e   :  { %v11020_v33 = vpop.f32.mrf.mxu0  ;;  %v11337_v4 = vpop.f32.mrf.mxu1 }
 0xa3f   :  { %v11142_v24 = vadd.f32 %v11141_v14, %v11020_v33 }
 0xa41   :  { %v14080_v27 = vpop.f32.mrf.mxu0 }
 0xa42   :  { %v14122_v28 = vpop.f32.mrf.mxu1  ;;  %v11160_v53 = vadd.f32 %v14094_v38, %v14080_v27 }
 0xa43   :  { %v11040_v39 = vpop.f32.mrf.mxu0 }
 0xa44   :  { %v11353_v6 = vpop.f32.mrf.mxu1  ;;  %v11154_v40 = vadd.f32 %v11153_v31, %v11040_v39 }
 0xa47   :  { %v14105_v21 = vpop.f32.mrf.mxu0 }
 0xa48   :  { %v11247_v51 = vadd.f32 %v14105_v21, %v11148_v13  ;;  %v14147_v61 = vpop.f32.mrf.mxu1 }
 0xa49   :  { %v11239_v49 = vpop.f32.mrf.mxu0 }
 0xa4a   :  { %v11240_v15 = vadd.f32 %v11239_v49, %v11142_v24  ;;  %v11346_v55 = vadd.f32 %v14119_v30, %v11247_v51  ;;  %v11537_v10 = vpop.f32.mrf.mxu1 }
 0xa4c   :  { %v14108_v56 = vpop.f32.mrf.mxu0  ;;  %v11338_v29 = vadd.f32 %v11337_v4, %v11240_v15 }
 0xa4d   :  { %v11261_v0 = vadd.f32 %v14108_v56, %v11160_v53  ;;  %v14150_v17 = vpop.f32.mrf.mxu1 }
 0xa4e   :  { %v11253_v36 = vpop.f32.mrf.mxu0 }
 0xa4f   :  { %v11254_v50 = vadd.f32 %v11253_v36, %v11154_v40  ;;  %v11362_v12 = vadd.f32 %v14122_v28, %v11261_v0  ;;  %v11549_v11 = vpop.f32.mrf.mxu1 }
 0xa50   :  { %v14133_v5 = vpop.f32.mrf.mxu0 }
 0xa51   :  { %v11451_v26 = vadd.f32 %v14133_v5, %v11346_v55  ;;  %v11354_v7 = vadd.f32 %v11353_v6, %v11254_v50 }
 0xa52   :  { %v11444_v48 = vpop.f32.mrf.mxu0 }
 0xa53   :  { %v11544_v63 = vadd.f32 %v14147_v61, %v11451_v26  ;;  %v11445_v34 = vadd.f32 %v11444_v48, %v11338_v29 }
 0xa54   :  { %v14136_v9 = vpop.f32.mrf.mxu0 }
 0xa55   :  { %v11560_v25 = vadd.f32 %v11544_v63, %v16746_v57  ;;  %v11538_v46 = vadd.f32 %v11537_v10, %v11445_v34  ;;  %v11463_v2 = vadd.f32 %v14136_v9, %v11362_v12 }
 0xa56   :  { %v11456_v23 = vpop.f32.mrf.mxu0 }
 0xa57   :  { %v11559_v62 = vadd.f32 %v11538_v46, %v16749_v37  ;;  %v11556_v8 = vadd.f32 %v14150_v17, %v11463_v2  ;;  %v11457_v35 = vadd.f32 %v11456_v23, %v11354_v7  ;;  %v11571_v58 = vadd.f32 %v11772_v60, %v11560_v25  ;;  %v14168_v37 = vld [vmem:[#allocation2 + $0x10] sm:$0xff]  ;;  %v11773_v17 = vld [vmem:[%s16845_s5] ss:$0 sm:$0xff]  ;;  %s14262_s5 = smov [#allocation8]  }
 0xa58   :  { %v11774_v25 = vld [vmem:[%s16846_s6] ss:$0 sm:$0xff]  ;;  %s11662_s21 = sshll.u32 %s14262_s5, 4  ;;  %s11663_s21 = int_to_ptr.vmem [resolvable:$true] %s11662_s21 }
 0xa59   :  { %v11562_v32 = vadd.f32 %v11556_v8, %v16752_v59  ;;  %v11550_v19 = vadd.f32 %v11549_v11, %v11457_v35  ;;  %v11570_v18 = vadd.f32 %v11772_v60, %v11559_v62  ;;  %v11575_v44 = vadd.f32 %v14167_v16, %v11571_v58  ;;  %s14230_s6 = scalar_lea.vmem %s11663_s21, 512  ;;  %p14235_p2 = scmp.lt.s32.totalorder %s11663_s21, %s11663_s21 }
 0xa5a   :  { %p14231_p1 = scmp.ne.s32.totalorder %s11663_s21, %s14230_s6  ;;  %p14236_p3 = scmp.lt.s32.totalorder %s14230_s6, %s14230_s6 }
 0xa5b   :  { %v11561_v57 = vadd.f32 %v11550_v19, %v16755_v54  ;;  %v11574_v1 = vadd.f32 %v14166_v43, %v11570_v18  ;;  %v11573_v52 = vadd.f32 %v11772_v60, %v11562_v32  ;;  %v11581_v20 = vsel %vm260_vm1, %v11575_v44, 0.0 }
 0xa5c   :  { %p14237_p4 = por %p14236_p3, %p14235_p2 }
 0xa5d   :  { %v11578_v22 = vsel %vm260_vm1, %v11574_v1, 0.0  ;;  %v11572_v47 = vadd.f32 %v11772_v60, %v11561_v57  ;;  %v11577_v42 = vadd.f32 %v14169_v3, %v11573_v52 }
 0xa5e   :  { %11579 = vadd.xlane.f32.xlu0 %v11578_v22  ;;  %p14238_p5 = pnand %p14237_p4, %p14231_p1 }
 0xa5f   :  { %v11576_v45 = vadd.f32 %v14168_v37, %v11572_v47  ;;  %v11587_v54 = vsel %vm260_vm1, %v11577_v42, 0.0 }
 0xa61   :  { %v11584_v59 = vsel %vm260_vm1, %v11576_v45, 0.0 }
 0xa62   :  { %11582 = vadd.xlane.f32.xlu0 %v11581_v20  ;;  %11585 = vadd.xlane.f32.xlu1 %v11584_v59 }
 0xa66   :  { %11588 = vadd.xlane.f32.xlu1 %v11587_v54 }
 0xae7   :  { %v11580_v14 = vpop.xlane.xlu0 %11579 }
 0xae8   :  { %v11591_v38 = vmul.f32 0.03125, %v11580_v14 }
 0xaea   :  { %v11595_v31 = vsub.f32 %v11574_v1, %v11591_v38 }
 0xaeb   :  { %v11583_v41 = vpop.xlane.xlu0 %11582  ;;  %v11586_v30 = vpop.xlane.xlu1 %11585 }
 0xaec   :  { %v11592_v33 = vmul.f32 0.03125, %v11583_v41  ;;  %v11593_v4 = vmul.f32 0.03125, %v11586_v30  ;;  %v11599_v27 = vmul.f32 %v11595_v31, %v11595_v31 }
 0xaee   :  { %v11596_v39 = vsub.f32 %v11575_v44, %v11592_v33  ;;  %v11597_v28 = vsub.f32 %v11576_v45, %v11593_v4  ;;  %v11603_v21 = vsel %vm260_vm1, %v11599_v27, 0.0 }
 0xaef   :  { %11604 = vadd.xlane.f32.xlu0 %v11603_v21  ;;  %v11589_v6 = vpop.xlane.xlu1 %11588 }
 0xaf0   :  { %v11594_v13 = vmul.f32 0.03125, %v11589_v6  ;;  %v11600_v49 = vmul.f32 %v11596_v39, %v11596_v39  ;;  %v11601_v24 = vmul.f32 %v11597_v28, %v11597_v28 }
 0xaf2   :  { %v11598_v51 = vsub.f32 %v11577_v42, %v11594_v13  ;;  %v11606_v61 = vsel %vm260_vm1, %v11600_v49, 0.0  ;;  %v11609_v56 = vsel %vm260_vm1, %v11601_v24, 0.0 }
 0xaf3   :  { %11607 = vadd.xlane.f32.xlu1 %v11606_v61  ;;  %11610 = vadd.xlane.f32.xlu0 %v11609_v56 }
 0xaf4   :  { %v11602_v53 = vmul.f32 %v11598_v51, %v11598_v51 }
 0xaf6   :  { %v11612_v15 = vsel %vm260_vm1, %v11602_v53, 0.0 }
 0xaf7   :  { %11613 = vadd.xlane.f32.xlu1 %v11612_v15 }
 0xb78   :  { %v11605_v36 = vpop.xlane.xlu0 %11604 }
 0xb79   :  { %v11615_v40 = vmul.f32 0.03125, %v11605_v36 }
 0xb7b   :  { %v11619_v0 = vadd.f32 1e-05, %v11615_v40 }
 0xb7c   :  { %v11611_v55 = vpop.xlane.xlu0 %11610  ;;  %v11608_v10 = vpop.xlane.xlu1 %11607 }
 0xb7d   :  { %14158 = vrsqrt.f32 %v11619_v0  ;;  %v11617_v5 = vmul.f32 0.03125, %v11611_v55  ;;  %v11616_v50 = vmul.f32 0.03125, %v11608_v10 }
 0xb7f   :  { %v11621_v26 = vadd.f32 1e-05, %v11617_v5  ;;  %v11620_v29 = vadd.f32 1e-05, %v11616_v50 }
 0xb80   :  { %v11614_v48 = vpop.xlane.xlu1 %11613 }
 0xb81   :  { %14160 = vrsqrt.f32 %v11621_v26  ;;  %v11618_v63 = vmul.f32 0.03125, %v11614_v48 }
 0xb82   :  { %14162 = vrsqrt.f32 %v11620_v29 }
 0xb83   :  { %v11622_v34 = vadd.f32 1e-05, %v11618_v63 }
 0xb85   :  { %14164 = vrsqrt.f32 %v11622_v34 }
 0xb8a   :  { %v14159_v12 = vpop.eup %14158 }
 0xb8b   :  { %v11627_v9 = vmul.f32 %v14159_v12, %v11595_v31 }
 0xb8d   :  { %v11638_v46 = vmul.f32 %v11773_v17, %v11627_v9 }
 0xb8e   :  { %v14161_v2 = vpop.eup %14160 }
 0xb8f   :  { %v14163_v7 = vpop.eup %14162  ;;  %v11629_v23 = vmul.f32 %v14161_v2, %v11597_v28  ;;  %v11649_v60 = vadd.f32 %v11774_v25, %v11638_v46 }
 0xb90   :  { %v11628_v62 = vmul.f32 %v14163_v7, %v11596_v39 }
 0xb91   :  { %v11640_v8 = vmul.f32 %v11773_v17, %v11629_v23  ;;  %11653 = vst.msk [vmem:[#allocation8] sm:$0xff] %vm260_vm1, %v11649_v60 }
 0xb92   :  { %v14165_v35 = vpop.eup %14164  ;;  %v11639_v11 = vmul.f32 %v11773_v17, %v11628_v62 }
 0xb93   :  { %v11630_v32 = vmul.f32 %v14165_v35, %v11598_v51  ;;  %v11651_v19 = vadd.f32 %v11774_v25, %v11640_v8 }
 0xb94   :  { %v11650_v18 = vadd.f32 %v11774_v25, %v11639_v11 }
 0xb95   :  { %v11641_v58 = vmul.f32 %v11773_v17, %v11630_v32  ;;  %11655 = vst.msk [vmem:[#allocation8 + $0x10] sm:$0xff] %vm260_vm1, %v11651_v19 }
 0xb96   :  { %11654 = vst.msk [vmem:[#allocation8 + $0x8] sm:$0xff] %vm260_vm1, %v11650_v18 }
 0xb97   :  { %v11652_v57 = vadd.f32 %v11774_v25, %v11641_v58 }
 0xb99   :  { %11656 = vst.msk [vmem:[#allocation8 + $0x18] sm:$0xff] %vm260_vm1, %v11652_v57 }
 0xb9a   :  { %14241 = shalt.err (!%p14238_p5)
}
 0xb9b   :  { %11668 = dma.vmem_to_hbm [thread:$0]  %s11663_s21, 512, %s16847_s7, [#allocation4], %s14258_s29, %s14258_s29, %s14259_s30  }
 0xb9c   :  { %14254 = dma.done.wait [#allocation4], 512  }
 0xb9d   :  { %14255 = vsyncadd [#allocation4], 4294966784 }
 0xb9e   :  { %11672 = vsyncpa [#allocation3], 1 }
 0xb9f   :  { %11673 = vsyncpa [#allocation6], 1 }
 0xba0   :  { %11674 = vsyncpa [#allocation4], 1 }

</bundles_post_ra>
